<compile_context>
chip_gen: v7x
topology: tpu7x:2x2x1
jax: 0.10.0
libtpu: 0.0.40
codegen_flags: <defaults>
</compile_context>

<pallas_src>
import functools
import numpy as np

import jax
import jax.numpy as jnp
from jax.experimental import pallas as pl
from jax.experimental.pallas import tpu as pltpu

VMEM = pltpu.MemorySpace.VMEM
MATMUL_DTYPE = jnp.bfloat16          # MXU inputs; accumulation stays f32

# ------------------------- model sizes (small demo) -------------------------
VOCAB = 64
D_MODEL = 32
D_INNER = 64          # 2 * D_MODEL
D_STATE = 8
DT_RANK = 4
N_LAYERS = 4
BATCH = 2
SEQ = 8

LORA_NPARAMS = 12
IA3_NPARAMS = 10

CONFIG = dict(
    lora_rank=16,
    lora_alpha_factor=2,
    lora_dropout=0.05,          # eval mode -> identity
    ia3_init_std=0.02,
    peft_threshold_percentile=75.0,
    apply_sparsity_mask=True,
)

# ------------------------------ kernel helpers -------------------------------

def _mm(a, b):
    """MXU matmul: bf16 operands, f32 accumulation."""
    return jnp.dot(a.astype(MATMUL_DTYPE), b.astype(MATMUL_DTYPE),
                   preferred_element_type=jnp.float32)


def _silu(x):
    return x * jax.nn.sigmoid(x)


def _softplus(x):
    # numerically stable softplus: max(x, 0) + log1p(exp(-|x|))
    return jnp.maximum(x, 0.0) + jnp.log1p(jnp.exp(-jnp.abs(x)))


# ------------------------------ fused forward kernel -------------------------

def fused_forward_kernel(*args, layer_types, batch, seq):
    """One kernel for the whole forward.

    args = (x_ref, *per-layer weight refs..., norm_g, norm_b, lm_head_w_t,
            out_ref).  The per-layer adapter type (LoRA vs IA3) is chosen
    statically while tracing, so there is zero in-kernel branching.
    """
    out_ref = args[-1]
    it = iter(args[:-1])
    x_ref = next(it)

    h = x_ref[...]                                            # (M, D_MODEL) f32

    for adapter in layer_types:
        # ------------------ adapted in_proj (merged x|z, lane-dense 128) -----
        if adapter == "lora":
            (w_in, b_in, la_in, lb_in, w_xp, b_dt, a_t, dv,
             w_out, b_out, la_out, lb_out) = [next(it) for _ in range(LORA_NPARAMS)]
            xz = _mm(h, w_in[...]) + b_in[...]
            xz = xz + _mm(_mm(h, la_in[...]), lb_in[...])     # masked-LoRA delta
        else:  # ia3
            (w_in, b_in, eff_in, w_xp, b_dt, a_t, dv,
             w_out, b_out, eff_out) = [next(it) for _ in range(IA3_NPARAMS)]
            xz = (_mm(h, w_in[...]) + b_in[...]) * eff_in[...]

        x_in = xz[:, :D_INNER]                                # (M, C)
        z = xz[:, D_INNER:]                                   # (M, C)
        xs = _silu(x_in)

        # ------------------ x_proj with dt_proj folded in (one MXU pass) -----
        proj = _mm(xs, w_xp[...])                             # (M, C + 2S)
        dt = _softplus(proj[:, :D_INNER] + b_dt[...])         # (M, C)
        Bp = proj[:, D_INNER:D_INNER + D_STATE]               # (M, S)
        Cp = proj[:, D_INNER + D_STATE:D_INNER + 2 * D_STATE]  # (M, S)

        # ------------------ vectorized selective scan ------------------------
        # Precompute dA / dBx for every (t, s) in one shot; only time is
        # sequential (seq steps), batch and state live in full vregs.
        A_T = a_t[...]                                        # (S, C) f32
        dA = jnp.exp(dt[:, None, :] * A_T[None, :, :])        # (M, S, C)
        dBx = (dt * xs)[:, None, :] * Bp[:, :, None]          # (M, S, C)
        dA4 = dA.reshape(batch, seq, D_STATE, D_INNER)
        dBx4 = dBx.reshape(batch, seq, D_STATE, D_INNER)

        hstate = jnp.zeros((batch, D_STATE, D_INNER), jnp.float32)
        h_steps = []
        for t in range(seq):                                  # sequential recurrence
            hstate = dA4[:, t] * hstate + dBx4[:, t]          # (B, S, C)
            h_steps.append(hstate)
        H = jnp.stack(h_steps, axis=1)                        # (B, L, S, C)

        Cp4 = Cp.reshape(batch, seq, D_STATE)
        y = jnp.sum(H * Cp4[:, :, :, None], axis=2)           # (B, L, C)
        y = y.reshape(batch * seq, D_INNER) + dv[...] * xs    # D skip
        y = y * _silu(z)                                      # gate

        # ------------------ adapted out_proj + residual ----------------------
        if adapter == "lora":
            out = _mm(y, w_out[...]) + b_out[...] + _mm(_mm(y, la_out[...]), lb_out[...])
        else:
            out = (_mm(y, w_out[...]) + b_out[...]) * eff_out[...]
        h = h + out

    # ---------------------- fused LayerNorm + lm_head ------------------------
    g_ref = next(it)
    bta_ref = next(it)
    wh_ref = next(it)
    mu = jnp.mean(h, axis=-1, keepdims=True)
    var = jnp.mean((h - mu) ** 2, axis=-1, keepdims=True)
    xn = (h - mu) * jax.lax.rsqrt(var + 1e-5) * g_ref[...] + bta_ref[...]
    out_ref[...] = _mm(xn, wh_ref[...])


# ------------------------------ jitted wrapper --------------------------------

@functools.partial(jax.jit, static_argnames=("layer_types", "batch", "seq"))
def sgh_peft_forward(embedding, flat_params, input_ids, *, layer_types, batch, seq):
    # TODO(synk): embedding token-id gather stays in plain JAX glue (no matmul hot path).
    x = jnp.take(embedding, input_ids.reshape(-1), axis=0)     # (M, D_MODEL)
    operands = (x, *flat_params)
    logits = pl.pallas_call(
        functools.partial(fused_forward_kernel, layer_types=layer_types,
                          batch=batch, seq=seq),
        out_shape=jax.ShapeDtypeStruct((batch * seq, VOCAB), jnp.float32),
        in_specs=[pl.BlockSpec(memory_space=VMEM)] * len(operands),
        out_specs=pl.BlockSpec(memory_space=VMEM),
        # Everything (weights + activations) is fully VMEM-resident (<200 KB),
        # so no grid is needed.  TODO(synk): if M = B*L grows, add a grid over
        # M with dimension_semantics=("parallel",) for the second v7x TC and
        # BlockSpec tiling against the 64 MiB v7x VMEM budget.
    )(*operands)
    return logits.reshape(batch, seq, VOCAB)


# ------------------------------ parameter init --------------------------------

def _uniform(key, shape, bound):
    return jax.random.uniform(key, shape, jnp.float32, -bound, bound)


def _init_linear(key, out_f, in_f, bias=True):
    kw, kb = jax.random.split(key)
    bound = 1.0 / float(np.sqrt(in_f))
    w = _uniform(kw, (out_f, in_f), bound)
    b = _uniform(kb, (out_f,), bound) if bias else None
    return w, b


def init_layer(key, adapter_type, sparsity_mask, cfg):
    keys = jax.random.split(key, 8)
    p = {"adapter_type": adapter_type}
    p["in_proj_w"], p["in_proj_b"] = _init_linear(keys[0], 2 * D_INNER, D_MODEL)
    p["x_proj_w"], _ = _init_linear(keys[1], DT_RANK + 2 * D_STATE, D_INNER, bias=False)
    p["dt_proj_w"], p["dt_proj_b"] = _init_linear(keys[2], D_INNER, DT_RANK)
    p["out_proj_w"], p["out_proj_b"] = _init_linear(keys[3], D_MODEL, D_INNER)
    A = jnp.tile(jnp.arange(1, D_STATE + 1, dtype=jnp.float32)[None, :], (D_INNER, 1))
    p["A_log"] = jnp.log(A)
    p["D_skip"] = jnp.ones((D_INNER,), jnp.float32)

    if adapter_type == "lora":
        r = cfg["lora_rank"]
        # kaiming_uniform(a=sqrt(5)) == U(-1/sqrt(fan_in), 1/sqrt(fan_in))
        p["lora_A_in"] = _uniform(keys[4], (r, D_MODEL), 1.0 / np.sqrt(D_MODEL))
        p["lora_B_in"] = jnp.zeros((2 * D_INNER, r), jnp.float32)
        # in_proj.out_features == 2 * mask.numel() -> mask repeated twice
        p["mask_in"] = jnp.tile(sparsity_mask, 2)
        p["lora_A_out"] = _uniform(keys[5], (r, D_INNER), 1.0 / np.sqrt(D_INNER))
        p["lora_B_out"] = jnp.zeros((D_MODEL, r), jnp.float32)
        # out_proj: mask.numel() != out_features (d_model) -> falls back to ones
        p["mask_out"] = jnp.ones((D_MODEL,), jnp.float32)
    else:  # ia3
        std = cfg["ia3_init_std"]
        p["ia3_in"] = 1.0 + std * jax.random.normal(keys[4], (2 * D_INNER,), jnp.float32)
        p["ia3_mask_in"] = jnp.tile(sparsity_mask, 2)
        p["ia3_out"] = 1.0 + std * jax.random.normal(keys[5], (D_MODEL,), jnp.float32)
        p["ia3_mask_out"] = jnp.ones((D_MODEL,), jnp.float32)   # out_proj: no mask
    return p


def prepare_layer(p, lora_scaling):
    """Pre-transpose / merge / fold everything the fused kernel needs.
    Returns (adapter_type, ordered list of kernel operands)."""
    w_in_t = jnp.transpose(p["in_proj_w"]).astype(MATMUL_DTYPE)        # (D_MODEL, 2C)
    b_in = p["in_proj_b"].reshape(1, 2 * D_INNER)

    w_xp = p["x_proj_w"]                                               # (R+2S, C)
    # Fold dt_proj into x_proj: dt_raw = xs @ (W_xp_dt^T @ W_dt^T) + b_dt,
    # then merge dt|B|C columns into one lane-dense weight.
    w_dt_fold = jnp.transpose(w_xp[:DT_RANK]) @ jnp.transpose(p["dt_proj_w"])  # (C, C)
    w_b_t = jnp.transpose(w_xp[DT_RANK:DT_RANK + D_STATE])             # (C, S)
    w_c_t = jnp.transpose(w_xp[DT_RANK + D_STATE:])                    # (C, S)
    w_xp_t = jnp.concatenate([w_dt_fold, w_b_t, w_c_t], axis=1).astype(MATMUL_DTYPE)
    b_dt = p["dt_proj_b"].reshape(1, D_INNER)

    a_t = jnp.transpose(-jnp.exp(p["A_log"]))                          # (S, C) f32
    dv = p["D_skip"].reshape(1, D_INNER)

    w_out_t = jnp.transpose(p["out_proj_w"]).astype(MATMUL_DTYPE)      # (C, D_MODEL)
    b_out = p["out_proj_b"].reshape(1, D_MODEL)

    if p["adapter_type"] == "lora":
        la_in_t = jnp.transpose(p["lora_A_in"]).astype(MATMUL_DTYPE)   # (D_MODEL, r)
        lb_in_t = jnp.transpose(
            p["lora_B_in"] * p["mask_in"][:, None] * lora_scaling).astype(MATMUL_DTYPE)
        la_out_t = jnp.transpose(p["lora_A_out"]).astype(MATMUL_DTYPE)  # (C, r)
        lb_out_t = jnp.transpose(
            p["lora_B_out"] * p["mask_out"][:, None] * lora_scaling).astype(MATMUL_DTYPE)
        params = [w_in_t, b_in, la_in_t, lb_in_t, w_xp_t, b_dt, a_t, dv,
                  w_out_t, b_out, la_out_t, lb_out_t]
        assert len(params) == LORA_NPARAMS
    else:
        eff_in = jnp.where(p["ia3_mask_in"] > 0.5, p["ia3_in"], 1.0).reshape(1, 2 * D_INNER)
        eff_out = jnp.where(p["ia3_mask_out"] > 0.5, p["ia3_out"], 1.0).reshape(1, D_MODEL)
        params = [w_in_t, b_in, eff_in, w_xp_t, b_dt, a_t, dv,
                  w_out_t, b_out, eff_out]
        assert len(params) == IA3_NPARAMS
    return p["adapter_type"], params


def build_model(key):
    keys = jax.random.split(key, N_LAYERS + 4)

    # layer importance scores + sparsity masks (synthetic, deterministic)
    scores = [0.9, 0.3, 0.5, 0.1]
    masks = []
    for i in range(N_LAYERS):
        m = (jax.random.uniform(jax.random.fold_in(keys[0], i), (D_INNER,)) > 0.3)
        masks.append(m.astype(jnp.float32))

    threshold = np.percentile(np.asarray(scores), CONFIG["peft_threshold_percentile"])
    adapter_types = ["lora" if s >= threshold else "ia3" for s in scores]
    lora_scaling = float(CONFIG["lora_rank"] * CONFIG["lora_alpha_factor"]) / CONFIG["lora_rank"]

    raw_layers = [init_layer(keys[3 + i], adapter_types[i], masks[i], CONFIG)
                  for i in range(N_LAYERS)]

    layer_types = []
    flat = []
    for p in raw_layers:
        t, params = prepare_layer(p, lora_scaling)
        layer_types.append(t)
        flat.extend(params)

    # final LayerNorm + lm_head operands
    flat.append(jnp.ones((1, D_MODEL), jnp.float32))    # norm gamma
    flat.append(jnp.zeros((1, D_MODEL), jnp.float32))   # norm beta
    flat.append(jnp.transpose(
        0.02 * jax.random.normal(keys[2], (VOCAB, D_MODEL), jnp.float32)
    ).astype(MATMUL_DTYPE))                             # lm_head weight^T

    embedding = 0.02 * jax.random.normal(keys[1], (VOCAB, D_MODEL), jnp.float32)
    return embedding, tuple(layer_types), tuple(flat)


# ----------------------------------- main ------------------------------------

if __name__ == "__main__":
    root = jax.random.PRNGKey(0)
    k_param, k_ids = jax.random.split(root)

    embedding, layer_types, flat_params = build_model(k_param)
    input_ids = jax.random.randint(k_ids, (BATCH, SEQ), 0, VOCAB, dtype=jnp.int32)

    logits = sgh_peft_forward(embedding, flat_params, input_ids,
                              layer_types=layer_types, batch=BATCH, seq=SEQ)
    logits = jax.block_until_ready(logits)

    assert logits.shape == (BATCH, SEQ, VOCAB)
    assert bool(jnp.all(jnp.isfinite(logits)))
    print("KERNEL_OK")
</pallas_src>

<mosaic_0001>
module attributes {stable_mosaic.version = 11 : i64} {
  func.func @fused_forward_kernel(%arg0: memref<16x32xf32, #tpu.memory_space<vmem>>, %arg1: memref<32x128xbf16, #tpu.memory_space<vmem>>, %arg2: memref<1x128xf32, #tpu.memory_space<vmem>>, %arg3: memref<32x16xbf16, #tpu.memory_space<vmem>>, %arg4: memref<16x128xbf16, #tpu.memory_space<vmem>>, %arg5: memref<64x80xbf16, #tpu.memory_space<vmem>>, %arg6: memref<1x64xf32, #tpu.memory_space<vmem>>, %arg7: memref<8x64xf32, #tpu.memory_space<vmem>>, %arg8: memref<1x64xf32, #tpu.memory_space<vmem>>, %arg9: memref<64x32xbf16, #tpu.memory_space<vmem>>, %arg10: memref<1x32xf32, #tpu.memory_space<vmem>>, %arg11: memref<64x16xbf16, #tpu.memory_space<vmem>>, %arg12: memref<16x32xbf16, #tpu.memory_space<vmem>>, %arg13: memref<32x128xbf16, #tpu.memory_space<vmem>>, %arg14: memref<1x128xf32, #tpu.memory_space<vmem>>, %arg15: memref<1x128xf32, #tpu.memory_space<vmem>>, %arg16: memref<64x80xbf16, #tpu.memory_space<vmem>>, %arg17: memref<1x64xf32, #tpu.memory_space<vmem>>, %arg18: memref<8x64xf32, #tpu.memory_space<vmem>>, %arg19: memref<1x64xf32, #tpu.memory_space<vmem>>, %arg20: memref<64x32xbf16, #tpu.memory_space<vmem>>, %arg21: memref<1x32xf32, #tpu.memory_space<vmem>>, %arg22: memref<1x32xf32, #tpu.memory_space<vmem>>, %arg23: memref<32x128xbf16, #tpu.memory_space<vmem>>, %arg24: memref<1x128xf32, #tpu.memory_space<vmem>>, %arg25: memref<1x128xf32, #tpu.memory_space<vmem>>, %arg26: memref<64x80xbf16, #tpu.memory_space<vmem>>, %arg27: memref<1x64xf32, #tpu.memory_space<vmem>>, %arg28: memref<8x64xf32, #tpu.memory_space<vmem>>, %arg29: memref<1x64xf32, #tpu.memory_space<vmem>>, %arg30: memref<64x32xbf16, #tpu.memory_space<vmem>>, %arg31: memref<1x32xf32, #tpu.memory_space<vmem>>, %arg32: memref<1x32xf32, #tpu.memory_space<vmem>>, %arg33: memref<32x128xbf16, #tpu.memory_space<vmem>>, %arg34: memref<1x128xf32, #tpu.memory_space<vmem>>, %arg35: memref<1x128xf32, #tpu.memory_space<vmem>>, %arg36: memref<64x80xbf16, #tpu.memory_space<vmem>>, %arg37: memref<1x64xf32, #tpu.memory_space<vmem>>, %arg38: memref<8x64xf32, #tpu.memory_space<vmem>>, %arg39: memref<1x64xf32, #tpu.memory_space<vmem>>, %arg40: memref<64x32xbf16, #tpu.memory_space<vmem>>, %arg41: memref<1x32xf32, #tpu.memory_space<vmem>>, %arg42: memref<1x32xf32, #tpu.memory_space<vmem>>, %arg43: memref<1x32xf32, #tpu.memory_space<vmem>>, %arg44: memref<1x32xf32, #tpu.memory_space<vmem>>, %arg45: memref<32x64xbf16, #tpu.memory_space<vmem>>, %arg46: memref<16x64xf32, #tpu.memory_space<vmem>>) attributes {dimension_semantics = [], scalar_prefetch = 0 : i64, scratch_operands = 0 : i64, tpu.core_type = #tpu.core_type<tc>} {
    %c0 = arith.constant 0 : index
    %c0_0 = arith.constant 0 : index
    %0 = vector.load %arg0[%c0, %c0_0] : memref<16x32xf32, #tpu.memory_space<vmem>>, vector<16x32xf32>
    %c0_1 = arith.constant 0 : index
    %c0_2 = arith.constant 0 : index
    %1 = vector.load %arg1[%c0_1, %c0_2] : memref<32x128xbf16, #tpu.memory_space<vmem>>, vector<32x128xbf16>
    %2 = arith.truncf %0 : vector<16x32xf32> to vector<16x32xbf16>
    %cst = arith.constant dense<0.000000e+00> : vector<16x128xf32>
    %3 = tpu.matmul %2, %1, %cst {dimension_numbers = #tpu.dot_dimension_numbers<[1], [0], [0], [1], [0, 0, 1, 1], [], []>} : vector<16x32xbf16>, vector<32x128xbf16>, vector<16x128xf32> -> vector<16x128xf32>
    %c0_3 = arith.constant 0 : index
    %c0_4 = arith.constant 0 : index
    %4 = vector.load %arg2[%c0_3, %c0_4] : memref<1x128xf32, #tpu.memory_space<vmem>>, vector<1x128xf32>
    %5 = vector.broadcast %4 : vector<1x128xf32> to vector<16x128xf32>
    %6 = arith.addf %3, %5 : vector<16x128xf32>
    %c0_5 = arith.constant 0 : index
    %c0_6 = arith.constant 0 : index
    %7 = vector.load %arg3[%c0_5, %c0_6] : memref<32x16xbf16, #tpu.memory_space<vmem>>, vector<32x16xbf16>
    %8 = arith.truncf %0 : vector<16x32xf32> to vector<16x32xbf16>
    %cst_7 = arith.constant dense<0.000000e+00> : vector<16x16xf32>
    %9 = tpu.matmul %8, %7, %cst_7 {dimension_numbers = #tpu.dot_dimension_numbers<[1], [0], [0], [1], [0, 0, 1, 1], [], []>} : vector<16x32xbf16>, vector<32x16xbf16>, vector<16x16xf32> -> vector<16x16xf32>
    %c0_8 = arith.constant 0 : index
    %c0_9 = arith.constant 0 : index
    %10 = vector.load %arg4[%c0_8, %c0_9] : memref<16x128xbf16, #tpu.memory_space<vmem>>, vector<16x128xbf16>
    %11 = arith.truncf %9 : vector<16x16xf32> to vector<16x16xbf16>
    %cst_10 = arith.constant dense<0.000000e+00> : vector<16x128xf32>
    %12 = tpu.matmul %11, %10, %cst_10 {dimension_numbers = #tpu.dot_dimension_numbers<[1], [0], [0], [1], [0, 0, 1, 1], [], []>} : vector<16x16xbf16>, vector<16x128xbf16>, vector<16x128xf32> -> vector<16x128xf32>
    %13 = arith.addf %6, %12 : vector<16x128xf32>
    %14 = vector.extract_strided_slice %13 {offsets = [0, 0], sizes = [16, 64], strides = [1, 1]} : vector<16x128xf32> to vector<16x64xf32>
    %15 = vector.extract_strided_slice %13 {offsets = [0, 64], sizes = [16, 64], strides = [1, 1]} : vector<16x128xf32> to vector<16x64xf32>
    %16 = arith.negf %14 : vector<16x64xf32>
    %17 = math.exp %16 : vector<16x64xf32>
    %cst_11 = arith.constant 1.000000e+00 : f32
    %18 = vector.broadcast %cst_11 : f32 to vector<16x64xf32>
    %19 = arith.addf %18, %17 : vector<16x64xf32>
    %20 = arith.divf %18, %19 : vector<16x64xf32>
    %21 = arith.mulf %14, %20 : vector<16x64xf32>
    %c0_12 = arith.constant 0 : index
    %c0_13 = arith.constant 0 : index
    %22 = vector.load %arg5[%c0_12, %c0_13] : memref<64x80xbf16, #tpu.memory_space<vmem>>, vector<64x80xbf16>
    %23 = arith.truncf %21 : vector<16x64xf32> to vector<16x64xbf16>
    %cst_14 = arith.constant dense<0.000000e+00> : vector<16x80xf32>
    %24 = tpu.matmul %23, %22, %cst_14 {dimension_numbers = #tpu.dot_dimension_numbers<[1], [0], [0], [1], [0, 0, 1, 1], [], []>} : vector<16x64xbf16>, vector<64x80xbf16>, vector<16x80xf32> -> vector<16x80xf32>
    %25 = vector.extract_strided_slice %24 {offsets = [0, 0], sizes = [16, 64], strides = [1, 1]} : vector<16x80xf32> to vector<16x64xf32>
    %c0_15 = arith.constant 0 : index
    %c0_16 = arith.constant 0 : index
    %26 = vector.load %arg6[%c0_15, %c0_16] : memref<1x64xf32, #tpu.memory_space<vmem>>, vector<1x64xf32>
    %27 = vector.broadcast %26 : vector<1x64xf32> to vector<16x64xf32>
    %28 = arith.addf %25, %27 : vector<16x64xf32>
    %cst_17 = arith.constant 0.000000e+00 : f32
    %29 = vector.broadcast %cst_17 : f32 to vector<16x64xf32>
    %30 = arith.maximumf %28, %29 : vector<16x64xf32>
    %31 = math.absf %28 : vector<16x64xf32>
    %cst_18 = arith.constant 0.000000e+00 : f32
    %32 = vector.broadcast %cst_18 : f32 to vector<16x64xf32>
    %33 = arith.subf %32, %31 : vector<16x64xf32>
    %34 = math.exp %33 : vector<16x64xf32>
    %35 = math.log1p %34 : vector<16x64xf32>
    %36 = arith.addf %30, %35 : vector<16x64xf32>
    %37 = vector.extract_strided_slice %24 {offsets = [0, 64], sizes = [16, 8], strides = [1, 1]} : vector<16x80xf32> to vector<16x8xf32>
    %38 = vector.extract_strided_slice %24 {offsets = [0, 72], sizes = [16, 8], strides = [1, 1]} : vector<16x80xf32> to vector<16x8xf32>
    %c0_19 = arith.constant 0 : index
    %c0_20 = arith.constant 0 : index
    %39 = vector.load %arg7[%c0_19, %c0_20] : memref<8x64xf32, #tpu.memory_space<vmem>>, vector<8x64xf32>
    %40 = vector.shape_cast %36 : vector<16x64xf32> to vector<16x1x64xf32>
    %41 = vector.shape_cast %39 : vector<8x64xf32> to vector<1x8x64xf32>
    %42 = vector.broadcast %40 : vector<16x1x64xf32> to vector<16x8x64xf32>
    %43 = vector.broadcast %41 : vector<1x8x64xf32> to vector<16x8x64xf32>
    %44 = arith.mulf %42, %43 : vector<16x8x64xf32>
    %45 = math.exp %44 : vector<16x8x64xf32>
    %46 = arith.mulf %36, %21 : vector<16x64xf32>
    %47 = vector.shape_cast %46 : vector<16x64xf32> to vector<16x1x64xf32>
    %48 = vector.shape_cast %37 : vector<16x8xf32> to vector<16x8x1xf32>
    %49 = vector.broadcast %47 : vector<16x1x64xf32> to vector<16x8x64xf32>
    %50 = vector.broadcast %48 : vector<16x8x1xf32> to vector<16x8x64xf32>
    %51 = arith.mulf %49, %50 : vector<16x8x64xf32>
    %52 = vector.shape_cast %45 : vector<16x8x64xf32> to vector<2x8x8x64xf32>
    %53 = vector.shape_cast %51 : vector<16x8x64xf32> to vector<2x8x8x64xf32>
    %cst_21 = arith.constant 0.000000e+00 : f32
    %54 = vector.broadcast %cst_21 : f32 to vector<2x8x64xf32>
    %55 = vector.extract_strided_slice %52 {offsets = [0, 0, 0, 0], sizes = [2, 1, 8, 64], strides = [1, 1, 1, 1]} : vector<2x8x8x64xf32> to vector<2x1x8x64xf32>
    %56 = vector.shape_cast %55 : vector<2x1x8x64xf32> to vector<2x8x64xf32>
    %57 = arith.mulf %56, %54 : vector<2x8x64xf32>
    %58 = vector.extract_strided_slice %53 {offsets = [0, 0, 0, 0], sizes = [2, 1, 8, 64], strides = [1, 1, 1, 1]} : vector<2x8x8x64xf32> to vector<2x1x8x64xf32>
    %59 = vector.shape_cast %58 : vector<2x1x8x64xf32> to vector<2x8x64xf32>
    %60 = arith.addf %57, %59 : vector<2x8x64xf32>
    %61 = vector.extract_strided_slice %52 {offsets = [0, 1, 0, 0], sizes = [2, 1, 8, 64], strides = [1, 1, 1, 1]} : vector<2x8x8x64xf32> to vector<2x1x8x64xf32>
    %62 = vector.shape_cast %61 : vector<2x1x8x64xf32> to vector<2x8x64xf32>
    %63 = arith.mulf %62, %60 : vector<2x8x64xf32>
    %64 = vector.extract_strided_slice %53 {offsets = [0, 1, 0, 0], sizes = [2, 1, 8, 64], strides = [1, 1, 1, 1]} : vector<2x8x8x64xf32> to vector<2x1x8x64xf32>
    %65 = vector.shape_cast %64 : vector<2x1x8x64xf32> to vector<2x8x64xf32>
    %66 = arith.addf %63, %65 : vector<2x8x64xf32>
    %67 = vector.extract_strided_slice %52 {offsets = [0, 2, 0, 0], sizes = [2, 1, 8, 64], strides = [1, 1, 1, 1]} : vector<2x8x8x64xf32> to vector<2x1x8x64xf32>
    %68 = vector.shape_cast %67 : vector<2x1x8x64xf32> to vector<2x8x64xf32>
    %69 = arith.mulf %68, %66 : vector<2x8x64xf32>
    %70 = vector.extract_strided_slice %53 {offsets = [0, 2, 0, 0], sizes = [2, 1, 8, 64], strides = [1, 1, 1, 1]} : vector<2x8x8x64xf32> to vector<2x1x8x64xf32>
    %71 = vector.shape_cast %70 : vector<2x1x8x64xf32> to vector<2x8x64xf32>
    %72 = arith.addf %69, %71 : vector<2x8x64xf32>
    %73 = vector.extract_strided_slice %52 {offsets = [0, 3, 0, 0], sizes = [2, 1, 8, 64], strides = [1, 1, 1, 1]} : vector<2x8x8x64xf32> to vector<2x1x8x64xf32>
    %74 = vector.shape_cast %73 : vector<2x1x8x64xf32> to vector<2x8x64xf32>
    %75 = arith.mulf %74, %72 : vector<2x8x64xf32>
    %76 = vector.extract_strided_slice %53 {offsets = [0, 3, 0, 0], sizes = [2, 1, 8, 64], strides = [1, 1, 1, 1]} : vector<2x8x8x64xf32> to vector<2x1x8x64xf32>
    %77 = vector.shape_cast %76 : vector<2x1x8x64xf32> to vector<2x8x64xf32>
    %78 = arith.addf %75, %77 : vector<2x8x64xf32>
    %79 = vector.extract_strided_slice %52 {offsets = [0, 4, 0, 0], sizes = [2, 1, 8, 64], strides = [1, 1, 1, 1]} : vector<2x8x8x64xf32> to vector<2x1x8x64xf32>
    %80 = vector.shape_cast %79 : vector<2x1x8x64xf32> to vector<2x8x64xf32>
    %81 = arith.mulf %80, %78 : vector<2x8x64xf32>
    %82 = vector.extract_strided_slice %53 {offsets = [0, 4, 0, 0], sizes = [2, 1, 8, 64], strides = [1, 1, 1, 1]} : vector<2x8x8x64xf32> to vector<2x1x8x64xf32>
    %83 = vector.shape_cast %82 : vector<2x1x8x64xf32> to vector<2x8x64xf32>
    %84 = arith.addf %81, %83 : vector<2x8x64xf32>
    %85 = vector.extract_strided_slice %52 {offsets = [0, 5, 0, 0], sizes = [2, 1, 8, 64], strides = [1, 1, 1, 1]} : vector<2x8x8x64xf32> to vector<2x1x8x64xf32>
    %86 = vector.shape_cast %85 : vector<2x1x8x64xf32> to vector<2x8x64xf32>
    %87 = arith.mulf %86, %84 : vector<2x8x64xf32>
    %88 = vector.extract_strided_slice %53 {offsets = [0, 5, 0, 0], sizes = [2, 1, 8, 64], strides = [1, 1, 1, 1]} : vector<2x8x8x64xf32> to vector<2x1x8x64xf32>
    %89 = vector.shape_cast %88 : vector<2x1x8x64xf32> to vector<2x8x64xf32>
    %90 = arith.addf %87, %89 : vector<2x8x64xf32>
    %91 = vector.extract_strided_slice %52 {offsets = [0, 6, 0, 0], sizes = [2, 1, 8, 64], strides = [1, 1, 1, 1]} : vector<2x8x8x64xf32> to vector<2x1x8x64xf32>
    %92 = vector.shape_cast %91 : vector<2x1x8x64xf32> to vector<2x8x64xf32>
    %93 = arith.mulf %92, %90 : vector<2x8x64xf32>
    %94 = vector.extract_strided_slice %53 {offsets = [0, 6, 0, 0], sizes = [2, 1, 8, 64], strides = [1, 1, 1, 1]} : vector<2x8x8x64xf32> to vector<2x1x8x64xf32>
    %95 = vector.shape_cast %94 : vector<2x1x8x64xf32> to vector<2x8x64xf32>
    %96 = arith.addf %93, %95 : vector<2x8x64xf32>
    %97 = vector.extract_strided_slice %52 {offsets = [0, 7, 0, 0], sizes = [2, 1, 8, 64], strides = [1, 1, 1, 1]} : vector<2x8x8x64xf32> to vector<2x1x8x64xf32>
    %98 = vector.shape_cast %97 : vector<2x1x8x64xf32> to vector<2x8x64xf32>
    %99 = arith.mulf %98, %96 : vector<2x8x64xf32>
    %100 = vector.extract_strided_slice %53 {offsets = [0, 7, 0, 0], sizes = [2, 1, 8, 64], strides = [1, 1, 1, 1]} : vector<2x8x8x64xf32> to vector<2x1x8x64xf32>
    %101 = vector.shape_cast %100 : vector<2x1x8x64xf32> to vector<2x8x64xf32>
    %102 = arith.addf %99, %101 : vector<2x8x64xf32>
    %103 = vector.shape_cast %60 : vector<2x8x64xf32> to vector<2x1x8x64xf32>
    %104 = vector.shape_cast %66 : vector<2x8x64xf32> to vector<2x1x8x64xf32>
    %105 = vector.shape_cast %72 : vector<2x8x64xf32> to vector<2x1x8x64xf32>
    %106 = vector.shape_cast %78 : vector<2x8x64xf32> to vector<2x1x8x64xf32>
    %107 = vector.shape_cast %84 : vector<2x8x64xf32> to vector<2x1x8x64xf32>
    %108 = vector.shape_cast %90 : vector<2x8x64xf32> to vector<2x1x8x64xf32>
    %109 = vector.shape_cast %96 : vector<2x8x64xf32> to vector<2x1x8x64xf32>
    %110 = vector.shape_cast %102 : vector<2x8x64xf32> to vector<2x1x8x64xf32>
    %111 = tpu.concatenate %103, %104, %105, %106, %107, %108, %109, %110 in 1 : vector<2x1x8x64xf32>, vector<2x1x8x64xf32>, vector<2x1x8x64xf32>, vector<2x1x8x64xf32>, vector<2x1x8x64xf32>, vector<2x1x8x64xf32>, vector<2x1x8x64xf32>, vector<2x1x8x64xf32> -> vector<2x8x8x64xf32>
    %112 = vector.shape_cast %38 : vector<16x8xf32> to vector<2x8x8xf32>
    %113 = vector.shape_cast %112 : vector<2x8x8xf32> to vector<2x8x8x1xf32>
    %114 = vector.broadcast %113 : vector<2x8x8x1xf32> to vector<2x8x8x64xf32>
    %115 = arith.mulf %111, %114 : vector<2x8x8x64xf32>
    %cst_22 = arith.constant dense<0.000000e+00> : vector<2x8x64xf32>
    %116 = vector.multi_reduction <add>, %115, %cst_22 [2] : vector<2x8x8x64xf32> to vector<2x8x64xf32>
    %117 = vector.shape_cast %116 : vector<2x8x64xf32> to vector<16x64xf32>
    %c0_23 = arith.constant 0 : index
    %c0_24 = arith.constant 0 : index
    %118 = vector.load %arg8[%c0_23, %c0_24] : memref<1x64xf32, #tpu.memory_space<vmem>>, vector<1x64xf32>
    %119 = vector.broadcast %118 : vector<1x64xf32> to vector<16x64xf32>
    %120 = arith.mulf %119, %21 : vector<16x64xf32>
    %121 = arith.addf %117, %120 : vector<16x64xf32>
    %122 = arith.negf %15 : vector<16x64xf32>
    %123 = math.exp %122 : vector<16x64xf32>
    %cst_25 = arith.constant 1.000000e+00 : f32
    %124 = vector.broadcast %cst_25 : f32 to vector<16x64xf32>
    %125 = arith.addf %124, %123 : vector<16x64xf32>
    %126 = arith.divf %124, %125 : vector<16x64xf32>
    %127 = arith.mulf %15, %126 : vector<16x64xf32>
    %128 = arith.mulf %121, %127 : vector<16x64xf32>
    %c0_26 = arith.constant 0 : index
    %c0_27 = arith.constant 0 : index
    %129 = vector.load %arg9[%c0_26, %c0_27] : memref<64x32xbf16, #tpu.memory_space<vmem>>, vector<64x32xbf16>
    %130 = arith.truncf %128 : vector<16x64xf32> to vector<16x64xbf16>
    %cst_28 = arith.constant dense<0.000000e+00> : vector<16x32xf32>
    %131 = tpu.matmul %130, %129, %cst_28 {dimension_numbers = #tpu.dot_dimension_numbers<[1], [0], [0], [1], [0, 0, 1, 1], [], []>} : vector<16x64xbf16>, vector<64x32xbf16>, vector<16x32xf32> -> vector<16x32xf32>
    %c0_29 = arith.constant 0 : index
    %c0_30 = arith.constant 0 : index
    %132 = vector.load %arg10[%c0_29, %c0_30] : memref<1x32xf32, #tpu.memory_space<vmem>>, vector<1x32xf32>
    %133 = vector.broadcast %132 : vector<1x32xf32> to vector<16x32xf32>
    %134 = arith.addf %131, %133 : vector<16x32xf32>
    %c0_31 = arith.constant 0 : index
    %c0_32 = arith.constant 0 : index
    %135 = vector.load %arg11[%c0_31, %c0_32] : memref<64x16xbf16, #tpu.memory_space<vmem>>, vector<64x16xbf16>
    %136 = arith.truncf %128 : vector<16x64xf32> to vector<16x64xbf16>
    %cst_33 = arith.constant dense<0.000000e+00> : vector<16x16xf32>
    %137 = tpu.matmul %136, %135, %cst_33 {dimension_numbers = #tpu.dot_dimension_numbers<[1], [0], [0], [1], [0, 0, 1, 1], [], []>} : vector<16x64xbf16>, vector<64x16xbf16>, vector<16x16xf32> -> vector<16x16xf32>
    %c0_34 = arith.constant 0 : index
    %c0_35 = arith.constant 0 : index
    %138 = vector.load %arg12[%c0_34, %c0_35] : memref<16x32xbf16, #tpu.memory_space<vmem>>, vector<16x32xbf16>
    %139 = arith.truncf %137 : vector<16x16xf32> to vector<16x16xbf16>
    %cst_36 = arith.constant dense<0.000000e+00> : vector<16x32xf32>
    %140 = tpu.matmul %139, %138, %cst_36 {dimension_numbers = #tpu.dot_dimension_numbers<[1], [0], [0], [1], [0, 0, 1, 1], [], []>} : vector<16x16xbf16>, vector<16x32xbf16>, vector<16x32xf32> -> vector<16x32xf32>
    %141 = arith.addf %134, %140 : vector<16x32xf32>
    %142 = arith.addf %0, %141 : vector<16x32xf32>
    %c0_37 = arith.constant 0 : index
    %c0_38 = arith.constant 0 : index
    %143 = vector.load %arg13[%c0_37, %c0_38] : memref<32x128xbf16, #tpu.memory_space<vmem>>, vector<32x128xbf16>
    %144 = arith.truncf %142 : vector<16x32xf32> to vector<16x32xbf16>
    %cst_39 = arith.constant dense<0.000000e+00> : vector<16x128xf32>
    %145 = tpu.matmul %144, %143, %cst_39 {dimension_numbers = #tpu.dot_dimension_numbers<[1], [0], [0], [1], [0, 0, 1, 1], [], []>} : vector<16x32xbf16>, vector<32x128xbf16>, vector<16x128xf32> -> vector<16x128xf32>
    %c0_40 = arith.constant 0 : index
    %c0_41 = arith.constant 0 : index
    %146 = vector.load %arg14[%c0_40, %c0_41] : memref<1x128xf32, #tpu.memory_space<vmem>>, vector<1x128xf32>
    %147 = vector.broadcast %146 : vector<1x128xf32> to vector<16x128xf32>
    %148 = arith.addf %145, %147 : vector<16x128xf32>
    %c0_42 = arith.constant 0 : index
    %c0_43 = arith.constant 0 : index
    %149 = vector.load %arg15[%c0_42, %c0_43] : memref<1x128xf32, #tpu.memory_space<vmem>>, vector<1x128xf32>
    %150 = vector.broadcast %149 : vector<1x128xf32> to vector<16x128xf32>
    %151 = arith.mulf %148, %150 : vector<16x128xf32>
    %152 = vector.extract_strided_slice %151 {offsets = [0, 0], sizes = [16, 64], strides = [1, 1]} : vector<16x128xf32> to vector<16x64xf32>
    %153 = vector.extract_strided_slice %151 {offsets = [0, 64], sizes = [16, 64], strides = [1, 1]} : vector<16x128xf32> to vector<16x64xf32>
    %154 = arith.negf %152 : vector<16x64xf32>
    %155 = math.exp %154 : vector<16x64xf32>
    %cst_44 = arith.constant 1.000000e+00 : f32
    %156 = vector.broadcast %cst_44 : f32 to vector<16x64xf32>
    %157 = arith.addf %156, %155 : vector<16x64xf32>
    %158 = arith.divf %156, %157 : vector<16x64xf32>
    %159 = arith.mulf %152, %158 : vector<16x64xf32>
    %c0_45 = arith.constant 0 : index
    %c0_46 = arith.constant 0 : index
    %160 = vector.load %arg16[%c0_45, %c0_46] : memref<64x80xbf16, #tpu.memory_space<vmem>>, vector<64x80xbf16>
    %161 = arith.truncf %159 : vector<16x64xf32> to vector<16x64xbf16>
    %cst_47 = arith.constant dense<0.000000e+00> : vector<16x80xf32>
    %162 = tpu.matmul %161, %160, %cst_47 {dimension_numbers = #tpu.dot_dimension_numbers<[1], [0], [0], [1], [0, 0, 1, 1], [], []>} : vector<16x64xbf16>, vector<64x80xbf16>, vector<16x80xf32> -> vector<16x80xf32>
    %163 = vector.extract_strided_slice %162 {offsets = [0, 0], sizes = [16, 64], strides = [1, 1]} : vector<16x80xf32> to vector<16x64xf32>
    %c0_48 = arith.constant 0 : index
    %c0_49 = arith.constant 0 : index
    %164 = vector.load %arg17[%c0_48, %c0_49] : memref<1x64xf32, #tpu.memory_space<vmem>>, vector<1x64xf32>
    %165 = vector.broadcast %164 : vector<1x64xf32> to vector<16x64xf32>
    %166 = arith.addf %163, %165 : vector<16x64xf32>
    %cst_50 = arith.constant 0.000000e+00 : f32
    %167 = vector.broadcast %cst_50 : f32 to vector<16x64xf32>
    %168 = arith.maximumf %166, %167 : vector<16x64xf32>
    %169 = math.absf %166 : vector<16x64xf32>
    %cst_51 = arith.constant 0.000000e+00 : f32
    %170 = vector.broadcast %cst_51 : f32 to vector<16x64xf32>
    %171 = arith.subf %170, %169 : vector<16x64xf32>
    %172 = math.exp %171 : vector<16x64xf32>
    %173 = math.log1p %172 : vector<16x64xf32>
    %174 = arith.addf %168, %173 : vector<16x64xf32>
    %175 = vector.extract_strided_slice %162 {offsets = [0, 64], sizes = [16, 8], strides = [1, 1]} : vector<16x80xf32> to vector<16x8xf32>
    %176 = vector.extract_strided_slice %162 {offsets = [0, 72], sizes = [16, 8], strides = [1, 1]} : vector<16x80xf32> to vector<16x8xf32>
    %c0_52 = arith.constant 0 : index
    %c0_53 = arith.constant 0 : index
    %177 = vector.load %arg18[%c0_52, %c0_53] : memref<8x64xf32, #tpu.memory_space<vmem>>, vector<8x64xf32>
    %178 = vector.shape_cast %174 : vector<16x64xf32> to vector<16x1x64xf32>
    %179 = vector.shape_cast %177 : vector<8x64xf32> to vector<1x8x64xf32>
    %180 = vector.broadcast %178 : vector<16x1x64xf32> to vector<16x8x64xf32>
    %181 = vector.broadcast %179 : vector<1x8x64xf32> to vector<16x8x64xf32>
    %182 = arith.mulf %180, %181 : vector<16x8x64xf32>
    %183 = math.exp %182 : vector<16x8x64xf32>
    %184 = arith.mulf %174, %159 : vector<16x64xf32>
    %185 = vector.shape_cast %184 : vector<16x64xf32> to vector<16x1x64xf32>
    %186 = vector.shape_cast %175 : vector<16x8xf32> to vector<16x8x1xf32>
    %187 = vector.broadcast %185 : vector<16x1x64xf32> to vector<16x8x64xf32>
    %188 = vector.broadcast %186 : vector<16x8x1xf32> to vector<16x8x64xf32>
    %189 = arith.mulf %187, %188 : vector<16x8x64xf32>
    %190 = vector.shape_cast %183 : vector<16x8x64xf32> to vector<2x8x8x64xf32>
    %191 = vector.shape_cast %189 : vector<16x8x64xf32> to vector<2x8x8x64xf32>
    %cst_54 = arith.constant 0.000000e+00 : f32
    %192 = vector.broadcast %cst_54 : f32 to vector<2x8x64xf32>
    %193 = vector.extract_strided_slice %190 {offsets = [0, 0, 0, 0], sizes = [2, 1, 8, 64], strides = [1, 1, 1, 1]} : vector<2x8x8x64xf32> to vector<2x1x8x64xf32>
    %194 = vector.shape_cast %193 : vector<2x1x8x64xf32> to vector<2x8x64xf32>
    %195 = arith.mulf %194, %192 : vector<2x8x64xf32>
    %196 = vector.extract_strided_slice %191 {offsets = [0, 0, 0, 0], sizes = [2, 1, 8, 64], strides = [1, 1, 1, 1]} : vector<2x8x8x64xf32> to vector<2x1x8x64xf32>
    %197 = vector.shape_cast %196 : vector<2x1x8x64xf32> to vector<2x8x64xf32>
    %198 = arith.addf %195, %197 : vector<2x8x64xf32>
    %199 = vector.extract_strided_slice %190 {offsets = [0, 1, 0, 0], sizes = [2, 1, 8, 64], strides = [1, 1, 1, 1]} : vector<2x8x8x64xf32> to vector<2x1x8x64xf32>
    %200 = vector.shape_cast %199 : vector<2x1x8x64xf32> to vector<2x8x64xf32>
    %201 = arith.mulf %200, %198 : vector<2x8x64xf32>
    %202 = vector.extract_strided_slice %191 {offsets = [0, 1, 0, 0], sizes = [2, 1, 8, 64], strides = [1, 1, 1, 1]} : vector<2x8x8x64xf32> to vector<2x1x8x64xf32>
    %203 = vector.shape_cast %202 : vector<2x1x8x64xf32> to vector<2x8x64xf32>
    %204 = arith.addf %201, %203 : vector<2x8x64xf32>
    %205 = vector.extract_strided_slice %190 {offsets = [0, 2, 0, 0], sizes = [2, 1, 8, 64], strides = [1, 1, 1, 1]} : vector<2x8x8x64xf32> to vector<2x1x8x64xf32>
    %206 = vector.shape_cast %205 : vector<2x1x8x64xf32> to vector<2x8x64xf32>
    %207 = arith.mulf %206, %204 : vector<2x8x64xf32>
    %208 = vector.extract_strided_slice %191 {offsets = [0, 2, 0, 0], sizes = [2, 1, 8, 64], strides = [1, 1, 1, 1]} : vector<2x8x8x64xf32> to vector<2x1x8x64xf32>
    %209 = vector.shape_cast %208 : vector<2x1x8x64xf32> to vector<2x8x64xf32>
    %210 = arith.addf %207, %209 : vector<2x8x64xf32>
    %211 = vector.extract_strided_slice %190 {offsets = [0, 3, 0, 0], sizes = [2, 1, 8, 64], strides = [1, 1, 1, 1]} : vector<2x8x8x64xf32> to vector<2x1x8x64xf32>
    %212 = vector.shape_cast %211 : vector<2x1x8x64xf32> to vector<2x8x64xf32>
    %213 = arith.mulf %212, %210 : vector<2x8x64xf32>
    %214 = vector.extract_strided_slice %191 {offsets = [0, 3, 0, 0], sizes = [2, 1, 8, 64], strides = [1, 1, 1, 1]} : vector<2x8x8x64xf32> to vector<2x1x8x64xf32>
    %215 = vector.shape_cast %214 : vector<2x1x8x64xf32> to vector<2x8x64xf32>
    %216 = arith.addf %213, %215 : vector<2x8x64xf32>
    %217 = vector.extract_strided_slice %190 {offsets = [0, 4, 0, 0], sizes = [2, 1, 8, 64], strides = [1, 1, 1, 1]} : vector<2x8x8x64xf32> to vector<2x1x8x64xf32>
    %218 = vector.shape_cast %217 : vector<2x1x8x64xf32> to vector<2x8x64xf32>
    %219 = arith.mulf %218, %216 : vector<2x8x64xf32>
    %220 = vector.extract_strided_slice %191 {offsets = [0, 4, 0, 0], sizes = [2, 1, 8, 64], strides = [1, 1, 1, 1]} : vector<2x8x8x64xf32> to vector<2x1x8x64xf32>
    %221 = vector.shape_cast %220 : vector<2x1x8x64xf32> to vector<2x8x64xf32>
    %222 = arith.addf %219, %221 : vector<2x8x64xf32>
    %223 = vector.extract_strided_slice %190 {offsets = [0, 5, 0, 0], sizes = [2, 1, 8, 64], strides = [1, 1, 1, 1]} : vector<2x8x8x64xf32> to vector<2x1x8x64xf32>
    %224 = vector.shape_cast %223 : vector<2x1x8x64xf32> to vector<2x8x64xf32>
    %225 = arith.mulf %224, %222 : vector<2x8x64xf32>
    %226 = vector.extract_strided_slice %191 {offsets = [0, 5, 0, 0], sizes = [2, 1, 8, 64], strides = [1, 1, 1, 1]} : vector<2x8x8x64xf32> to vector<2x1x8x64xf32>
    %227 = vector.shape_cast %226 : vector<2x1x8x64xf32> to vector<2x8x64xf32>
    %228 = arith.addf %225, %227 : vector<2x8x64xf32>
    %229 = vector.extract_strided_slice %190 {offsets = [0, 6, 0, 0], sizes = [2, 1, 8, 64], strides = [1, 1, 1, 1]} : vector<2x8x8x64xf32> to vector<2x1x8x64xf32>
    %230 = vector.shape_cast %229 : vector<2x1x8x64xf32> to vector<2x8x64xf32>
    %231 = arith.mulf %230, %228 : vector<2x8x64xf32>
    %232 = vector.extract_strided_slice %191 {offsets = [0, 6, 0, 0], sizes = [2, 1, 8, 64], strides = [1, 1, 1, 1]} : vector<2x8x8x64xf32> to vector<2x1x8x64xf32>
    %233 = vector.shape_cast %232 : vector<2x1x8x64xf32> to vector<2x8x64xf32>
    %234 = arith.addf %231, %233 : vector<2x8x64xf32>
    %235 = vector.extract_strided_slice %190 {offsets = [0, 7, 0, 0], sizes = [2, 1, 8, 64], strides = [1, 1, 1, 1]} : vector<2x8x8x64xf32> to vector<2x1x8x64xf32>
    %236 = vector.shape_cast %235 : vector<2x1x8x64xf32> to vector<2x8x64xf32>
    %237 = arith.mulf %236, %234 : vector<2x8x64xf32>
    %238 = vector.extract_strided_slice %191 {offsets = [0, 7, 0, 0], sizes = [2, 1, 8, 64], strides = [1, 1, 1, 1]} : vector<2x8x8x64xf32> to vector<2x1x8x64xf32>
    %239 = vector.shape_cast %238 : vector<2x1x8x64xf32> to vector<2x8x64xf32>
    %240 = arith.addf %237, %239 : vector<2x8x64xf32>
    %241 = vector.shape_cast %198 : vector<2x8x64xf32> to vector<2x1x8x64xf32>
    %242 = vector.shape_cast %204 : vector<2x8x64xf32> to vector<2x1x8x64xf32>
    %243 = vector.shape_cast %210 : vector<2x8x64xf32> to vector<2x1x8x64xf32>
    %244 = vector.shape_cast %216 : vector<2x8x64xf32> to vector<2x1x8x64xf32>
    %245 = vector.shape_cast %222 : vector<2x8x64xf32> to vector<2x1x8x64xf32>
    %246 = vector.shape_cast %228 : vector<2x8x64xf32> to vector<2x1x8x64xf32>
    %247 = vector.shape_cast %234 : vector<2x8x64xf32> to vector<2x1x8x64xf32>
    %248 = vector.shape_cast %240 : vector<2x8x64xf32> to vector<2x1x8x64xf32>
    %249 = tpu.concatenate %241, %242, %243, %244, %245, %246, %247, %248 in 1 : vector<2x1x8x64xf32>, vector<2x1x8x64xf32>, vector<2x1x8x64xf32>, vector<2x1x8x64xf32>, vector<2x1x8x64xf32>, vector<2x1x8x64xf32>, vector<2x1x8x64xf32>, vector<2x1x8x64xf32> -> vector<2x8x8x64xf32>
    %250 = vector.shape_cast %176 : vector<16x8xf32> to vector<2x8x8xf32>
    %251 = vector.shape_cast %250 : vector<2x8x8xf32> to vector<2x8x8x1xf32>
    %252 = vector.broadcast %251 : vector<2x8x8x1xf32> to vector<2x8x8x64xf32>
    %253 = arith.mulf %249, %252 : vector<2x8x8x64xf32>
    %cst_55 = arith.constant dense<0.000000e+00> : vector<2x8x64xf32>
    %254 = vector.multi_reduction <add>, %253, %cst_55 [2] : vector<2x8x8x64xf32> to vector<2x8x64xf32>
    %255 = vector.shape_cast %254 : vector<2x8x64xf32> to vector<16x64xf32>
    %c0_56 = arith.constant 0 : index
    %c0_57 = arith.constant 0 : index
    %256 = vector.load %arg19[%c0_56, %c0_57] : memref<1x64xf32, #tpu.memory_space<vmem>>, vector<1x64xf32>
    %257 = vector.broadcast %256 : vector<1x64xf32> to vector<16x64xf32>
    %258 = arith.mulf %257, %159 : vector<16x64xf32>
    %259 = arith.addf %255, %258 : vector<16x64xf32>
    %260 = arith.negf %153 : vector<16x64xf32>
    %261 = math.exp %260 : vector<16x64xf32>
    %cst_58 = arith.constant 1.000000e+00 : f32
    %262 = vector.broadcast %cst_58 : f32 to vector<16x64xf32>
    %263 = arith.addf %262, %261 : vector<16x64xf32>
    %264 = arith.divf %262, %263 : vector<16x64xf32>
    %265 = arith.mulf %153, %264 : vector<16x64xf32>
    %266 = arith.mulf %259, %265 : vector<16x64xf32>
    %c0_59 = arith.constant 0 : index
    %c0_60 = arith.constant 0 : index
    %267 = vector.load %arg20[%c0_59, %c0_60] : memref<64x32xbf16, #tpu.memory_space<vmem>>, vector<64x32xbf16>
    %268 = arith.truncf %266 : vector<16x64xf32> to vector<16x64xbf16>
    %cst_61 = arith.constant dense<0.000000e+00> : vector<16x32xf32>
    %269 = tpu.matmul %268, %267, %cst_61 {dimension_numbers = #tpu.dot_dimension_numbers<[1], [0], [0], [1], [0, 0, 1, 1], [], []>} : vector<16x64xbf16>, vector<64x32xbf16>, vector<16x32xf32> -> vector<16x32xf32>
    %c0_62 = arith.constant 0 : index
    %c0_63 = arith.constant 0 : index
    %270 = vector.load %arg21[%c0_62, %c0_63] : memref<1x32xf32, #tpu.memory_space<vmem>>, vector<1x32xf32>
    %271 = vector.broadcast %270 : vector<1x32xf32> to vector<16x32xf32>
    %272 = arith.addf %269, %271 : vector<16x32xf32>
    %c0_64 = arith.constant 0 : index
    %c0_65 = arith.constant 0 : index
    %273 = vector.load %arg22[%c0_64, %c0_65] : memref<1x32xf32, #tpu.memory_space<vmem>>, vector<1x32xf32>
    %274 = vector.broadcast %273 : vector<1x32xf32> to vector<16x32xf32>
    %275 = arith.mulf %272, %274 : vector<16x32xf32>
    %276 = arith.addf %142, %275 : vector<16x32xf32>
    %c0_66 = arith.constant 0 : index
    %c0_67 = arith.constant 0 : index
    %277 = vector.load %arg23[%c0_66, %c0_67] : memref<32x128xbf16, #tpu.memory_space<vmem>>, vector<32x128xbf16>
    %278 = arith.truncf %276 : vector<16x32xf32> to vector<16x32xbf16>
    %cst_68 = arith.constant dense<0.000000e+00> : vector<16x128xf32>
    %279 = tpu.matmul %278, %277, %cst_68 {dimension_numbers = #tpu.dot_dimension_numbers<[1], [0], [0], [1], [0, 0, 1, 1], [], []>} : vector<16x32xbf16>, vector<32x128xbf16>, vector<16x128xf32> -> vector<16x128xf32>
    %c0_69 = arith.constant 0 : index
    %c0_70 = arith.constant 0 : index
    %280 = vector.load %arg24[%c0_69, %c0_70] : memref<1x128xf32, #tpu.memory_space<vmem>>, vector<1x128xf32>
    %281 = vector.broadcast %280 : vector<1x128xf32> to vector<16x128xf32>
    %282 = arith.addf %279, %281 : vector<16x128xf32>
    %c0_71 = arith.constant 0 : index
    %c0_72 = arith.constant 0 : index
    %283 = vector.load %arg25[%c0_71, %c0_72] : memref<1x128xf32, #tpu.memory_space<vmem>>, vector<1x128xf32>
    %284 = vector.broadcast %283 : vector<1x128xf32> to vector<16x128xf32>
    %285 = arith.mulf %282, %284 : vector<16x128xf32>
    %286 = vector.extract_strided_slice %285 {offsets = [0, 0], sizes = [16, 64], strides = [1, 1]} : vector<16x128xf32> to vector<16x64xf32>
    %287 = vector.extract_strided_slice %285 {offsets = [0, 64], sizes = [16, 64], strides = [1, 1]} : vector<16x128xf32> to vector<16x64xf32>
    %288 = arith.negf %286 : vector<16x64xf32>
    %289 = math.exp %288 : vector<16x64xf32>
    %cst_73 = arith.constant 1.000000e+00 : f32
    %290 = vector.broadcast %cst_73 : f32 to vector<16x64xf32>
    %291 = arith.addf %290, %289 : vector<16x64xf32>
    %292 = arith.divf %290, %291 : vector<16x64xf32>
    %293 = arith.mulf %286, %292 : vector<16x64xf32>
    %c0_74 = arith.constant 0 : index
    %c0_75 = arith.constant 0 : index
    %294 = vector.load %arg26[%c0_74, %c0_75] : memref<64x80xbf16, #tpu.memory_space<vmem>>, vector<64x80xbf16>
    %295 = arith.truncf %293 : vector<16x64xf32> to vector<16x64xbf16>
    %cst_76 = arith.constant dense<0.000000e+00> : vector<16x80xf32>
    %296 = tpu.matmul %295, %294, %cst_76 {dimension_numbers = #tpu.dot_dimension_numbers<[1], [0], [0], [1], [0, 0, 1, 1], [], []>} : vector<16x64xbf16>, vector<64x80xbf16>, vector<16x80xf32> -> vector<16x80xf32>
    %297 = vector.extract_strided_slice %296 {offsets = [0, 0], sizes = [16, 64], strides = [1, 1]} : vector<16x80xf32> to vector<16x64xf32>
    %c0_77 = arith.constant 0 : index
    %c0_78 = arith.constant 0 : index
    %298 = vector.load %arg27[%c0_77, %c0_78] : memref<1x64xf32, #tpu.memory_space<vmem>>, vector<1x64xf32>
    %299 = vector.broadcast %298 : vector<1x64xf32> to vector<16x64xf32>
    %300 = arith.addf %297, %299 : vector<16x64xf32>
    %cst_79 = arith.constant 0.000000e+00 : f32
    %301 = vector.broadcast %cst_79 : f32 to vector<16x64xf32>
    %302 = arith.maximumf %300, %301 : vector<16x64xf32>
    %303 = math.absf %300 : vector<16x64xf32>
    %cst_80 = arith.constant 0.000000e+00 : f32
    %304 = vector.broadcast %cst_80 : f32 to vector<16x64xf32>
    %305 = arith.subf %304, %303 : vector<16x64xf32>
    %306 = math.exp %305 : vector<16x64xf32>
    %307 = math.log1p %306 : vector<16x64xf32>
    %308 = arith.addf %302, %307 : vector<16x64xf32>
    %309 = vector.extract_strided_slice %296 {offsets = [0, 64], sizes = [16, 8], strides = [1, 1]} : vector<16x80xf32> to vector<16x8xf32>
    %310 = vector.extract_strided_slice %296 {offsets = [0, 72], sizes = [16, 8], strides = [1, 1]} : vector<16x80xf32> to vector<16x8xf32>
    %c0_81 = arith.constant 0 : index
    %c0_82 = arith.constant 0 : index
    %311 = vector.load %arg28[%c0_81, %c0_82] : memref<8x64xf32, #tpu.memory_space<vmem>>, vector<8x64xf32>
    %312 = vector.shape_cast %308 : vector<16x64xf32> to vector<16x1x64xf32>
    %313 = vector.shape_cast %311 : vector<8x64xf32> to vector<1x8x64xf32>
    %314 = vector.broadcast %312 : vector<16x1x64xf32> to vector<16x8x64xf32>
    %315 = vector.broadcast %313 : vector<1x8x64xf32> to vector<16x8x64xf32>
    %316 = arith.mulf %314, %315 : vector<16x8x64xf32>
    %317 = math.exp %316 : vector<16x8x64xf32>
    %318 = arith.mulf %308, %293 : vector<16x64xf32>
    %319 = vector.shape_cast %318 : vector<16x64xf32> to vector<16x1x64xf32>
    %320 = vector.shape_cast %309 : vector<16x8xf32> to vector<16x8x1xf32>
    %321 = vector.broadcast %319 : vector<16x1x64xf32> to vector<16x8x64xf32>
    %322 = vector.broadcast %320 : vector<16x8x1xf32> to vector<16x8x64xf32>
    %323 = arith.mulf %321, %322 : vector<16x8x64xf32>
    %324 = vector.shape_cast %317 : vector<16x8x64xf32> to vector<2x8x8x64xf32>
    %325 = vector.shape_cast %323 : vector<16x8x64xf32> to vector<2x8x8x64xf32>
    %cst_83 = arith.constant 0.000000e+00 : f32
    %326 = vector.broadcast %cst_83 : f32 to vector<2x8x64xf32>
    %327 = vector.extract_strided_slice %324 {offsets = [0, 0, 0, 0], sizes = [2, 1, 8, 64], strides = [1, 1, 1, 1]} : vector<2x8x8x64xf32> to vector<2x1x8x64xf32>
    %328 = vector.shape_cast %327 : vector<2x1x8x64xf32> to vector<2x8x64xf32>
    %329 = arith.mulf %328, %326 : vector<2x8x64xf32>
    %330 = vector.extract_strided_slice %325 {offsets = [0, 0, 0, 0], sizes = [2, 1, 8, 64], strides = [1, 1, 1, 1]} : vector<2x8x8x64xf32> to vector<2x1x8x64xf32>
    %331 = vector.shape_cast %330 : vector<2x1x8x64xf32> to vector<2x8x64xf32>
    %332 = arith.addf %329, %331 : vector<2x8x64xf32>
    %333 = vector.extract_strided_slice %324 {offsets = [0, 1, 0, 0], sizes = [2, 1, 8, 64], strides = [1, 1, 1, 1]} : vector<2x8x8x64xf32> to vector<2x1x8x64xf32>
    %334 = vector.shape_cast %333 : vector<2x1x8x64xf32> to vector<2x8x64xf32>
    %335 = arith.mulf %334, %332 : vector<2x8x64xf32>
    %336 = vector.extract_strided_slice %325 {offsets = [0, 1, 0, 0], sizes = [2, 1, 8, 64], strides = [1, 1, 1, 1]} : vector<2x8x8x64xf32> to vector<2x1x8x64xf32>
    %337 = vector.shape_cast %336 : vector<2x1x8x64xf32> to vector<2x8x64xf32>
    %338 = arith.addf %335, %337 : vector<2x8x64xf32>
    %339 = vector.extract_strided_slice %324 {offsets = [0, 2, 0, 0], sizes = [2, 1, 8, 64], strides = [1, 1, 1, 1]} : vector<2x8x8x64xf32> to vector<2x1x8x64xf32>
    %340 = vector.shape_cast %339 : vector<2x1x8x64xf32> to vector<2x8x64xf32>
    %341 = arith.mulf %340, %338 : vector<2x8x64xf32>
    %342 = vector.extract_strided_slice %325 {offsets = [0, 2, 0, 0], sizes = [2, 1, 8, 64], strides = [1, 1, 1, 1]} : vector<2x8x8x64xf32> to vector<2x1x8x64xf32>
    %343 = vector.shape_cast %342 : vector<2x1x8x64xf32> to vector<2x8x64xf32>
    %344 = arith.addf %341, %343 : vector<2x8x64xf32>
    %345 = vector.extract_strided_slice %324 {offsets = [0, 3, 0, 0], sizes = [2, 1, 8, 64], strides = [1, 1, 1, 1]} : vector<2x8x8x64xf32> to vector<2x1x8x64xf32>
    %346 = vector.shape_cast %345 : vector<2x1x8x64xf32> to vector<2x8x64xf32>
    %347 = arith.mulf %346, %344 : vector<2x8x64xf32>
    %348 = vector.extract_strided_slice %325 {offsets = [0, 3, 0, 0], sizes = [2, 1, 8, 64], strides = [1, 1, 1, 1]} : vector<2x8x8x64xf32> to vector<2x1x8x64xf32>
    %349 = vector.shape_cast %348 : vector<2x1x8x64xf32> to vector<2x8x64xf32>
    %350 = arith.addf %347, %349 : vector<2x8x64xf32>
    %351 = vector.extract_strided_slice %324 {offsets = [0, 4, 0, 0], sizes = [2, 1, 8, 64], strides = [1, 1, 1, 1]} : vector<2x8x8x64xf32> to vector<2x1x8x64xf32>
    %352 = vector.shape_cast %351 : vector<2x1x8x64xf32> to vector<2x8x64xf32>
    %353 = arith.mulf %352, %350 : vector<2x8x64xf32>
    %354 = vector.extract_strided_slice %325 {offsets = [0, 4, 0, 0], sizes = [2, 1, 8, 64], strides = [1, 1, 1, 1]} : vector<2x8x8x64xf32> to vector<2x1x8x64xf32>
    %355 = vector.shape_cast %354 : vector<2x1x8x64xf32> to vector<2x8x64xf32>
    %356 = arith.addf %353, %355 : vector<2x8x64xf32>
    %357 = vector.extract_strided_slice %324 {offsets = [0, 5, 0, 0], sizes = [2, 1, 8, 64], strides = [1, 1, 1, 1]} : vector<2x8x8x64xf32> to vector<2x1x8x64xf32>
    %358 = vector.shape_cast %357 : vector<2x1x8x64xf32> to vector<2x8x64xf32>
    %359 = arith.mulf %358, %356 : vector<2x8x64xf32>
    %360 = vector.extract_strided_slice %325 {offsets = [0, 5, 0, 0], sizes = [2, 1, 8, 64], strides = [1, 1, 1, 1]} : vector<2x8x8x64xf32> to vector<2x1x8x64xf32>
    %361 = vector.shape_cast %360 : vector<2x1x8x64xf32> to vector<2x8x64xf32>
    %362 = arith.addf %359, %361 : vector<2x8x64xf32>
    %363 = vector.extract_strided_slice %324 {offsets = [0, 6, 0, 0], sizes = [2, 1, 8, 64], strides = [1, 1, 1, 1]} : vector<2x8x8x64xf32> to vector<2x1x8x64xf32>
    %364 = vector.shape_cast %363 : vector<2x1x8x64xf32> to vector<2x8x64xf32>
    %365 = arith.mulf %364, %362 : vector<2x8x64xf32>
    %366 = vector.extract_strided_slice %325 {offsets = [0, 6, 0, 0], sizes = [2, 1, 8, 64], strides = [1, 1, 1, 1]} : vector<2x8x8x64xf32> to vector<2x1x8x64xf32>
    %367 = vector.shape_cast %366 : vector<2x1x8x64xf32> to vector<2x8x64xf32>
    %368 = arith.addf %365, %367 : vector<2x8x64xf32>
    %369 = vector.extract_strided_slice %324 {offsets = [0, 7, 0, 0], sizes = [2, 1, 8, 64], strides = [1, 1, 1, 1]} : vector<2x8x8x64xf32> to vector<2x1x8x64xf32>
    %370 = vector.shape_cast %369 : vector<2x1x8x64xf32> to vector<2x8x64xf32>
    %371 = arith.mulf %370, %368 : vector<2x8x64xf32>
    %372 = vector.extract_strided_slice %325 {offsets = [0, 7, 0, 0], sizes = [2, 1, 8, 64], strides = [1, 1, 1, 1]} : vector<2x8x8x64xf32> to vector<2x1x8x64xf32>
    %373 = vector.shape_cast %372 : vector<2x1x8x64xf32> to vector<2x8x64xf32>
    %374 = arith.addf %371, %373 : vector<2x8x64xf32>
    %375 = vector.shape_cast %332 : vector<2x8x64xf32> to vector<2x1x8x64xf32>
    %376 = vector.shape_cast %338 : vector<2x8x64xf32> to vector<2x1x8x64xf32>
    %377 = vector.shape_cast %344 : vector<2x8x64xf32> to vector<2x1x8x64xf32>
    %378 = vector.shape_cast %350 : vector<2x8x64xf32> to vector<2x1x8x64xf32>
    %379 = vector.shape_cast %356 : vector<2x8x64xf32> to vector<2x1x8x64xf32>
    %380 = vector.shape_cast %362 : vector<2x8x64xf32> to vector<2x1x8x64xf32>
    %381 = vector.shape_cast %368 : vector<2x8x64xf32> to vector<2x1x8x64xf32>
    %382 = vector.shape_cast %374 : vector<2x8x64xf32> to vector<2x1x8x64xf32>
    %383 = tpu.concatenate %375, %376, %377, %378, %379, %380, %381, %382 in 1 : vector<2x1x8x64xf32>, vector<2x1x8x64xf32>, vector<2x1x8x64xf32>, vector<2x1x8x64xf32>, vector<2x1x8x64xf32>, vector<2x1x8x64xf32>, vector<2x1x8x64xf32>, vector<2x1x8x64xf32> -> vector<2x8x8x64xf32>
    %384 = vector.shape_cast %310 : vector<16x8xf32> to vector<2x8x8xf32>
    %385 = vector.shape_cast %384 : vector<2x8x8xf32> to vector<2x8x8x1xf32>
    %386 = vector.broadcast %385 : vector<2x8x8x1xf32> to vector<2x8x8x64xf32>
    %387 = arith.mulf %383, %386 : vector<2x8x8x64xf32>
    %cst_84 = arith.constant dense<0.000000e+00> : vector<2x8x64xf32>
    %388 = vector.multi_reduction <add>, %387, %cst_84 [2] : vector<2x8x8x64xf32> to vector<2x8x64xf32>
    %389 = vector.shape_cast %388 : vector<2x8x64xf32> to vector<16x64xf32>
    %c0_85 = arith.constant 0 : index
    %c0_86 = arith.constant 0 : index
    %390 = vector.load %arg29[%c0_85, %c0_86] : memref<1x64xf32, #tpu.memory_space<vmem>>, vector<1x64xf32>
    %391 = vector.broadcast %390 : vector<1x64xf32> to vector<16x64xf32>
    %392 = arith.mulf %391, %293 : vector<16x64xf32>
    %393 = arith.addf %389, %392 : vector<16x64xf32>
    %394 = arith.negf %287 : vector<16x64xf32>
    %395 = math.exp %394 : vector<16x64xf32>
    %cst_87 = arith.constant 1.000000e+00 : f32
    %396 = vector.broadcast %cst_87 : f32 to vector<16x64xf32>
    %397 = arith.addf %396, %395 : vector<16x64xf32>
    %398 = arith.divf %396, %397 : vector<16x64xf32>
    %399 = arith.mulf %287, %398 : vector<16x64xf32>
    %400 = arith.mulf %393, %399 : vector<16x64xf32>
    %c0_88 = arith.constant 0 : index
    %c0_89 = arith.constant 0 : index
    %401 = vector.load %arg30[%c0_88, %c0_89] : memref<64x32xbf16, #tpu.memory_space<vmem>>, vector<64x32xbf16>
    %402 = arith.truncf %400 : vector<16x64xf32> to vector<16x64xbf16>
    %cst_90 = arith.constant dense<0.000000e+00> : vector<16x32xf32>
    %403 = tpu.matmul %402, %401, %cst_90 {dimension_numbers = #tpu.dot_dimension_numbers<[1], [0], [0], [1], [0, 0, 1, 1], [], []>} : vector<16x64xbf16>, vector<64x32xbf16>, vector<16x32xf32> -> vector<16x32xf32>
    %c0_91 = arith.constant 0 : index
    %c0_92 = arith.constant 0 : index
    %404 = vector.load %arg31[%c0_91, %c0_92] : memref<1x32xf32, #tpu.memory_space<vmem>>, vector<1x32xf32>
    %405 = vector.broadcast %404 : vector<1x32xf32> to vector<16x32xf32>
    %406 = arith.addf %403, %405 : vector<16x32xf32>
    %c0_93 = arith.constant 0 : index
    %c0_94 = arith.constant 0 : index
    %407 = vector.load %arg32[%c0_93, %c0_94] : memref<1x32xf32, #tpu.memory_space<vmem>>, vector<1x32xf32>
    %408 = vector.broadcast %407 : vector<1x32xf32> to vector<16x32xf32>
    %409 = arith.mulf %406, %408 : vector<16x32xf32>
    %410 = arith.addf %276, %409 : vector<16x32xf32>
    %c0_95 = arith.constant 0 : index
    %c0_96 = arith.constant 0 : index
    %411 = vector.load %arg33[%c0_95, %c0_96] : memref<32x128xbf16, #tpu.memory_space<vmem>>, vector<32x128xbf16>
    %412 = arith.truncf %410 : vector<16x32xf32> to vector<16x32xbf16>
    %cst_97 = arith.constant dense<0.000000e+00> : vector<16x128xf32>
    %413 = tpu.matmul %412, %411, %cst_97 {dimension_numbers = #tpu.dot_dimension_numbers<[1], [0], [0], [1], [0, 0, 1, 1], [], []>} : vector<16x32xbf16>, vector<32x128xbf16>, vector<16x128xf32> -> vector<16x128xf32>
    %c0_98 = arith.constant 0 : index
    %c0_99 = arith.constant 0 : index
    %414 = vector.load %arg34[%c0_98, %c0_99] : memref<1x128xf32, #tpu.memory_space<vmem>>, vector<1x128xf32>
    %415 = vector.broadcast %414 : vector<1x128xf32> to vector<16x128xf32>
    %416 = arith.addf %413, %415 : vector<16x128xf32>
    %c0_100 = arith.constant 0 : index
    %c0_101 = arith.constant 0 : index
    %417 = vector.load %arg35[%c0_100, %c0_101] : memref<1x128xf32, #tpu.memory_space<vmem>>, vector<1x128xf32>
    %418 = vector.broadcast %417 : vector<1x128xf32> to vector<16x128xf32>
    %419 = arith.mulf %416, %418 : vector<16x128xf32>
    %420 = vector.extract_strided_slice %419 {offsets = [0, 0], sizes = [16, 64], strides = [1, 1]} : vector<16x128xf32> to vector<16x64xf32>
    %421 = vector.extract_strided_slice %419 {offsets = [0, 64], sizes = [16, 64], strides = [1, 1]} : vector<16x128xf32> to vector<16x64xf32>
    %422 = arith.negf %420 : vector<16x64xf32>
    %423 = math.exp %422 : vector<16x64xf32>
    %cst_102 = arith.constant 1.000000e+00 : f32
    %424 = vector.broadcast %cst_102 : f32 to vector<16x64xf32>
    %425 = arith.addf %424, %423 : vector<16x64xf32>
    %426 = arith.divf %424, %425 : vector<16x64xf32>
    %427 = arith.mulf %420, %426 : vector<16x64xf32>
    %c0_103 = arith.constant 0 : index
    %c0_104 = arith.constant 0 : index
    %428 = vector.load %arg36[%c0_103, %c0_104] : memref<64x80xbf16, #tpu.memory_space<vmem>>, vector<64x80xbf16>
    %429 = arith.truncf %427 : vector<16x64xf32> to vector<16x64xbf16>
    %cst_105 = arith.constant dense<0.000000e+00> : vector<16x80xf32>
    %430 = tpu.matmul %429, %428, %cst_105 {dimension_numbers = #tpu.dot_dimension_numbers<[1], [0], [0], [1], [0, 0, 1, 1], [], []>} : vector<16x64xbf16>, vector<64x80xbf16>, vector<16x80xf32> -> vector<16x80xf32>
    %431 = vector.extract_strided_slice %430 {offsets = [0, 0], sizes = [16, 64], strides = [1, 1]} : vector<16x80xf32> to vector<16x64xf32>
    %c0_106 = arith.constant 0 : index
    %c0_107 = arith.constant 0 : index
    %432 = vector.load %arg37[%c0_106, %c0_107] : memref<1x64xf32, #tpu.memory_space<vmem>>, vector<1x64xf32>
    %433 = vector.broadcast %432 : vector<1x64xf32> to vector<16x64xf32>
    %434 = arith.addf %431, %433 : vector<16x64xf32>
    %cst_108 = arith.constant 0.000000e+00 : f32
    %435 = vector.broadcast %cst_108 : f32 to vector<16x64xf32>
    %436 = arith.maximumf %434, %435 : vector<16x64xf32>
    %437 = math.absf %434 : vector<16x64xf32>
    %cst_109 = arith.constant 0.000000e+00 : f32
    %438 = vector.broadcast %cst_109 : f32 to vector<16x64xf32>
    %439 = arith.subf %438, %437 : vector<16x64xf32>
    %440 = math.exp %439 : vector<16x64xf32>
    %441 = math.log1p %440 : vector<16x64xf32>
    %442 = arith.addf %436, %441 : vector<16x64xf32>
    %443 = vector.extract_strided_slice %430 {offsets = [0, 64], sizes = [16, 8], strides = [1, 1]} : vector<16x80xf32> to vector<16x8xf32>
    %444 = vector.extract_strided_slice %430 {offsets = [0, 72], sizes = [16, 8], strides = [1, 1]} : vector<16x80xf32> to vector<16x8xf32>
    %c0_110 = arith.constant 0 : index
    %c0_111 = arith.constant 0 : index
    %445 = vector.load %arg38[%c0_110, %c0_111] : memref<8x64xf32, #tpu.memory_space<vmem>>, vector<8x64xf32>
    %446 = vector.shape_cast %442 : vector<16x64xf32> to vector<16x1x64xf32>
    %447 = vector.shape_cast %445 : vector<8x64xf32> to vector<1x8x64xf32>
    %448 = vector.broadcast %446 : vector<16x1x64xf32> to vector<16x8x64xf32>
    %449 = vector.broadcast %447 : vector<1x8x64xf32> to vector<16x8x64xf32>
    %450 = arith.mulf %448, %449 : vector<16x8x64xf32>
    %451 = math.exp %450 : vector<16x8x64xf32>
    %452 = arith.mulf %442, %427 : vector<16x64xf32>
    %453 = vector.shape_cast %452 : vector<16x64xf32> to vector<16x1x64xf32>
    %454 = vector.shape_cast %443 : vector<16x8xf32> to vector<16x8x1xf32>
    %455 = vector.broadcast %453 : vector<16x1x64xf32> to vector<16x8x64xf32>
    %456 = vector.broadcast %454 : vector<16x8x1xf32> to vector<16x8x64xf32>
    %457 = arith.mulf %455, %456 : vector<16x8x64xf32>
    %458 = vector.shape_cast %451 : vector<16x8x64xf32> to vector<2x8x8x64xf32>
    %459 = vector.shape_cast %457 : vector<16x8x64xf32> to vector<2x8x8x64xf32>
    %cst_112 = arith.constant 0.000000e+00 : f32
    %460 = vector.broadcast %cst_112 : f32 to vector<2x8x64xf32>
    %461 = vector.extract_strided_slice %458 {offsets = [0, 0, 0, 0], sizes = [2, 1, 8, 64], strides = [1, 1, 1, 1]} : vector<2x8x8x64xf32> to vector<2x1x8x64xf32>
    %462 = vector.shape_cast %461 : vector<2x1x8x64xf32> to vector<2x8x64xf32>
    %463 = arith.mulf %462, %460 : vector<2x8x64xf32>
    %464 = vector.extract_strided_slice %459 {offsets = [0, 0, 0, 0], sizes = [2, 1, 8, 64], strides = [1, 1, 1, 1]} : vector<2x8x8x64xf32> to vector<2x1x8x64xf32>
    %465 = vector.shape_cast %464 : vector<2x1x8x64xf32> to vector<2x8x64xf32>
    %466 = arith.addf %463, %465 : vector<2x8x64xf32>
    %467 = vector.extract_strided_slice %458 {offsets = [0, 1, 0, 0], sizes = [2, 1, 8, 64], strides = [1, 1, 1, 1]} : vector<2x8x8x64xf32> to vector<2x1x8x64xf32>
    %468 = vector.shape_cast %467 : vector<2x1x8x64xf32> to vector<2x8x64xf32>
    %469 = arith.mulf %468, %466 : vector<2x8x64xf32>
    %470 = vector.extract_strided_slice %459 {offsets = [0, 1, 0, 0], sizes = [2, 1, 8, 64], strides = [1, 1, 1, 1]} : vector<2x8x8x64xf32> to vector<2x1x8x64xf32>
    %471 = vector.shape_cast %470 : vector<2x1x8x64xf32> to vector<2x8x64xf32>
    %472 = arith.addf %469, %471 : vector<2x8x64xf32>
    %473 = vector.extract_strided_slice %458 {offsets = [0, 2, 0, 0], sizes = [2, 1, 8, 64], strides = [1, 1, 1, 1]} : vector<2x8x8x64xf32> to vector<2x1x8x64xf32>
    %474 = vector.shape_cast %473 : vector<2x1x8x64xf32> to vector<2x8x64xf32>
    %475 = arith.mulf %474, %472 : vector<2x8x64xf32>
    %476 = vector.extract_strided_slice %459 {offsets = [0, 2, 0, 0], sizes = [2, 1, 8, 64], strides = [1, 1, 1, 1]} : vector<2x8x8x64xf32> to vector<2x1x8x64xf32>
    %477 = vector.shape_cast %476 : vector<2x1x8x64xf32> to vector<2x8x64xf32>
    %478 = arith.addf %475, %477 : vector<2x8x64xf32>
    %479 = vector.extract_strided_slice %458 {offsets = [0, 3, 0, 0], sizes = [2, 1, 8, 64], strides = [1, 1, 1, 1]} : vector<2x8x8x64xf32> to vector<2x1x8x64xf32>
    %480 = vector.shape_cast %479 : vector<2x1x8x64xf32> to vector<2x8x64xf32>
    %481 = arith.mulf %480, %478 : vector<2x8x64xf32>
    %482 = vector.extract_strided_slice %459 {offsets = [0, 3, 0, 0], sizes = [2, 1, 8, 64], strides = [1, 1, 1, 1]} : vector<2x8x8x64xf32> to vector<2x1x8x64xf32>
    %483 = vector.shape_cast %482 : vector<2x1x8x64xf32> to vector<2x8x64xf32>
    %484 = arith.addf %481, %483 : vector<2x8x64xf32>
    %485 = vector.extract_strided_slice %458 {offsets = [0, 4, 0, 0], sizes = [2, 1, 8, 64], strides = [1, 1, 1, 1]} : vector<2x8x8x64xf32> to vector<2x1x8x64xf32>
    %486 = vector.shape_cast %485 : vector<2x1x8x64xf32> to vector<2x8x64xf32>
    %487 = arith.mulf %486, %484 : vector<2x8x64xf32>
    %488 = vector.extract_strided_slice %459 {offsets = [0, 4, 0, 0], sizes = [2, 1, 8, 64], strides = [1, 1, 1, 1]} : vector<2x8x8x64xf32> to vector<2x1x8x64xf32>
    %489 = vector.shape_cast %488 : vector<2x1x8x64xf32> to vector<2x8x64xf32>
    %490 = arith.addf %487, %489 : vector<2x8x64xf32>
    %491 = vector.extract_strided_slice %458 {offsets = [0, 5, 0, 0], sizes = [2, 1, 8, 64], strides = [1, 1, 1, 1]} : vector<2x8x8x64xf32> to vector<2x1x8x64xf32>
    %492 = vector.shape_cast %491 : vector<2x1x8x64xf32> to vector<2x8x64xf32>
    %493 = arith.mulf %492, %490 : vector<2x8x64xf32>
    %494 = vector.extract_strided_slice %459 {offsets = [0, 5, 0, 0], sizes = [2, 1, 8, 64], strides = [1, 1, 1, 1]} : vector<2x8x8x64xf32> to vector<2x1x8x64xf32>
    %495 = vector.shape_cast %494 : vector<2x1x8x64xf32> to vector<2x8x64xf32>
    %496 = arith.addf %493, %495 : vector<2x8x64xf32>
    %497 = vector.extract_strided_slice %458 {offsets = [0, 6, 0, 0], sizes = [2, 1, 8, 64], strides = [1, 1, 1, 1]} : vector<2x8x8x64xf32> to vector<2x1x8x64xf32>
    %498 = vector.shape_cast %497 : vector<2x1x8x64xf32> to vector<2x8x64xf32>
    %499 = arith.mulf %498, %496 : vector<2x8x64xf32>
    %500 = vector.extract_strided_slice %459 {offsets = [0, 6, 0, 0], sizes = [2, 1, 8, 64], strides = [1, 1, 1, 1]} : vector<2x8x8x64xf32> to vector<2x1x8x64xf32>
    %501 = vector.shape_cast %500 : vector<2x1x8x64xf32> to vector<2x8x64xf32>
    %502 = arith.addf %499, %501 : vector<2x8x64xf32>
    %503 = vector.extract_strided_slice %458 {offsets = [0, 7, 0, 0], sizes = [2, 1, 8, 64], strides = [1, 1, 1, 1]} : vector<2x8x8x64xf32> to vector<2x1x8x64xf32>
    %504 = vector.shape_cast %503 : vector<2x1x8x64xf32> to vector<2x8x64xf32>
    %505 = arith.mulf %504, %502 : vector<2x8x64xf32>
    %506 = vector.extract_strided_slice %459 {offsets = [0, 7, 0, 0], sizes = [2, 1, 8, 64], strides = [1, 1, 1, 1]} : vector<2x8x8x64xf32> to vector<2x1x8x64xf32>
    %507 = vector.shape_cast %506 : vector<2x1x8x64xf32> to vector<2x8x64xf32>
    %508 = arith.addf %505, %507 : vector<2x8x64xf32>
    %509 = vector.shape_cast %466 : vector<2x8x64xf32> to vector<2x1x8x64xf32>
    %510 = vector.shape_cast %472 : vector<2x8x64xf32> to vector<2x1x8x64xf32>
    %511 = vector.shape_cast %478 : vector<2x8x64xf32> to vector<2x1x8x64xf32>
    %512 = vector.shape_cast %484 : vector<2x8x64xf32> to vector<2x1x8x64xf32>
    %513 = vector.shape_cast %490 : vector<2x8x64xf32> to vector<2x1x8x64xf32>
    %514 = vector.shape_cast %496 : vector<2x8x64xf32> to vector<2x1x8x64xf32>
    %515 = vector.shape_cast %502 : vector<2x8x64xf32> to vector<2x1x8x64xf32>
    %516 = vector.shape_cast %508 : vector<2x8x64xf32> to vector<2x1x8x64xf32>
    %517 = tpu.concatenate %509, %510, %511, %512, %513, %514, %515, %516 in 1 : vector<2x1x8x64xf32>, vector<2x1x8x64xf32>, vector<2x1x8x64xf32>, vector<2x1x8x64xf32>, vector<2x1x8x64xf32>, vector<2x1x8x64xf32>, vector<2x1x8x64xf32>, vector<2x1x8x64xf32> -> vector<2x8x8x64xf32>
    %518 = vector.shape_cast %444 : vector<16x8xf32> to vector<2x8x8xf32>
    %519 = vector.shape_cast %518 : vector<2x8x8xf32> to vector<2x8x8x1xf32>
    %520 = vector.broadcast %519 : vector<2x8x8x1xf32> to vector<2x8x8x64xf32>
    %521 = arith.mulf %517, %520 : vector<2x8x8x64xf32>
    %cst_113 = arith.constant dense<0.000000e+00> : vector<2x8x64xf32>
    %522 = vector.multi_reduction <add>, %521, %cst_113 [2] : vector<2x8x8x64xf32> to vector<2x8x64xf32>
    %523 = vector.shape_cast %522 : vector<2x8x64xf32> to vector<16x64xf32>
    %c0_114 = arith.constant 0 : index
    %c0_115 = arith.constant 0 : index
    %524 = vector.load %arg39[%c0_114, %c0_115] : memref<1x64xf32, #tpu.memory_space<vmem>>, vector<1x64xf32>
    %525 = vector.broadcast %524 : vector<1x64xf32> to vector<16x64xf32>
    %526 = arith.mulf %525, %427 : vector<16x64xf32>
    %527 = arith.addf %523, %526 : vector<16x64xf32>
    %528 = arith.negf %421 : vector<16x64xf32>
    %529 = math.exp %528 : vector<16x64xf32>
    %cst_116 = arith.constant 1.000000e+00 : f32
    %530 = vector.broadcast %cst_116 : f32 to vector<16x64xf32>
    %531 = arith.addf %530, %529 : vector<16x64xf32>
    %532 = arith.divf %530, %531 : vector<16x64xf32>
    %533 = arith.mulf %421, %532 : vector<16x64xf32>
    %534 = arith.mulf %527, %533 : vector<16x64xf32>
    %c0_117 = arith.constant 0 : index
    %c0_118 = arith.constant 0 : index
    %535 = vector.load %arg40[%c0_117, %c0_118] : memref<64x32xbf16, #tpu.memory_space<vmem>>, vector<64x32xbf16>
    %536 = arith.truncf %534 : vector<16x64xf32> to vector<16x64xbf16>
    %cst_119 = arith.constant dense<0.000000e+00> : vector<16x32xf32>
    %537 = tpu.matmul %536, %535, %cst_119 {dimension_numbers = #tpu.dot_dimension_numbers<[1], [0], [0], [1], [0, 0, 1, 1], [], []>} : vector<16x64xbf16>, vector<64x32xbf16>, vector<16x32xf32> -> vector<16x32xf32>
    %c0_120 = arith.constant 0 : index
    %c0_121 = arith.constant 0 : index
    %538 = vector.load %arg41[%c0_120, %c0_121] : memref<1x32xf32, #tpu.memory_space<vmem>>, vector<1x32xf32>
    %539 = vector.broadcast %538 : vector<1x32xf32> to vector<16x32xf32>
    %540 = arith.addf %537, %539 : vector<16x32xf32>
    %c0_122 = arith.constant 0 : index
    %c0_123 = arith.constant 0 : index
    %541 = vector.load %arg42[%c0_122, %c0_123] : memref<1x32xf32, #tpu.memory_space<vmem>>, vector<1x32xf32>
    %542 = vector.broadcast %541 : vector<1x32xf32> to vector<16x32xf32>
    %543 = arith.mulf %540, %542 : vector<16x32xf32>
    %544 = arith.addf %410, %543 : vector<16x32xf32>
    %cst_124 = arith.constant dense<0.000000e+00> : vector<16xf32>
    %545 = vector.multi_reduction <add>, %544, %cst_124 [1] : vector<16x32xf32> to vector<16xf32>
    %546 = vector.shape_cast %545 : vector<16xf32> to vector<16x1xf32>
    %cst_125 = arith.constant 3.200000e+01 : f32
    %547 = vector.broadcast %cst_125 : f32 to vector<16x1xf32>
    %548 = arith.divf %546, %547 : vector<16x1xf32>
    %549 = vector.broadcast %548 : vector<16x1xf32> to vector<16x32xf32>
    %550 = arith.subf %544, %549 : vector<16x32xf32>
    %551 = arith.mulf %550, %550 : vector<16x32xf32>
    %cst_126 = arith.constant dense<0.000000e+00> : vector<16xf32>
    %552 = vector.multi_reduction <add>, %551, %cst_126 [1] : vector<16x32xf32> to vector<16xf32>
    %553 = vector.shape_cast %552 : vector<16xf32> to vector<16x1xf32>
    %cst_127 = arith.constant 3.200000e+01 : f32
    %554 = vector.broadcast %cst_127 : f32 to vector<16x1xf32>
    %555 = arith.divf %553, %554 : vector<16x1xf32>
    %556 = vector.broadcast %548 : vector<16x1xf32> to vector<16x32xf32>
    %557 = arith.subf %544, %556 : vector<16x32xf32>
    %cst_128 = arith.constant 9.99999974E-6 : f32
    %558 = vector.broadcast %cst_128 : f32 to vector<16x1xf32>
    %559 = arith.addf %555, %558 : vector<16x1xf32>
    %560 = math.rsqrt %559 : vector<16x1xf32>
    %561 = vector.broadcast %560 : vector<16x1xf32> to vector<16x32xf32>
    %562 = arith.mulf %557, %561 : vector<16x32xf32>
    %c0_129 = arith.constant 0 : index
    %c0_130 = arith.constant 0 : index
    %563 = vector.load %arg43[%c0_129, %c0_130] : memref<1x32xf32, #tpu.memory_space<vmem>>, vector<1x32xf32>
    %564 = vector.broadcast %563 : vector<1x32xf32> to vector<16x32xf32>
    %565 = arith.mulf %562, %564 : vector<16x32xf32>
    %c0_131 = arith.constant 0 : index
    %c0_132 = arith.constant 0 : index
    %566 = vector.load %arg44[%c0_131, %c0_132] : memref<1x32xf32, #tpu.memory_space<vmem>>, vector<1x32xf32>
    %567 = vector.broadcast %566 : vector<1x32xf32> to vector<16x32xf32>
    %568 = arith.addf %565, %567 : vector<16x32xf32>
    %c0_133 = arith.constant 0 : index
    %c0_134 = arith.constant 0 : index
    %569 = vector.load %arg45[%c0_133, %c0_134] : memref<32x64xbf16, #tpu.memory_space<vmem>>, vector<32x64xbf16>
    %570 = arith.truncf %568 : vector<16x32xf32> to vector<16x32xbf16>
    %cst_135 = arith.constant dense<0.000000e+00> : vector<16x64xf32>
    %571 = tpu.matmul %570, %569, %cst_135 {dimension_numbers = #tpu.dot_dimension_numbers<[1], [0], [0], [1], [0, 0, 1, 1], [], []>} : vector<16x32xbf16>, vector<32x64xbf16>, vector<16x64xf32> -> vector<16x64xf32>
    %c0_136 = arith.constant 0 : index
    %c0_137 = arith.constant 0 : index
    %572 = vector.load %arg46[%c0_136, %c0_137] : memref<16x64xf32, #tpu.memory_space<vmem>>, vector<16x64xf32>
    tpu.vector_store %arg46[%c0_136, %c0_137], %571 {strides = array<i32>} : memref<16x64xf32, #tpu.memory_space<vmem>>, vector<16x64xf32>,
    return
  }
}

</mosaic_0001>

<bundles_post_ra>
// kernel: sgh_peft_forward.1
= control target key start
LH: loop header
LB: loop body
LE: loop exit
PB: predicated region body
PF: predicated region fallthrough
CT: control target
= control target key end

     0   :  { %s6619_s6 = smov 1   ;;  %s6620_s10 = smov 2   ;;  %s8662_s0 = inlined_call_operand.smem [shape: u32[47], index: -1, kind: input, shape index: {}] }
   0x1   :  { %s6685_s5 = sld [smem:[%s8662_s0]]   ;;  %s6621_s14 = smov 3  }
   0x2   :  { %s6690_s9 = sld [smem:[%s8662_s0 + %s6619_s6]]   ;;  %s6622_s18 = smov 4  }
   0x3   :  { %s6695_s13 = sld [smem:[%s8662_s0 + %s6620_s10]]   ;;  %s6623_s22 = smov 5  }
   0x4   :  { %s6700_s17 = sld [smem:[%s8662_s0 + %s6621_s14]]   ;;  %s6624_s26 = smov 6  }
   0x5   :  { %s6705_s21 = sld [smem:[%s8662_s0 + %s6622_s18]]   ;;  %s6625_s30 = smov 7  }
   0x6   :  { %s6710_s25 = sld [smem:[%s8662_s0 + %s6623_s22]]   ;;  %s6626_s4 = smov 8  }
   0x7   :  { %s6715_s29 = sld [smem:[%s8662_s0 + %s6624_s26]]   ;;  %s6627_s10 = smov 9  }
   0x8   :  { %s6720_s3 = sld [smem:[%s8662_s0 + %s6625_s30]]   ;;  %s6628_s15 = smov 10  }
   0x9   :  { %s6725_s8 = sld [smem:[%s8662_s0 + %s6626_s4]]   ;;  %s6629_s20 = smov 11  }
   0xa   :  { %s6730_s14 = sld [smem:[%s8662_s0 + %s6627_s10]]   ;;  %s6630_s26 = smov 12  }
   0xb   :  { %s6735_s19 = sld [smem:[%s8662_s0 + %s6628_s15]]   ;;  %s6631_s1 = smov 13  }
   0xc   :  { %s6740_s24 = sld [smem:[%s8662_s0 + %s6629_s20]]   ;;  %s6632_s7 = smov 14  }
   0xd   :  { %s6745_s30 = sld [smem:[%s8662_s0 + %s6630_s26]]   ;;  %s6633_s15 = smov 15  }
   0xe   :  { %s6750_s6 = sld [smem:[%s8662_s0 + %s6631_s1]]   ;;  %s6634_s22 = smov 16  }
   0xf   :  { %s6755_s12 = sld [smem:[%s8662_s0 + %s6632_s7]]   ;;  %s6635_s28 = smov 17  }
  0x10   :  { %s6760_s20 = sld [smem:[%s8662_s0 + %s6633_s15]]   ;;  %s6636_s7 = smov 18  }
  0x11   :  { %8674 = sst [smem:[#allocation16_spill]] %s6735_s19  ;;  %s6637_s15 = smov 19  }
  0x12   :  { %s6765_s27 = sld [smem:[%s8662_s0 + %s6634_s22]]   ;;  %s6638_s22 = smov 20  }
  0x13   :  { %8675 = sst [smem:[#allocation17_spill]] %s6745_s30 }
  0x14   :  { %8676 = sst [smem:[#allocation18_spill]] %s6750_s6 }
  0x15   :  { %8677 = sst [smem:[#allocation19_spill]] %s6755_s12 }
  0x16   :  { %8678 = sst [smem:[#allocation20_spill]] %s6760_s20 }
  0x17   :  { %s6770_s4 = sld [smem:[%s8662_s0 + %s6635_s28]]   ;;  %s6639_s28 = smov 21  }
  0x18   :  { %8679 = sst [smem:[#allocation21_spill]] %s6765_s27 }
  0x19   :  { %s6775_s12 = sld [smem:[%s8662_s0 + %s6636_s7]]   ;;  %s6640_s7 = smov 22  }
  0x1a   :  { %s6780_s20 = sld [smem:[%s8662_s0 + %s6637_s15]]   ;;  %s6641_s15 = smov 23  }
  0x1b   :  { %s6785_s27 = sld [smem:[%s8662_s0 + %s6638_s22]]   ;;  %s6642_s22 = smov 24  }
  0x1d   :  { %8680 = sst [smem:[#allocation22_spill]] %s6770_s4 }
  0x1e   :  { %s6790_s4 = sld [smem:[%s8662_s0 + %s6639_s28]]   ;;  %s6643_s28 = smov 25  }
  0x1f   :  { %8681 = sst [smem:[#allocation23_spill]] %s6775_s12 }
  0x20   :  { %8682 = sst [smem:[#allocation24_spill]] %s6780_s20 }
  0x21   :  { %8683 = sst [smem:[#allocation25_spill]] %s6785_s27 }
  0x22   :  { %s6795_s12 = sld [smem:[%s8662_s0 + %s6640_s7]]   ;;  %s6644_s7 = smov 26  }
  0x23   :  { %s6800_s20 = sld [smem:[%s8662_s0 + %s6641_s15]]   ;;  %s6645_s15 = smov 27  }
  0x24   :  { %8684 = sst [smem:[#allocation26_spill]] %s6790_s4 }
  0x25   :  { %s6805_s27 = sld [smem:[%s8662_s0 + %s6642_s22]]   ;;  %s6646_s22 = smov 28  }
  0x26   :  { %s6810_s4 = sld [smem:[%s8662_s0 + %s6643_s28]]   ;;  %s6647_s28 = smov 29  }
  0x28   :  { %8685 = sst [smem:[#allocation27_spill]] %s6795_s12 }
  0x29   :  { %8686 = sst [smem:[#allocation28_spill]] %s6800_s20 }
  0x2a   :  { %s6815_s12 = sld [smem:[%s8662_s0 + %s6644_s7]]   ;;  %s6648_s7 = smov 30  }
  0x2b   :  { %8687 = sst [smem:[#allocation29_spill]] %s6805_s27 }
  0x2c   :  { %8688 = sst [smem:[#allocation30_spill]] %s6810_s4 }
  0x2d   :  { %s6820_s20 = sld [smem:[%s8662_s0 + %s6645_s15]]   ;;  %s6649_s15 = smov 31  }
  0x2e   :  { %s6825_s27 = sld [smem:[%s8662_s0 + %s6646_s22]]   ;;  %s6650_s22 = smov 32  }
  0x2f   :  { %s6830_s4 = sld [smem:[%s8662_s0 + %s6647_s28]]   ;;  %s6651_s28 = smov 33  }
  0x30   :  { %8689 = sst [smem:[#allocation31_spill]] %s6815_s12 }
  0x31   :  { %s6835_s12 = sld [smem:[%s8662_s0 + %s6648_s7]]   ;;  %s6652_s7 = smov 34  }
  0x33   :  { %8690 = sst [smem:[#allocation32_spill]] %s6820_s20 }
  0x34   :  { %8691 = sst [smem:[#allocation33_spill]] %s6825_s27 }
  0x35   :  { %8692 = sst [smem:[#allocation34_spill]] %s6830_s4 }
  0x36   :  { %s6840_s20 = sld [smem:[%s8662_s0 + %s6649_s15]]   ;;  %s6653_s15 = smov 35  }
  0x37   :  { %8693 = sst [smem:[#allocation35_spill]] %s6835_s12 }
  0x38   :  { %s6845_s27 = sld [smem:[%s8662_s0 + %s6650_s22]]   ;;  %s6654_s22 = smov 36  }
  0x39   :  { %s6850_s4 = sld [smem:[%s8662_s0 + %s6651_s28]]   ;;  %s6655_s28 = smov 37  }
  0x3a   :  { %s6855_s12 = sld [smem:[%s8662_s0 + %s6652_s7]]   ;;  %s6656_s7 = smov 38  }
  0x3c   :  { %8694 = sst [smem:[#allocation36_spill]] %s6840_s20 }
  0x3d   :  { %s6860_s20 = sld [smem:[%s8662_s0 + %s6653_s15]]   ;;  %s6657_s15 = smov 39  }
  0x3e   :  { %8695 = sst [smem:[#allocation37_spill]] %s6845_s27 }
  0x3f   :  { %8696 = sst [smem:[#allocation38_spill]] %s6850_s4 }
  0x40   :  { %8697 = sst [smem:[#allocation39_spill]] %s6855_s12 }
  0x41   :  { %s6865_s27 = sld [smem:[%s8662_s0 + %s6654_s22]]   ;;  %s6658_s22 = smov 40  }
  0x42   :  { %s6870_s4 = sld [smem:[%s8662_s0 + %s6655_s28]]   ;;  %s6659_s28 = smov 41  }
  0x43   :  { %8698 = sst [smem:[#allocation40_spill]] %s6860_s20 }
  0x44   :  { %s6875_s12 = sld [smem:[%s8662_s0 + %s6656_s7]]   ;;  %s6660_s7 = smov 42  }
  0x45   :  { %s6880_s20 = sld [smem:[%s8662_s0 + %s6657_s15]]   ;;  %s6661_s15 = smov 43  }
  0x46   :  { %s6900_s19 = sld [smem:[%s8662_s0 + %s6661_s15]]  }
  0x47   :  { %8699 = sst [smem:[#allocation41_spill]] %s6865_s27 }
  0x48   :  { %8700 = sst [smem:[#allocation42_spill]] %s6870_s4 }
  0x49   :  { %s6885_s27 = sld [smem:[%s8662_s0 + %s6658_s22]]   ;;  %s6662_s22 = smov 44  }
  0x4a   :  { %8701 = sst [smem:[#allocation43_spill]] %s6875_s12 }
  0x4b   :  { %s6890_s4 = sld [smem:[%s8662_s0 + %s6659_s28]]   ;;  %s6663_s28 = smov 45  }
  0x4c   :  { %s6895_s12 = sld [smem:[%s8662_s0 + %s6660_s7]]   ;;  %s6664_s7 = smov 46  }
  0x4d   :  { %s6910_s6 = sld [smem:[%s8662_s0 + %s6663_s28]]  }
  0x4e   :  { %s6915_s30 = sld [smem:[%s8662_s0 + %s6664_s7]]  }
  0x4f   :  { %8702 = sst [smem:[#allocation44_spill]] %s6885_s27 }
  0x50   :  { %s6905_s27 = sld [smem:[%s8662_s0 + %s6662_s22]]  }
  0x51   :  { %98 = vsyncpa [#allocation3], 0 }
  0x52   :  { %99 = vsyncpa [#allocation6], 0 }
  0x53   :  { %100 = vsyncpa [#allocation9], 0 }
  0x54   :  { %101 = vsyncpa [#allocation4], 0  ;;  %s6665_s15 = smov [#allocation5]   ;;  %s6666_s18 = smov [#allocation8]  }
  0x55   :  { %s198_s16 = sshll.u32 %s6665_s15, 4  ;;  %s218_s22 = sshll.u32 %s6666_s18, 4  ;;  %s199_s16 = int_to_ptr.vmem [resolvable:$true] %s198_s16  ;;  %s219_s22 = int_to_ptr.vmem [resolvable:$true] %s218_s22 }
  0x56   :  { %s6479_s23 = scalar_lea.hbm %s6890_s4, 16 }
  0x57   :  { %p6480_p0 = scmp.ne.s32.totalorder %s6890_s4, %s6479_s23  ;;  %p6483_p1 = scmp.lt.u32.totalorder %s6479_s23, %s6890_s4 }
  0x59   :  { %p6485_p2 = pnand %p6483_p1, %p6480_p0 }
  0x5b   :  { %6488 = shalt.err (!%p6485_p2)
}
  0x5c   :  { %s6489_s0 = scalar_lea.vmem %s199_s16, 16  ;;  %s6493_s26 = scalar_lea.vmem %s199_s16, 32 }
  0x5d   :  { %p6490_p3 = scmp.ne.s32.totalorder %s199_s16, %s6489_s0  ;;  %p6494_p4 = scmp.lt.s32.totalorder %s199_s16, %s199_s16 }
  0x5e   :  { %p6495_p5 = scmp.lt.s32.totalorder %s6493_s26, %s6489_s0 }
  0x60   :  { %p6496_p6 = por %p6495_p5, %p6494_p4 }
  0x62   :  { %p6497_p7 = pnand %p6496_p6, %p6490_p3 }
  0x64   :  { %6500 = shalt.err (!%p6497_p7)
}
  0x65   :  { %201 = dma.hbm_to_vmem [thread:$0]  %s6890_s4, 16, %s199_s16, [#allocation6]  }
  0x66   :  { %s6501_s28 = scalar_lea.hbm %s6900_s19, 16 }
  0x67   :  { %p6502_p8 = scmp.ne.s32.totalorder %s6900_s19, %s6501_s28  ;;  %p6505_p9 = scmp.lt.u32.totalorder %s6501_s28, %s6900_s19 }
  0x69   :  { %p6507_p10 = pnand %p6505_p9, %p6502_p8 }
  0x6b   :  { %6510 = shalt.err (!%p6507_p10)
}
  0x6c   :  { %s6511_s1 = scalar_lea.vmem %s219_s22, 16  ;;  %s6515_s2 = scalar_lea.vmem %s219_s22, 32 }
  0x6d   :  { %p6512_p11 = scmp.ne.s32.totalorder %s219_s22, %s6511_s1  ;;  %p6516_p12 = scmp.lt.s32.totalorder %s219_s22, %s219_s22 }
  0x6e   :  { %p6517_p13 = scmp.lt.s32.totalorder %s6515_s2, %s6511_s1 }
  0x70   :  { %p6518_p0 = por %p6517_p13, %p6516_p12 }
  0x72   :  { %p6519_p1 = pnand %p6518_p0, %p6512_p11 }
  0x74   :  { %6522 = shalt.err (!%p6519_p1)
}
  0x75   :  { %221 = dma.hbm_to_vmem [thread:$0]  %s6900_s19, 16, %s219_s22, [#allocation9]  }
  0x76   :  { %s6667_s7 = smov [#allocation2]   ;;  %s6668_s10 = smov [#allocation7]  }
  0x77   :  { %s186_s4 = sshll.u32 %s6667_s7, 4  ;;  %s208_s11 = sshll.u32 %s6668_s10, 4  ;;  %s187_s4 = int_to_ptr.vmem [resolvable:$true] %s186_s4  ;;  %s209_s11 = int_to_ptr.vmem [resolvable:$true] %s208_s11 }
  0x78   :  { %s6523_s15 = scalar_lea.hbm %s6880_s20, 16 }
  0x79   :  { %p6524_p2 = scmp.ne.s32.totalorder %s6880_s20, %s6523_s15  ;;  %p6527_p3 = scmp.lt.u32.totalorder %s6523_s15, %s6880_s20 }
  0x7b   :  { %p6529_p4 = pnand %p6527_p3, %p6524_p2 }
  0x7d   :  { %6532 = shalt.err (!%p6529_p4)
}
  0x7e   :  { %s6533_s16 = scalar_lea.vmem %s187_s4, 16  ;;  %s6537_s18 = scalar_lea.vmem %s187_s4, 32 }
  0x7f   :  { %p6534_p5 = scmp.ne.s32.totalorder %s187_s4, %s6533_s16  ;;  %p6538_p6 = scmp.lt.s32.totalorder %s187_s4, %s187_s4 }
  0x80   :  { %p6539_p7 = scmp.lt.s32.totalorder %s6537_s18, %s6533_s16 }
  0x82   :  { %p6540_p8 = por %p6539_p7, %p6538_p6 }
  0x84   :  { %p6541_p9 = pnand %p6540_p8, %p6534_p5 }
  0x86   :  { %6544 = shalt.err (!%p6541_p9)
}
  0x87   :  { %189 = dma.hbm_to_vmem [thread:$0]  %s6880_s20, 16, %s187_s4, [#allocation3]  }
  0x88   :  { %s6545_s19 = scalar_lea.hbm %s6895_s12, 16 }
  0x89   :  { %p6546_p10 = scmp.ne.s32.totalorder %s6895_s12, %s6545_s19  ;;  %p6549_p11 = scmp.lt.u32.totalorder %s6545_s19, %s6895_s12 }
  0x8b   :  { %p6551_p12 = pnand %p6549_p11, %p6546_p10 }
  0x8d   :  { %6554 = shalt.err (!%p6551_p12)
}
  0x8e   :  { %s6555_s22 = scalar_lea.vmem %s209_s11, 16  ;;  %s6559_s23 = scalar_lea.vmem %s209_s11, 32 }
  0x8f   :  { %p6556_p13 = scmp.ne.s32.totalorder %s209_s11, %s6555_s22  ;;  %p6560_p0 = scmp.lt.s32.totalorder %s209_s11, %s209_s11 }
  0x90   :  { %p6561_p1 = scmp.lt.s32.totalorder %s6559_s23, %s6555_s22 }
  0x92   :  { %p6562_p2 = por %p6561_p1, %p6560_p0 }
  0x94   :  { %p6563_p3 = pnand %p6562_p2, %p6556_p13 }
  0x96   :  { %6566 = shalt.err (!%p6563_p3)
}
  0x97   :  { %211 = dma.hbm_to_vmem [thread:$0]  %s6895_s12, 16, %s209_s11, [#allocation6]  }
  0x98   :  { %s6669_s0 = smov [#allocation10]   ;;  %s6567_s26 = scalar_lea.hbm %s6905_s27, 16 }
  0x99   :  { %s228_s20 = sshll.u32 %s6669_s0, 4  ;;  %p6568_p4 = scmp.ne.s32.totalorder %s6905_s27, %s6567_s26  ;;  %s229_s20 = int_to_ptr.vmem [resolvable:$true] %s228_s20 }
  0x9a   :  { %p6571_p5 = scmp.lt.u32.totalorder %s6567_s26, %s6905_s27 }
  0x9c   :  { %p6573_p6 = pnand %p6571_p5, %p6568_p4 }
  0x9e   :  { %6576 = shalt.err (!%p6573_p6)
}
  0x9f   :  { %s6577_s28 = scalar_lea.vmem %s229_s20, 16  ;;  %s6581_s1 = scalar_lea.vmem %s229_s20, 32 }
  0xa0   :  { %p6578_p7 = scmp.ne.s32.totalorder %s229_s20, %s6577_s28  ;;  %p6582_p8 = scmp.lt.s32.totalorder %s229_s20, %s229_s20 }
  0xa1   :  { %p6583_p9 = scmp.lt.s32.totalorder %s6581_s1, %s6577_s28 }
  0xa3   :  { %p6584_p10 = por %p6583_p9, %p6582_p8 }
  0xa5   :  { %p6585_p11 = pnand %p6584_p10, %p6578_p7 }
  0xa7   :  { %6588 = shalt.err (!%p6585_p11)
}
  0xa8   :  { %231 = dma.hbm_to_vmem [thread:$0]  %s6905_s27, 16, %s229_s20, [#allocation9]  }
  0xa9   :  { %6611 = dma.done.wait [#allocation3], 16  }
  0xaa   :  { %6612 = vsyncadd [#allocation3], 4294967280 }
  0xab   :  { %6613 = dma.done.wait [#allocation6], 32  }
  0xac   :  { %6614 = vsyncadd [#allocation6], 4294967264 }
  0xad   :  { %6615 = dma.done.wait [#allocation9], 32  }
  0xae   :  { %6616 = vsyncadd [#allocation9], 4294967264  ;;  %v8672_v0 = vmov 0.0   ;;  %vm6671_vm0 = vmmov 0   ;;  %v6231_v1 = vld [vmem:[%s6700_s17] sm:$0xff]   ;;  %v6232_v2 = vld [vmem:[%s6700_s17 + $0x8] sm:$0xff]   ;;  %v572_v36 = vlaneseq }
  0xaf   :  { %6007 = vmatprep.subr.bf16.mxu1 %v8672_v0  ;;  %6011 = vmatprep.mubr.msk.bf16.mxu1 %vm6671_vm0, %v8672_v0  ;;  %v250_v3 = vld [vmem:[%s6685_s5] sm:$0xff]  ;;  %v251_v4 = vld [vmem:[%s6685_s5 + $0x8] sm:$0xff]  ;;  %vm276_vm1 = vcmask 261120   ;;  %vm387_vm2 = vcmask 130048   ;;  %v6238_v16 = vld [vmem:[%s6710_s25 + $0x10] sm:$0xff]   ;;  %vm481_vm3 = vcmask 523264  }
  0xb0   :  { %5999 = vmatprep.subr.bf16.mxu0 %v8672_v0  ;;  %6003 = vmatprep.mubr.msk.bf16.mxu0 %vm6671_vm0, %v8672_v0  ;;  %v6233_v5 = vld [vmem:[%s6690_s9] sm:$0xff]   ;;  %v256_v6 = vpack.c.bf16 %v251_v4, %v250_v3  ;;  %v6234_v7 = vld [vmem:[%s6690_s9 + $0x8] sm:$0xff]   ;;  %v6239_v17 = vld [vmem:[%s6710_s25 + $0x18] sm:$0xff]   ;;  %v6982_v37 = vshrl.u32 %v572_v36, 7  ;;  %s6672_s9 = smov 64   ;;  %vm1545_vm6 = vcmask 1041409  }
  0xb1   :  { %6008 = vmatpush3.bf16.msra.mxu1 %v6231_v1  ;;  %6000 = vmatpush3.bf16.msra.mxu0 %v6233_v5  ;;  %v6235_v8 = vld [vmem:[%s6705_s21] sm:$0xff]   ;;  %v6237_v15 = vld [vmem:[%s6710_s25 + $0x8] sm:$0xff]   ;;  %vm1548_vm7 = vcmask 1042434   ;;  %vm1551_vm8 = vcmask 1043459   ;;  %vm1554_vm9 = vcmask 1044484   ;;  %vm1557_vm10 = vcmask 1045509  }
  0xb2   :  { %6009 = vmatprep.subr.bf16.mxu1 %v8672_v0  ;;  %6001 = vmatprep.subr.bf16.mxu0 %v8672_v0  ;;  %v6236_v14 = vld [vmem:[%s6710_s25] sm:$0xff]   ;;  %v6985_v38 = vsub.s32 0, %v6982_v37  ;;  %v6988_v39 = vsub.s32 1, %v6982_v37  ;;  %v6993_v44 = vsub.s32 3, %v6982_v37  ;;  %v6996_v45 = vsub.s32 2, %v6982_v37  ;;  %s8719_s17 = sld [smem:[#allocation18_spill]] }
  0xb3   :  { %v5833_v18 = vld [vmem:[%s6695_s13] ss:$0 sm:$0xff]  ;;  %v7004_v51 = vsub.s32 4, %v6982_v37  ;;  %v7010_v54 = vsub.s32 5, %v6982_v37  ;;  %v7017_v57 = vsub.s32 6, %v6982_v37  ;;  %v7030_v1 = vsub.s32 7, %v6982_v37 }
  0xb4   :  { %v5849_v61 = vld [vmem:[%s6715_s29] ss:$0 sm:$0xff]  ;;  %vm1560_vm11 = vcmask 1046534   ;;  %s8718_s13 = sld [smem:[#allocation17_spill]]  ;;  %vm1563_vm12 = vcmask 1047559   ;;  %s8721_s21 = sld [smem:[#allocation16_spill]] }
  0xb5   :  { %6010 = vmatpush3.bf16.msra.mxu1 %v6232_v2  ;;  %6002 = vmatpush3.bf16.msra.mxu0 %v6234_v7  ;;  %s8722_s25 = sld [smem:[#allocation21_spill]]  ;;  %s8723_s29 = sld [smem:[#allocation19_spill]] }
  0xb6   :  { %6021 = vmatprep.subr.bf16.mxu1 %v8672_v0  ;;  %6015 = vmatprep.subr.bf16.mxu0 %v8672_v0  ;;  %s8737_s12 = sld [smem:[#allocation28_spill]]  ;;  %s8738_s27 = sld [smem:[#allocation26_spill]] }
  0xb7   :  { %s8739_s2 = sld [smem:[#allocation27_spill]]  ;;  %s8740_s7 = sld [smem:[#allocation31_spill]] }
  0xb8   :  { %6012 = vmatmul.mubr.msk.bf16.vlgmr.msra.gmra.mrb[0].mxu1 %vm276_vm1, %v256_v6  ;;  %6004 = vmatmul.mubr.msk.bf16.vlgmr.msra.gmra.mrb[0].mxu0 %vm276_vm1, %v256_v6  ;;  %s8741_s4 = sld [smem:[#allocation29_spill]]  ;;  %s8742_s10 = sld [smem:[#allocation30_spill]] }
  0xb9   :  { %6029 = vmatprep.mubr.msk.bf16.mxu1 %vm6671_vm0, %v8672_v0  ;;  %6016 = vmatpush3.bf16.msra.mxu0 %v6235_v8  ;;  %s8743_s11 = sld [smem:[#allocation32_spill]]  ;;  %s8744_s15 = sld [smem:[#allocation35_spill]] }
  0xba   :  { %6017 = vmatprep.mubr.msk.bf16.mxu0 %vm6671_vm0, %v8672_v0  ;;  %6033 = vmatprep.subr.bf16.mxu0 %v8672_v0  ;;  %s8745_s16 = sld [smem:[#allocation33_spill]]  ;;  %s8746_s18 = sld [smem:[#allocation34_spill]] }
  0xbb   :  { %6022 = vmatpush3.bf16.msra.mxu1 %v6236_v14  ;;  %s8756_s19 = sld [smem:[#allocation38_spill]]  ;;  %s8757_s22 = sld [smem:[#allocation36_spill]] }
  0xbc   :  { %6023 = vmatprep.subr.bf16.mxu1 %v8672_v0  ;;  %s8758_s23 = sld [smem:[#allocation37_spill]]  ;;  %s8759_s0 = sld [smem:[#allocation41_spill]] }
  0xbd   :  { %s8760_s20 = sld [smem:[#allocation39_spill]]  ;;  %s8761_s26 = sld [smem:[#allocation40_spill]] }
  0xbe   :  { %s8762_s28 = sld [smem:[#allocation42_spill]]  ;;  %s8763_s1 = sld [smem:[#allocation44_spill]] }
  0xbf   :  { %6024 = vmatpush3.bf16.msra.mxu1 %v6237_v15 }
  0xc0   :  { %6025 = vmatprep.subr.bf16.mxu1 %v8672_v0 }
  0xc3   :  { %6026 = vmatpush3.bf16.msra.mxu1 %v6238_v16 }
  0xc4   :  { %6027 = vmatprep.subr.bf16.mxu1 %v8672_v0 }
  0xc7   :  { %6028 = vmatpush3.bf16.msra.mxu1 %v6239_v17 }
  0xc8   :  { %6045 = vmatprep.subr.bf16.mxu1 %v8672_v0 }
 0x18b   :  { %v371_v9 = vpop.f32.mrb[0].mxu1 }
 0x18c   :  { %v6013_v10 = vpop.f32.mrb[1].mxu1 }
 0x18d   :  { %v374_v11 = vpop.f32.mrb[2].mxu1 }
 0x18e   :  { %v380_v12 = vpack.c.bf16 %v374_v11, %v371_v9  ;;  %v6014_v13 = vpop.f32.mrb[3].mxu1 }
 0x190   :  { %6018 = vmatmul.mubr.msk.bf16.vlgmr.msra.gmra.mrb[0].mxu0 %vm387_vm2, %v380_v12 }
 0x191   :  { %6041 = vmatprep.mubr.msk.bf16.mxu0 %vm6671_vm0, %v8672_v0 }
 0x263   :  { %v425_v19 = vpop.f32.mrb[0].mxu0 }
 0x264   :  { %v6167_v20 = vadd.f32 %v5833_v18, %v425_v19  ;;  %v6019_v21 = vpop.f32.mrb[1].mxu0 }
 0x265   :  { %v428_v22 = vpop.f32.mrb[2].mxu0  ;;  %v6673_v21 = vmov 1966171168  }
 0x266   :  { %v5842_v23 = vmul.f32 -1.442695, %v6167_v20  ;;  %v6168_v24 = vadd.f32 %v5833_v18, %v428_v22  ;;  %v6020_v25 = vpop.f32.mrb[3].mxu0  ;;  %v570_v22 = vunpack.c.l.s4 %v6673_v21 }
 0x268   :  { %6281 = vpow2.f32 %v5842_v23  ;;  %v5843_v26 = vmul.f32 -1.442695, %v6168_v24 }
 0x26a   :  { %6283 = vpow2.f32 %v5843_v26 }
 0x272   :  { %v6282_v27 = vpop.eup %6281 }
 0x273   :  { %v440_v28 = vadd.f32 1.0, %v6282_v27  ;;  %v571_v27 = vunpack.c.0.s8 %v570_v22 }
 0x274   :  { %v6284_v29 = vpop.eup %6283 }
 0x275   :  { %6285 = vrcp.f32 %v440_v28  ;;  %v441_v30 = vadd.f32 1.0, %v6284_v29 }
 0x277   :  { %6287 = vrcp.f32 %v441_v30 }
 0x27f   :  { %v6286_v31 = vpop.eup %6285 }
 0x280   :  { %v6973_v33 = vmul.f32 %v6286_v31, %v6167_v20  ;;  %v7060_v31 = vsub.s32 %v571_v27, %v6982_v37  ;;  %v6240_v37 = vld [vmem:[%s6730_s14] sm:$0xff]  }
 0x281   :  { %v6288_v32 = vpop.eup %6287  ;;  %6034 = vmatpush3.bf16.msra.mxu0 %v6240_v37 }
 0x282   :  { %v6975_v34 = vmul.f32 %v6288_v32, %v6168_v24  ;;  %v1405_v10 = vrot.slane %v6973_v33, 3  ;;  %v1403_v13 = vrot.slane %v6973_v33, 1  ;;  %v1404_v15 = vrot.slane %v6973_v33, 2  ;;  %6035 = vmatprep.subr.bf16.mxu0 %v8672_v0 }
 0x284   :  { %v456_v35 = vpack.c.bf16 %v6975_v34, %v6973_v33  ;;  %v1410_v50 = vrot.slane %v6975_v34, 1  ;;  %v1411_v52 = vrot.slane %v6975_v34, 2  ;;  %v1412_v28 = vrot.slane %v6975_v34, 3 }
 0x285   :  { %v1413_v32 = vrot.slane %v6975_v34, 4 }
 0x286   :  { %6030 = vmatmul.mubr.msk.bf16.vlgmr.msra.gmra.mrb[4].mxu1 %vm481_vm3, %v456_v35  ;;  %v1406_v35 = vrot.slane %v6973_v33, 4 }
 0x287   :  { %6053 = vmatprep.mubr.msk.bf16.mxu1 %vm6671_vm0, %v8672_v0 }
 0x359   :  { %v519_v40 = vpop.f32.mrb[4].mxu1 }
 0x35a   :  { %v6031_v41 = vpop.f32.mrb[5].mxu1  ;;  %v907_v42 = vrot.slane %v519_v40, %v6988_v39  ;;  %v899_v43 = vrot.slane %v519_v40, %v6985_v38  ;;  %v923_v48 = vrot.slane %v519_v40, %v6993_v44  ;;  %v915_v49 = vrot.slane %v519_v40, %v6996_v45 }
 0x35b   :  { %v6998_v46 = vpop.f32.mrb[6].mxu1  ;;  %v931_v53 = vrot.slane %v519_v40, %v7004_v51  ;;  %v939_v55 = vrot.slane %v519_v40, %v7010_v54  ;;  %v947_v58 = vrot.slane %v519_v40, %v7017_v57  ;;  %v7025_v62 = vadd.f32 %v5849_v61, %v519_v40 }
 0x35c   :  { %910 = vbcast.lane.b32.xlu1 %v907_v42, 320  ;;  %902 = vbcast.lane.b32.xlu0 %v899_v43, 320  ;;  %v6032_v47 = vpop.f32.mrb[7].mxu1  ;;  %v971_v56 = vrot.slane %v6998_v46, %v6988_v39  ;;  %v979_v59 = vrot.slane %v6998_v46, %v6996_v45  ;;  %v987_v60 = vrot.slane %v6998_v46, %v6993_v44  ;;  %v1407_v41 = vrot.slane %v6973_v33, 5 }
 0x35d   :  { %v995_v63 = vrot.slane %v6998_v46, %v7004_v51  ;;  %v537_v2 = vand.u32 2147483647, %v7025_v62  ;;  %v955_v3 = vrot.slane %v519_v40, %v7030_v1  ;;  %v1003_v4 = vrot.slane %v6998_v46, %v7010_v54 }
 0x35e   :  { %v1011_v6 = vrot.slane %v6998_v46, %v7017_v57  ;;  %v963_v8 = vrot.slane %v6998_v46, %v6985_v38  ;;  %v1019_v9 = vrot.slane %v6998_v46, %v7030_v1  ;;  %v7047_v14 = vadd.f32 %v5849_v61, %v6998_v46 }
 0x35f   :  { %v539_v5 = vsub.f32 0.0, %v537_v2  ;;  %v535_v30 = vmax.f32 %v7025_v62, 0.0  ;;  %v1414_v40 = vrot.slane %v6975_v34, 5  ;;  %v1415_v46 = vrot.slane %v6975_v34, 6  ;;  %v6244_v62 = vld [vmem:[%s6730_s14 + $0x10] sm:$0xff]  }
 0x360   :  { %1166 = vbcast.lane.b32.xlu1 %v923_v48, 328  ;;  %918 = vbcast.lane.b32.xlu0 %v915_v49, 320  ;;  %v538_v17 = vand.u32 2147483647, %v7047_v14  ;;  %v1408_v47 = vrot.slane %v6973_v33, 6 }
 0x361   :  { %v541_v7 = vmul.f32 1.442695, %v539_v5  ;;  %v6246_v5 = vld [vmem:[%s6730_s14 + $0x18] sm:$0xff]  }
 0x362   :  { %v540_v20 = vsub.f32 0.0, %v538_v17 }
 0x363   :  { %6289 = vpow2.f32 %v541_v7 }
 0x364   :  { %1435 = vrot.lane.b32.xlu1 %v1410_v50, %s6672_s9  ;;  %926 = vbcast.lane.b32.xlu0 %v923_v48, 320  ;;  %v543_v26 = vmul.f32 1.442695, %v540_v20 }
 0x368   :  { %1437 = vrot.lane.b32.xlu1 %v1411_v52, %s6672_s9  ;;  %934 = vbcast.lane.b32.xlu0 %v931_v53, 320  ;;  %v1416_v52 = vrot.slane %v6975_v34, 7 }
 0x36c   :  { %942 = vbcast.lane.b32.xlu0 %v939_v55, 320  ;;  %974 = vbcast.lane.b32.xlu1 %v971_v56, 320 }
 0x36d   :  { %v6290_v11 = vpop.eup %6289 }
 0x36e   :  { %v545_v12 = vadd.f32 1.0, %v6290_v11  ;;  %v548_v16 = vmul.f32 -0.5, %v6290_v11  ;;  %v551_v23 = vand.u32 2147483647, %v6290_v11 }
 0x370   :  { %950 = vbcast.lane.b32.xlu0 %v947_v58, 320  ;;  %982 = vbcast.lane.b32.xlu1 %v979_v59, 320  ;;  %6291 = vlog2.f32 %v545_v12  ;;  %v549_v19 = vadd.f32 1.0, %v548_v16  ;;  %vm552_vm4 = vcmp.lt.f32.partialorder %v551_v23, 0.0004427343 }
 0x371   :  { %6293 = vpow2.f32 %v543_v26 }
 0x372   :  { %v550_v25 = vmul.f32 %v6290_v11, %v549_v19 }
 0x374   :  { %1158 = vbcast.lane.b32.xlu0 %v907_v42, 328  ;;  %990 = vbcast.lane.b32.xlu1 %v987_v60, 320 }
 0x378   :  { %1162 = vbcast.lane.b32.xlu0 %v915_v49, 328  ;;  %998 = vbcast.lane.b32.xlu1 %v995_v63, 320 }
 0x37a   :  { %v6292_v18 = vpop.eup %6291 }
 0x37b   :  { %v547_v24 = vmul.f32 0.6931472, %v6292_v18  ;;  %v6294_v49 = vpop.eup %6293 }
 0x37c   :  { %958 = vbcast.lane.b32.xlu0 %v955_v3, 320  ;;  %1006 = vbcast.lane.b32.xlu1 %v1003_v4, 320  ;;  %v557_v12 = vmul.f32 -0.5, %v6294_v49  ;;  %v560_v21 = vand.u32 2147483647, %v6294_v49 }
 0x37d   :  { %v553_v29 = vsel %vm552_vm4, %v550_v25, %v547_v24 }
 0x37e   :  { %v7064_v36 = vadd.f32 %v553_v29, %v535_v30  ;;  %v558_v19 = vadd.f32 1.0, %v557_v12  ;;  %vm561_vm5 = vcmp.lt.f32.partialorder %v560_v21, 0.0004427343 }
 0x380   :  { %1154 = vbcast.lane.b32.xlu0 %v899_v43, 328  ;;  %1014 = vbcast.lane.b32.xlu1 %v1011_v6, 320  ;;  %v575_v42 = vrot.slane %v7064_v36, %v7060_v31  ;;  %v6241_v43 = vld [vmem:[%s6740_s24] sm:$0xff]   ;;  %v7108_v11 = vmul.f32 %v7064_v36, %v6973_v33  ;;  %v568_v20 = vcombine.high %v7064_v36, %v7064_v36 }
 0x381   :  { %6046 = vmatpush3.bf16.msra.mxu1 %v6241_v43  ;;  %v559_v27 = vmul.f32 %v6294_v49, %v558_v19 }
 0x382   :  { %v591_v48 = vrot.slane %v575_v42, %v7060_v31  ;;  %v583_v50 = vcombine.high %v575_v42, %v575_v42  ;;  %6047 = vmatprep.subr.bf16.mxu1 %v8672_v0  ;;  %v805_v18 = vrot.slane %v7108_v11, %v7060_v31 }
 0x384   :  { %1190 = vbcast.lane.b32.xlu1 %v971_v56, 328  ;;  %966 = vbcast.lane.b32.xlu0 %v963_v8, 320  ;;  %v554_v56 = vadd.f32 1.0, %v6294_v49  ;;  %v605_v61 = vrot.slane %v583_v50, %v7060_v31  ;;  %v813_v25 = vcombine.high %v805_v18, %v805_v18  ;;  %v821_v26 = vrot.slane %v805_v18, %v7060_v31 }
 0x386   :  { %6295 = vlog2.f32 %v554_v56  ;;  %v835_v36 = vrot.slane %v813_v25, %v7060_v31 }
 0x388   :  { %1194 = vbcast.lane.b32.xlu1 %v979_v59, 328  ;;  %1170 = vbcast.lane.b32.xlu0 %v931_v53, 328  ;;  %v1409_v53 = vrot.slane %v6973_v33, 7  ;;  %v6242_v59 = vld [vmem:[%s6730_s14 + $0x8] sm:$0xff]   ;;  %v1031_v49 = vrot.slane %v835_v36, %v6985_v38  ;;  %s8727_s14 = sld [smem:[#allocation23_spill]] }
 0x389   :  { %6036 = vmatpush3.bf16.msra.mxu0 %v6242_v59 }
 0x38a   :  { %6037 = vmatprep.subr.bf16.mxu0 %v8672_v0 }
 0x38c   :  { %1022 = vbcast.lane.b32.xlu1 %v1019_v9, 320  ;;  %1174 = vbcast.lane.b32.xlu0 %v939_v55, 328  ;;  %v669_v55 = vrot.slane %v591_v48, %v6985_v38 }
 0x38d   :  { %6038 = vmatpush3.bf16.msra.mxu0 %v6244_v62 }
 0x38e   :  { %6039 = vmatprep.subr.bf16.mxu0 %v8672_v0 }
 0x390   :  { %1423 = vrot.lane.b32.xlu1 %v1405_v10, %s6672_s9  ;;  %1178 = vbcast.lane.b32.xlu0 %v947_v58, 328  ;;  %v7087_v58 = vld [vmem:[%s6720_s3] sm:$0xff]  ;;  %s8724_s3 = sld [smem:[#allocation20_spill]] }
 0x391   :  { %v746_v2 = vmul.f32 %v669_v55, %v7087_v58  ;;  %6040 = vmatpush3.bf16.msra.mxu0 %v6246_v5 }
 0x392   :  { %6057 = vmatprep.subr.bf16.mxu0 %v8672_v0 }
 0x393   :  { %v762_v7 = vmul.f32 1.442695, %v746_v2 }
 0x394   :  { %1198 = vbcast.lane.b32.xlu1 %v987_v60, 328  ;;  %1182 = vbcast.lane.b32.xlu0 %v955_v3, 328  ;;  %v6243_v60 = vld [vmem:[%s6740_s24 + $0x8] sm:$0xff]   ;;  %v613_v3 = vcombine.high %v591_v48, %v591_v48  ;;  %v843_v48 = vcombine.high %v821_v26, %v821_v26 }
 0x395   :  { %6048 = vmatpush3.bf16.msra.mxu1 %v6243_v60  ;;  %6297 = vpow2.f32 %v762_v7 }
 0x396   :  { %6049 = vmatprep.subr.bf16.mxu1 %v8672_v0 }
 0x398   :  { %1202 = vbcast.lane.b32.xlu1 %v995_v63, 328  ;;  %1419 = vrot.lane.b32.xlu0 %v1403_v13, %s6672_s9  ;;  %v6245_v63 = vld [vmem:[%s6740_s24 + $0x10] sm:$0xff]   ;;  %v6296_v13 = vpop.eup %6295 }
 0x399   :  { %6050 = vmatpush3.bf16.msra.mxu1 %v6245_v63  ;;  %v556_v22 = vmul.f32 0.6931472, %v6296_v13  ;;  %v798_v63 = vcombine.high %v7108_v11, %v7108_v11  ;;  %v845_v13 = vcombine.high %v835_v36, %v835_v36 }
 0x39a   :  { %6051 = vmatprep.subr.bf16.mxu1 %v8672_v0 }
 0x39b   :  { %v562_v29 = vsel %vm561_vm5, %v559_v27, %v556_v22 }
 0x39c   :  { %1206 = vbcast.lane.b32.xlu1 %v1003_v4, 328  ;;  %1421 = vrot.lane.b32.xlu0 %v1404_v15, %s6672_s9  ;;  %v673_v4 = vrot.slane %v605_v61, %v6985_v38 }
 0x39e   :  { %v747_v10 = vmul.f32 %v673_v4, %v7087_v58  ;;  %v1035_v4 = vrot.slane %v843_v48, %v6985_v38 }
 0x39f   :  { %v6298_v30 = vpop.eup %6297 }
 0x3a0   :  { %1210 = vbcast.lane.b32.xlu1 %v1011_v6, 328  ;;  %1186 = vbcast.lane.b32.xlu0 %v963_v8, 328  ;;  %v6247_v6 = vld [vmem:[%s6740_s24 + $0x18] sm:$0xff]   ;;  %v615_v8 = vcombine.high %v605_v61, %v605_v61  ;;  %v764_v15 = vmul.f32 1.442695, %v747_v10  ;;  %s8728_s24 = sld [smem:[#allocation24_spill]] }
 0x3a1   :  { %6052 = vmatpush3.bf16.msra.mxu1 %v6247_v6 }
 0x3a2   :  { %6071 = vmatprep.subr.bf16.mxu1 %v8672_v0  ;;  %v681_v17 = vrot.slane %v615_v8, %v6985_v38  ;;  %6299 = vpow2.f32 %v764_v15  ;;  %v812_v15 = vrot.slane %v798_v63, %v7060_v31 }
 0x3a4   :  { %1214 = vbcast.lane.b32.xlu1 %v1019_v9, 328  ;;  %1417 = vrot.lane.b32.xlu0 %v6973_v33, %s6672_s9  ;;  %v677_v9 = vrot.slane %v613_v3, %v6985_v38  ;;  %v749_v24 = vmul.f32 %v681_v17, %v7087_v58 }
 0x3a6   :  { %v748_v16 = vmul.f32 %v677_v9, %v7087_v58 }
 0x3a8   :  { %1439 = vrot.lane.b32.xlu1 %v1412_v28, %s6672_s9  ;;  %1433 = vrot.lane.b32.xlu0 %v6975_v34, %s6672_s9  ;;  %v766_v23 = vmul.f32 1.442695, %v748_v16  ;;  %v582_v28 = vrot.slane %v568_v20, %v7060_v31 }
 0x3aa   :  { %6301 = vpow2.f32 %v766_v23 }
 0x3ac   :  { %1441 = vrot.lane.b32.xlu1 %v1413_v32, %s6672_s9  ;;  %1425 = vrot.lane.b32.xlu0 %v1406_v35, %s6672_s9  ;;  %v768_v32 = vmul.f32 1.442695, %v749_v24  ;;  %v536_v35 = vmax.f32 %v7047_v14, 0.0  ;;  %v5850_v14 = vld [vmem:[%s6725_s8] ss:$0 sm:$0xff]  ;;  %v6300_v55 = vpop.eup %6299  ;;  %s8726_s8 = sld [smem:[#allocation25_spill]] }
 0x3ad   :  { %v7145_v2 = vmul.f32 %v5850_v14, %v6975_v34  ;;  %v7148_v3 = vmul.f32 %v5850_v14, %v6973_v33 }
 0x3ae   :  { %v7127_v43 = vadd.f32 %v562_v29, %v536_v35  ;;  %6303 = vpow2.f32 %v768_v32  ;;  %v7183_v35 = vrot.slane %v812_v15, %v7060_v31 }
 0x3b0   :  { %1443 = vrot.lane.b32.xlu1 %v1414_v40, %s6672_s9  ;;  %1427 = vrot.lane.b32.xlu0 %v1407_v41, %s6672_s9  ;;  %v1027_v40 = vrot.slane %v821_v26, %v6985_v38  ;;  %v7125_v41 = vrot.slane %v582_v28, %v7060_v31  ;;  %v7139_v60 = vmul.f32 %v7127_v43, %v6975_v34 }
 0x3b1   :  { %v624_v33 = vrot.slane %v7127_v43, %v7060_v31 }
 0x3b2   :  { %v854_v34 = vrot.slane %v7139_v60, %v7060_v31 }
 0x3b3   :  { %v640_v27 = vrot.slane %v624_v33, %v7060_v31 }
 0x3b4   :  { %1445 = vrot.lane.b32.xlu1 %v1415_v46, %s6672_s9  ;;  %1429 = vrot.lane.b32.xlu0 %v1408_v47, %s6672_s9  ;;  %v1120_v47 = vmul.f32 0.0, %v6298_v30  ;;  %v6302_v8 = vpop.eup %6301  ;;  %v862_v26 = vcombine.high %v854_v34, %v854_v34  ;;  %v1039_v30 = vrot.slane %v845_v13, %v6985_v38 }
 0x3b8   :  { %1447 = vrot.lane.b32.xlu1 %v1416_v52, %s6672_s9  ;;  %1431 = vrot.lane.b32.xlu0 %v1409_v53, %s6672_s9  ;;  %v685_v52 = vrot.slane %v7125_v41, %v6985_v38  ;;  %v584_v53 = vcombine.high %v582_v28, %v582_v28  ;;  %v6304_v23 = vpop.eup %6303 }
 0x3ba   :  { %v750_v6 = vmul.f32 %v685_v52, %v7087_v58  ;;  %v7155_v7 = vrot.slane %v584_v53, %v7060_v31  ;;  %v7197_v53 = vrot.slane %v862_v26, %v7060_v31 }
 0x3bc   :  { %v770_v20 = vmul.f32 1.442695, %v750_v6  ;;  %v689_v21 = vrot.slane %v7155_v7, %v6985_v38  ;;  %v7210_v6 = vrot.slane %v854_v34, %v7060_v31  ;;  %v894_v34 = vcombine.high %v7197_v53, %v7197_v53 }
 0x3be   :  { %6305 = vpow2.f32 %v770_v20  ;;  %v751_v48 = vmul.f32 %v689_v21, %v7087_v58 }
 0x3c8   :  { %v6306_v13 = vpop.eup %6305 }
 0x3ce   :  { %v911_v42 = vpop.permute.xlu1 %910  ;;  %v903_v37 = vpop.permute.xlu0 %902 }
 0x3cf   :  { %v1104_v46 = vmul.f32 %v1027_v40, %v903_v37  ;;  %v1105_v61 = vmul.f32 %v1031_v49, %v911_v42  ;;  %v814_v40 = vcombine.high %v812_v15, %v812_v15  ;;  %v632_v42 = vcombine.high %v624_v33, %v624_v33 }
 0x3d0   :  { %v617_v37 = vcombine.high %v7127_v43, %v7127_v43  ;;  %v614_v49 = vcombine.high %v7125_v41, %v7125_v41  ;;  %v772_v33 = vmul.f32 1.442695, %v751_v48  ;;  %v1043_v15 = vrot.slane %v7183_v35, %v6985_v38 }
 0x3d1   :  { %v7130_v50 = vadd.f32 %v1120_v47, %v1104_v46  ;;  %v616_v48 = vcombine.high %v7155_v7, %v7155_v7 }
 0x3d2   :  { %v7135_v56 = vpop.permute.xlu1 %1166  ;;  %v919_v59 = vpop.permute.xlu0 %918  ;;  %6307 = vpow2.f32 %v772_v33 }
 0x3d3   :  { %v1124_v62 = vmul.f32 %v6300_v55, %v7130_v50  ;;  %v1106_v11 = vmul.f32 %v1035_v4, %v919_v59  ;;  %v701_v55 = vrot.slane %v640_v27, %v6985_v38  ;;  %v7207_v4 = vrot.slane %v814_v40, %v7060_v31 }
 0x3d5   :  { %v7151_v5 = vadd.f32 %v1124_v62, %v1105_v61  ;;  %v844_v62 = vcombine.high %v7183_v35, %v7183_v35  ;;  %v662_v35 = vcombine.high %v640_v27, %v640_v27  ;;  %v1047_v40 = vrot.slane %v7207_v4, %v6985_v38 }
 0x3d6   :  { %v7157_v9 = vpop.permute.xlu1 %1435  ;;  %v927_v10 = vpop.permute.xlu0 %926  ;;  %v7246_v27 = vrot.slane %v894_v34, %v6985_v38  ;;  %v846_v0 = vcombine.high %v7207_v4, %v7207_v4 }
 0x3d7   :  { %v1128_v12 = vmul.f32 %v6302_v8, %v7151_v5  ;;  %v1107_v47 = vmul.f32 %v1039_v30, %v927_v10  ;;  %v847_v8 = vcombine.high %v7139_v60, %v7139_v60  ;;  %v654_v10 = vrot.slane %v632_v42, %v7060_v31 }
 0x3d8   :  { %v754_v60 = vmul.f32 %v701_v55, %v7087_v58  ;;  %v1063_v30 = vrot.slane %v7197_v53, %v6985_v38  ;;  %v892_v42 = vcombine.high %v7210_v6, %v7210_v6  ;;  %v709_v41 = vrot.slane %v662_v35, %v6985_v38 }
 0x3d9   :  { %v7168_v19 = vadd.f32 %v1128_v12, %v1106_v11  ;;  %v693_v11 = vrot.slane %v614_v49, %v6985_v38  ;;  %v631_v12 = vrot.slane %v617_v37, %v7060_v31  ;;  %v861_v37 = vrot.slane %v847_v8, %v7060_v31 }
 0x3da   :  { %v7173_v24 = vpop.permute.xlu1 %1437  ;;  %v7175_v25 = vpop.permute.xlu0 %934  ;;  %v778_v8 = vmul.f32 1.442695, %v754_v60  ;;  %v7255_v63 = vrot.slane %v892_v42, %v6985_v38 }
 0x3db   :  { %v1132_v32 = vmul.f32 %v6304_v23, %v7168_v19  ;;  %v633_v49 = vcombine.high %v631_v12, %v631_v12  ;;  %v664_v23 = vcombine.high %v654_v10, %v654_v10  ;;  %v647_v7 = vrot.slane %v631_v12, %v7060_v31 }
 0x3dc   :  { %v7258_v34 = vrot.slane %v861_v37, %v7060_v31  ;;  %v1108_v35 = vmul.f32 %v1043_v15, %v7175_v25  ;;  %v863_v42 = vcombine.high %v861_v37, %v861_v37  ;;  %6309 = vpow2.f32 %v778_v8 }
 0x3dd   :  { %v1134_v61 = vadd.f32 %v1132_v32, %v1107_v47  ;;  %v7232_v32 = vrot.slane %v844_v62, %v6985_v38  ;;  %v705_v47 = vrot.slane %v654_v10, %v6985_v38 }
 0x3de   :  { %v7192_v14 = vpop.permute.xlu0 %942  ;;  %v7194_v52 = vpop.permute.xlu1 %974 }
 0x3df   :  { %v1219_v26 = vmul.f32 %v7135_v56, %v1134_v61  ;;  %v752_v56 = vmul.f32 %v693_v11, %v7087_v58  ;;  %v755_v59 = vmul.f32 %v705_v47, %v7087_v58  ;;  %v1136_v43 = vmul.f32 %v6306_v13, %v1134_v61 }
 0x3e0   :  { %v756_v47 = vmul.f32 %v709_v41, %v7087_v58  ;;  %v713_v61 = vrot.slane %v664_v23, %v6985_v38  ;;  %v663_v13 = vcombine.high %v647_v7, %v647_v7  ;;  %v7278_v41 = vrot.slane %v846_v0, %v6985_v38 }
 0x3e1   :  { %v1253_v33 = vsel %vm481_vm3, %v1219_v26, 0.0  ;;  %v774_v60 = vmul.f32 1.442695, %v752_v56  ;;  %v697_v26 = vrot.slane %v616_v48, %v6985_v38  ;;  %v7270_v48 = vadd.f32 %v1136_v43, %v1108_v35 }
 0x3e2   :  { %v7220_v20 = vpop.permute.xlu0 %950  ;;  %v7222_v21 = vpop.permute.xlu1 %982  ;;  %v7289_v0 = vrot.slane %v863_v42, %v7060_v31 }
 0x3e3   :  { %6311 = vpow2.f32 %v774_v60  ;;  %v753_v15 = vmul.f32 %v697_v26, %v7087_v58  ;;  %v757_v60 = vmul.f32 %v713_v61, %v7087_v58  ;;  %v725_v26 = vrot.slane %v663_v13, %v6985_v38 }
 0x3e6   :  { %v1159_v55 = vpop.permute.xlu0 %1158  ;;  %v7243_v62 = vpop.permute.xlu1 %990 }
 0x3e7   :  { %v1217_v11 = vmul.f32 %v1159_v55, %v7151_v5  ;;  %v661_v5 = vrot.slane %v633_v49, %v7060_v31  ;;  %v1254_v55 = vrot.slane %v1253_v33, 4  ;;  %v717_v49 = vrot.slane %v647_v7, %v6985_v38 }
 0x3e9   :  { %v1239_v10 = vsel %vm481_vm3, %v1217_v11, 0.0  ;;  %v780_v11 = vmul.f32 1.442695, %v755_v59  ;;  %v665_v37 = vcombine.high %v661_v5, %v661_v5  ;;  %v1255_v8 = vadd.f32 %v1254_v55, %v1253_v33  ;;  %v6308_v59 = vpop.eup %6307 }
 0x3ea   :  { %v1163_v12 = vpop.permute.xlu0 %1162  ;;  %v7265_v46 = vpop.permute.xlu1 %998  ;;  %v1240_v56 = vrot.slane %v1239_v10, 4  ;;  %v721_v43 = vrot.slane %v661_v5, %v6985_v38  ;;  %v1140_v35 = vmul.f32 %v6308_v59, %v7270_v48  ;;  %v758_v5 = vmul.f32 %v717_v49, %v7087_v58 }
 0x3eb   :  { %v1218_v36 = vmul.f32 %v1163_v12, %v7168_v19  ;;  %6313 = vpow2.f32 %v780_v11  ;;  %v776_v12 = vmul.f32 1.442695, %v753_v15  ;;  %v729_v29 = vrot.slane %v665_v37, %v6985_v38  ;;  %v6310_v15 = vpop.eup %6309 }
 0x3ec   :  { %v1241_v33 = vadd.f32 %v1240_v56, %v1239_v10  ;;  %v1256_v10 = vrot.slane %v1255_v8, 2  ;;  %v759_v42 = vmul.f32 %v721_v43, %v7087_v58  ;;  %v1059_v11 = vrot.slane %v7210_v6, %v6985_v38 }
 0x3ed   :  { %v1246_v25 = vsel %vm481_vm3, %v1218_v36, 0.0  ;;  %v782_v36 = vmul.f32 1.442695, %v756_v47  ;;  %v1109_v47 = vmul.f32 %v1047_v40, %v7192_v14  ;;  %v784_v49 = vmul.f32 1.442695, %v757_v60 }
 0x3ee   :  { %v1247_v28 = vrot.slane %v1246_v25, 4  ;;  %v7275_v19 = vpop.permute.xlu0 %958  ;;  %v7280_v23 = vpop.permute.xlu1 %1006  ;;  %v1242_v4 = vrot.slane %v1241_v33, 2  ;;  %v786_v59 = vmul.f32 1.442695, %v758_v5  ;;  %v761_v16 = vmul.f32 %v729_v29, %v7087_v58 }
 0x3ef   :  { %6315 = vpow2.f32 %v782_v36  ;;  %v1142_v40 = vadd.f32 %v1140_v35, %v1109_v47  ;;  %v1257_v60 = vadd.f32 %v1256_v10, %v1255_v8  ;;  %v788_v22 = vmul.f32 1.442695, %v759_v42 }
 0x3f0   :  { %v1248_v55 = vadd.f32 %v1247_v28, %v1246_v25  ;;  %v893_v28 = vcombine.high %v7258_v34, %v7258_v34  ;;  %v760_v25 = vmul.f32 %v725_v26, %v7087_v58  ;;  %6317 = vpow2.f32 %v776_v12  ;;  %v6312_v26 = vpop.eup %6311 }
 0x3f1   :  { %v1121_v17 = vmul.f32 0.0, %v6310_v15  ;;  %6319 = vpow2.f32 %v784_v49  ;;  %v1243_v35 = vadd.f32 %v1242_v4, %v1241_v33  ;;  %v1144_v12 = vmul.f32 %v6312_v26, %v1142_v40 }
 0x3f2   :  { %v1155_v61 = vpop.permute.xlu0 %1154  ;;  %v7297_v13 = vpop.permute.xlu1 %1014  ;;  %v1249_v14 = vrot.slane %v1248_v55, 2  ;;  %v790_v36 = vmul.f32 1.442695, %v760_v25  ;;  %v895_v58 = vcombine.high %v7289_v0, %v7289_v0  ;;  %6321 = vpow2.f32 %v786_v59 }
 0x3f3   :  { %v1216_v56 = vmul.f32 %v1155_v61, %v7130_v50  ;;  %v1079_v50 = vrot.slane %v7289_v0, %v6985_v38  ;;  %v792_v29 = vmul.f32 1.442695, %v761_v16  ;;  %v1110_v8 = vmul.f32 %v7232_v32, %v7220_v20 }
 0x3f4   :  { %v1250_v47 = vadd.f32 %v1249_v14, %v1248_v55  ;;  %v1083_v10 = vrot.slane %v893_v28, %v6985_v38  ;;  %v1258_v49 = vrot.slane %v1257_v60, 1  ;;  %6323 = vpow2.f32 %v788_v22 }
 0x3f5   :  { %v1232_v37 = vsel %vm481_vm3, %v1216_v56, 0.0  ;;  %v6314_v7 = vpop.eup %6313  ;;  %6325 = vpow2.f32 %v790_v36  ;;  %v1146_v55 = vadd.f32 %v1144_v12, %v1110_v8  ;;  %v1244_v0 = vrot.slane %v1243_v35, 1 }
 0x3f6   :  { %v1233_v43 = vrot.slane %v1232_v37, 4  ;;  %v1191_v61 = vpop.permute.xlu1 %1190  ;;  %v967_v6 = vpop.permute.xlu0 %966  ;;  %v1251_v20 = vrot.slane %v1250_v47, 1  ;;  %v1114_v32 = vmul.f32 %v7255_v63, %v7222_v21  ;;  %v1087_v22 = vrot.slane %v895_v58, %v6985_v38 }
 0x3f7   :  { %v1112_v18 = vmul.f32 %v1059_v11, %v967_v6  ;;  %6327 = vpow2.f32 %v792_v29  ;;  %v1111_v53 = vmul.f32 %v7278_v41, %v7275_v19  ;;  %v1259_v15 = vadd.f32 %v1258_v49, %v1257_v60 }
 0x3f8   :  { %v1234_v56 = vadd.f32 %v1233_v43, %v1232_v37  ;;  %v8703_v63 = vrot.slane %v7258_v34, %v6985_v38  ;;  %v1117_v12 = vmul.f32 %v1079_v50, %v7280_v23  ;;  %v8704_v34 = vrot.slane %v7148_v3, 3 }
 0x3f9   :  { %v7310_v5 = vadd.f32 %v1121_v17, %v1112_v18  ;;  %v1113_v17 = vmul.f32 %v1063_v30, %v7194_v52  ;;  %v6316_v25 = vpop.eup %6315  ;;  %v1115_v52 = vmul.f32 %v7246_v27, %v7243_v62  ;;  %v1245_v62 = vadd.f32 %v1244_v0, %v1243_v35 }
 0x3fa   :  { %v1195_v42 = vpop.permute.xlu1 %1194  ;;  %v1171_v11 = vpop.permute.xlu0 %1170  ;;  %v1235_v16 = vrot.slane %v1234_v56, 2  ;;  %v1116_v21 = vmul.f32 %v8703_v63, %v7265_v46  ;;  %v1252_v27 = vadd.f32 %v1251_v20, %v1250_v47  ;;  %v1388_v46 = vadd.f32 %v8704_v34, %v1259_v15 }
 0x3fb   :  { %v1125_v18 = vmul.f32 %v6314_v7, %v7310_v5  ;;  %v1220_v33 = vmul.f32 %v1171_v11, %v7270_v48  ;;  %v6318_v4 = vpop.eup %6317  ;;  %v7341_v35 = vmul.f32 %v1083_v10, %v7297_v13 }
 0x3fc   :  { %v1236_v43 = vadd.f32 %v1235_v16, %v1234_v56  ;;  %v1148_v6 = vmul.f32 %v6318_v4, %v1146_v55  ;;  %v6320_v26 = vpop.eup %6319 }
 0x3fd   :  { %v1127_v28 = vadd.f32 %v1125_v18, %v1113_v17  ;;  %v1260_v30 = vsel %vm481_vm3, %v1220_v33, 0.0  ;;  %v6322_v56 = vpop.eup %6321  ;;  %v8705_v33 = vrot.slane %v7148_v3, 1 }
 0x3fe   :  { %v1023_v48 = vpop.permute.xlu1 %1022  ;;  %v1175_v7 = vpop.permute.xlu0 %1174  ;;  %v1261_v36 = vrot.slane %v1260_v30, 4  ;;  %v1237_v50 = vrot.slane %v1236_v43, 1 }
 0x3ff   :  { %v1129_v14 = vmul.f32 %v6316_v25, %v1127_v28  ;;  %v1225_v37 = vmul.f32 %v1191_v61, %v1127_v28  ;;  %v1221_v59 = vmul.f32 %v1175_v7, %v1142_v40  ;;  %v1150_v40 = vadd.f32 %v1148_v6, %v1111_v53  ;;  %v6324_v49 = vpop.eup %6323 }
 0x400   :  { %v1386_v23 = vadd.f32 %v8705_v33, %v1245_v62  ;;  %v6326_v16 = vpop.eup %6325  ;;  %v1262_v20 = vadd.f32 %v1261_v36, %v1260_v30  ;;  %v8706_v28 = vrot.slane %v7148_v3, 2  ;;  %v7353_v4 = vmul.f32 %v1087_v22, %v1023_v48 }
 0x401   :  { %v1131_v19 = vadd.f32 %v1129_v14, %v1114_v32  ;;  %v1295_v41 = vsel %vm481_vm3, %v1225_v37, 0.0  ;;  %v1267_v60 = vsel %vm481_vm3, %v1221_v59, 0.0  ;;  %v7351_v15 = vpop.eup %6327  ;;  %v1238_v6 = vadd.f32 %v1237_v50, %v1236_v43 }
 0x402   :  { %v1296_v58 = vrot.slane %v1295_v41, 4  ;;  %v1424_v29 = vpop.permute.xlu1 %1423  ;;  %v1179_v61 = vpop.permute.xlu0 %1178  ;;  %v1268_v18 = vrot.slane %v1267_v60, 4  ;;  %v7348_v25 = vadd.f32 %v8706_v28, %v1252_v27  ;;  %v1263_v36 = vrot.slane %v1262_v20, 2 }
 0x403   :  { %v1226_v47 = vmul.f32 %v1195_v42, %v1131_v19  ;;  %v1222_v8 = vmul.f32 %v1179_v61, %v1146_v55  ;;  %v1133_v11 = vmul.f32 %v6320_v26, %v1131_v19  ;;  %v1468_v42 = vmul.f32 %v1424_v29, %v1388_v46 }
 0x404   :  { %v1297_v17 = vadd.f32 %v1296_v58, %v1295_v41  ;;  %v1269_v59 = vadd.f32 %v1268_v18, %v1267_v60  ;;  %v1385_v43 = vadd.f32 %v7148_v3, %v1238_v6  ;;  %v7359_v33 = vadd.f32 %v1263_v36, %v1262_v20 }
 0x405   :  { %v1302_v0 = vsel %vm481_vm3, %v1226_v47, 0.0  ;;  %v1135_v32 = vadd.f32 %v1133_v11, %v1115_v52  ;;  %v1274_v55 = vsel %vm481_vm3, %v1222_v8, 0.0  ;;  %v1492_v58 = vpack.c.bf16 %v1468_v42, %v1468_v42 }
 0x406   :  { %v1298_v13 = vrot.slane %v1297_v17, 2  ;;  %v1303_v10 = vrot.slane %v1302_v0, 4  ;;  %v1199_v53 = vpop.permute.xlu1 %1198  ;;  %v1183_v7 = vpop.permute.xlu0 %1182  ;;  %v1275_v62 = vrot.slane %v1274_v55, 4  ;;  %v1270_v47 = vrot.slane %v1269_v59, 2 }
 0x407   :  { %v1227_v63 = vmul.f32 %v1199_v53, %v1135_v32  ;;  %v1223_v14 = vmul.f32 %v1183_v7, %v1150_v40  ;;  %v1137_v37 = vmul.f32 %v6322_v56, %v1135_v32 }
 0x408   :  { %v1299_v30 = vadd.f32 %v1298_v13, %v1297_v17  ;;  %v1304_v52 = vadd.f32 %v1303_v10, %v1302_v0  ;;  %v1276_v8 = vadd.f32 %v1275_v62, %v1274_v55  ;;  %v7361_v10 = vunpack.c.l.b16 %v1492_v58 }
 0x409   :  { %v1309_v27 = vsel %vm481_vm3, %v1227_v63, 0.0  ;;  %v1281_v26 = vsel %vm481_vm3, %v1223_v14, 0.0  ;;  %v1139_v19 = vadd.f32 %v1137_v37, %v1116_v21  ;;  %v7363_v14 = vadd.f32 %v1270_v47, %v1269_v59 }
 0x40a   :  { %v1305_v41 = vrot.slane %v1304_v52, 2  ;;  %v1310_v34 = vrot.slane %v1309_v27, 4  ;;  %v1203_v46 = vpop.permute.xlu1 %1202  ;;  %v1420_v22 = vpop.permute.xlu0 %1419  ;;  %v1300_v48 = vrot.slane %v1299_v30, 1  ;;  %v1282_v29 = vrot.slane %v1281_v26, 4 }
 0x40b   :  { %v1228_v61 = vmul.f32 %v1203_v46, %v1139_v19  ;;  %v1141_v40 = vmul.f32 %v6324_v49, %v1139_v19  ;;  %v1466_v17 = vmul.f32 %v1420_v22, %v1386_v23  ;;  %v1277_v23 = vrot.slane %v1276_v8, 2 }
 0x40c   :  { %v1306_v56 = vadd.f32 %v1305_v41, %v1304_v52  ;;  %v1311_v60 = vadd.f32 %v1310_v34, %v1309_v27  ;;  %v1301_v13 = vadd.f32 %v1300_v48, %v1299_v30  ;;  %v1283_v49 = vadd.f32 %v1282_v29, %v1281_v26 }
 0x40d   :  { %v1316_v11 = vsel %vm481_vm3, %v1228_v61, 0.0  ;;  %v1143_v21 = vadd.f32 %v1141_v40, %v1117_v12  ;;  %v1490_v12 = vpack.c.bf16 %v1466_v17, %v1466_v17  ;;  %v8707_v37 = vrot.slane %v7145_v2, 2 }
 0x40e   :  { %v1307_v18 = vrot.slane %v1306_v56, 1  ;;  %v1312_v50 = vrot.slane %v1311_v60, 2  ;;  %v1317_v0 = vrot.slane %v1316_v11, 4  ;;  %v1207_v32 = vpop.permute.xlu1 %1206  ;;  %v1422_v28 = vpop.permute.xlu0 %1421  ;;  %v1284_v19 = vrot.slane %v1283_v49, 2 }
 0x40f   :  { %v1229_v42 = vmul.f32 %v1207_v32, %v1143_v21  ;;  %v1145_v55 = vmul.f32 %v6326_v16, %v1143_v21  ;;  %v8708_v16 = vrot.slane %v7145_v2, 1  ;;  %v1467_v46 = vmul.f32 %v1422_v28, %v7348_v25 }
 0x410   :  { %v1308_v53 = vadd.f32 %v1307_v18, %v1306_v56  ;;  %v1313_v7 = vadd.f32 %v1312_v50, %v1311_v60  ;;  %v1318_v63 = vadd.f32 %v1317_v0, %v1316_v11  ;;  %v7376_v40 = vadd.f32 %v1277_v23, %v1276_v8 }
 0x411   :  { %v1323_v20 = vsel %vm481_vm3, %v1229_v42, 0.0  ;;  %v1147_v27 = vadd.f32 %v1145_v55, %v7341_v35  ;;  %v1394_v59 = vadd.f32 %v8708_v16, %v1301_v13  ;;  %v7379_v17 = vunpack.c.l.b16 %v1490_v12 }
 0x412   :  { %v1395_v52 = vadd.f32 %v8707_v37, %v1308_v53  ;;  %v1319_v6 = vrot.slane %v1318_v63, 2  ;;  %v1324_v62 = vrot.slane %v1323_v20, 4  ;;  %v1211_v30 = vpop.permute.xlu1 %1210  ;;  %v1187_v26 = vpop.permute.xlu0 %1186  ;;  %v1314_v36 = vrot.slane %v1313_v7, 1 }
 0x413   :  { %v1224_v41 = vmul.f32 %v1187_v26, %v7310_v5  ;;  %v1230_v22 = vmul.f32 %v1211_v30, %v1147_v27  ;;  %v1149_v61 = vmul.f32 %v7351_v15, %v1147_v27  ;;  %v1474_v21 = vmul.f32 %v7157_v9, %v1394_v59 }
 0x414   :  { %v1475_v58 = vmul.f32 %v7173_v24, %v1395_v52  ;;  %v1325_v34 = vadd.f32 %v1324_v62, %v1323_v20  ;;  %v1320_v48 = vadd.f32 %v1319_v6, %v1318_v63  ;;  %v1315_v35 = vadd.f32 %v1314_v36, %v1313_v7 }
 0x415   :  { %v1288_v29 = vsel %vm481_vm3, %v1224_v41, 0.0  ;;  %v1330_v5 = vsel %vm481_vm3, %v1230_v22, 0.0  ;;  %v1151_v25 = vadd.f32 %v1149_v61, %v7353_v4  ;;  %v7383_v50 = vadd.f32 %v1284_v19, %v1283_v49 }
 0x416   :  { %v1326_v56 = vrot.slane %v1325_v34, 2  ;;  %v1289_v47 = vrot.slane %v1288_v29, 4  ;;  %v1215_v60 = vpop.permute.xlu1 %1214  ;;  %v1418_v11 = vpop.permute.xlu0 %1417  ;;  %v1331_v24 = vrot.slane %v1330_v5, 4  ;;  %v1499_v18 = vpack.c.bf16 %v1475_v58, %v1475_v58 }
 0x417   :  { %v1491_v15 = vpack.c.bf16 %v1467_v46, %v1467_v46  ;;  %v1231_v32 = vmul.f32 %v1215_v60, %v1151_v25  ;;  %v8709_v28 = vrot.slane %v7145_v2, 3  ;;  %v1321_v42 = vrot.slane %v1320_v48, 1 }
 0x418   :  { %v1290_v0 = vadd.f32 %v1289_v47, %v1288_v29  ;;  %v1332_v8 = vadd.f32 %v1331_v24, %v1330_v5  ;;  %v1327_v53 = vadd.f32 %v1326_v56, %v1325_v34  ;;  %v1465_v63 = vmul.f32 %v1418_v11, %v1385_v43 }
 0x419   :  { %v1396_v13 = vadd.f32 %v8709_v28, %v1315_v35  ;;  %v1265_v4 = vrot.slane %v7359_v33, 1  ;;  %v1337_v9 = vsel %vm481_vm3, %v1231_v32, 0.0  ;;  %v1498_v20 = vpack.c.bf16 %v1474_v21, %v1474_v21 }
 0x41a   :  { %v1291_v7 = vrot.slane %v1290_v0, 2  ;;  %v1440_v55 = vpop.permute.xlu1 %1439  ;;  %v1434_v23 = vpop.permute.xlu0 %1433  ;;  %v1333_v12 = vrot.slane %v1332_v8, 2  ;;  %v1544_v37 = vrot.slane %v7379_v17, 7  ;;  %v1338_v6 = vrot.slane %v1337_v9, 4 }
 0x41b   :  { %v1476_v49 = vmul.f32 %v1440_v55, %v1396_v13  ;;  %v1322_v62 = vadd.f32 %v1321_v42, %v1320_v48  ;;  %v7390_v30 = vunpack.c.l.b16 %v1499_v18  ;;  %v7392_v27 = vunpack.c.l.b16 %v1491_v15 }
 0x41c   :  { %v1292_v52 = vadd.f32 %v1291_v7, %v1290_v0  ;;  %v1334_v26 = vadd.f32 %v1333_v12, %v1332_v8  ;;  %v1266_v43 = vadd.f32 %v1265_v4, %v7359_v33  ;;  %v1339_v19 = vadd.f32 %v1338_v6, %v1337_v9 }
 0x41d   :  { %v1489_v41 = vpack.c.bf16 %v1465_v63, %v1465_v63  ;;  %v8710_v59 = vrot.slane %v7145_v2, 4  ;;  %v1500_v46 = vpack.c.bf16 %v1476_v49, %v1476_v49  ;;  %v1537_v22 = vunpack.c.l.b16 %v1498_v20 }
 0x41e   :  { %v1293_v36 = vrot.slane %v1292_v52, 1  ;;  %v1442_v16 = vpop.permute.xlu1 %1441  ;;  %v1426_v34 = vpop.permute.xlu0 %1425  ;;  %v8711_v48 = vrot.slane %v7148_v3, 4  ;;  %v1328_v61 = vrot.slane %v1327_v53, 1  ;;  %v1340_v35 = vrot.slane %v1339_v19, 2 }
 0x41f   :  { %v1397_v58 = vadd.f32 %v8710_v59, %v1322_v62  ;;  %v1272_v47 = vrot.slane %v7363_v14, 1  ;;  %v1567_v33 = vrot.slane %v7390_v30, 6  ;;  %v1335_v17 = vrot.slane %v1334_v26, 1 }
 0x420   :  { %v1389_v29 = vadd.f32 %v8711_v48, %v1266_v43  ;;  %v1294_v56 = vadd.f32 %v1293_v36, %v1292_v52  ;;  %v1329_v11 = vadd.f32 %v1328_v61, %v1327_v53  ;;  %v1341_v24 = vadd.f32 %v1340_v35, %v1339_v19 }
 0x421   :  { %v1477_v5 = vmul.f32 %v1442_v16, %v1397_v58  ;;  %v1528_v25 = vunpack.c.l.b16 %v1489_v41  ;;  %v1273_v15 = vadd.f32 %v1272_v47, %v7363_v14  ;;  %v8712_v32 = vrot.slane %v7145_v2, 5 }
 0x422   :  { %v1469_v60 = vmul.f32 %v1426_v34, %v1389_v29  ;;  %v1393_v21 = vadd.f32 %v7145_v2, %v1294_v56  ;;  %v1444_v18 = vpop.permute.xlu1 %1443  ;;  %v1428_v0 = vpop.permute.xlu0 %1427  ;;  %v1336_v13 = vadd.f32 %v1335_v17, %v1334_v26  ;;  %v1279_v42 = vrot.slane %v7376_v40, 1 }
 0x423   :  { %v1501_v8 = vpack.c.bf16 %v1477_v5, %v1477_v5  ;;  %v1398_v28 = vadd.f32 %v8712_v32, %v1329_v11  ;;  %v1539_v7 = vunpack.c.l.b16 %v1500_v46  ;;  %v8713_v63 = vrot.slane %v7148_v3, 5 }
 0x424   :  { %v1473_v53 = vmul.f32 %v1434_v23, %v1393_v21  ;;  %v1342_v4 = vrot.slane %v1341_v24, 1  ;;  %v1493_v12 = vpack.c.bf16 %v1469_v60, %v1469_v60  ;;  %v8714_v14 = vrot.slane %v7145_v2, 6 }
 0x425   :  { %v1390_v55 = vadd.f32 %v8713_v63, %v1273_v15  ;;  %v1478_v9 = vmul.f32 %v1444_v18, %v1398_v28  ;;  %v1280_v20 = vadd.f32 %v1279_v42, %v7376_v40  ;;  %v1565_v6 = vrot.slane %v1537_v22, 7 }
 0x426   :  { %v1399_v49 = vadd.f32 %v8714_v14, %v1336_v13  ;;  %v1497_v52 = vpack.c.bf16 %v1473_v53, %v1473_v53  ;;  %v1446_v30 = vpop.permute.xlu1 %1445  ;;  %v1430_v26 = vpop.permute.xlu0 %1429  ;;  %v1343_v43 = vadd.f32 %v1342_v4, %v1341_v24  ;;  %v1540_v19 = vunpack.c.l.b16 %v1501_v8 }
 0x427   :  { %v1470_v62 = vmul.f32 %v1428_v0, %v1390_v55  ;;  %v1502_v23 = vpack.c.bf16 %v1478_v9, %v1478_v9  ;;  %v8715_v36 = vrot.slane %v7148_v3, 6  ;;  %v1546_v59 = vsel %vm1545_vm6, %v1544_v37, %v1528_v25 }
 0x428   :  { %v1479_v41 = vmul.f32 %v1446_v30, %v1399_v49  ;;  %v1536_v58 = vunpack.c.l.b16 %v1497_v52  ;;  %v1286_v46 = vrot.slane %v7383_v50, 1  ;;  %v1569_v48 = vrot.slane %v1539_v7, 5 }
 0x429   :  { %v1391_v16 = vadd.f32 %v8715_v36, %v1280_v20  ;;  %v1494_v34 = vpack.c.bf16 %v1470_v62, %v1470_v62  ;;  %v1532_v40 = vunpack.c.l.b16 %v1493_v12  ;;  %v1541_v35 = vunpack.c.l.b16 %v1502_v23 }
 0x42a   :  { %v1503_v29 = vpack.c.bf16 %v1479_v41, %v1479_v41  ;;  %v1566_v61 = vsel %vm1545_vm6, %v1565_v6, %v1536_v58  ;;  %v1448_v56 = vpop.permute.xlu1 %1447  ;;  %v8716_v5 = vrot.slane %v7145_v2, 7  ;;  %v1287_v60 = vadd.f32 %v1286_v46, %v7383_v50  ;;  %v1432_v25 = vpop.permute.xlu0 %1431 }
 0x42b   :  { %v1471_v22 = vmul.f32 %v1430_v26, %v1391_v16  ;;  %v1568_v11 = vsel %vm1548_vm7, %v1567_v33, %v1566_v61  ;;  %v1571_v37 = vrot.slane %v1540_v19, 4  ;;  %v1533_v18 = vunpack.c.l.b16 %v1494_v34  ;;  %v5851_v61 = vld [vmem:[%s8721_s21] ss:$0 sm:$0xff] }
 0x42c   :  { %v1400_v47 = vadd.f32 %v8716_v5, %v1343_v43  ;;  %v1542_v17 = vunpack.c.l.b16 %v1503_v29  ;;  %v1570_v21 = vsel %vm1551_vm8, %v1569_v48, %v1568_v11  ;;  %v8717_v0 = vrot.slane %v7148_v3, 7  ;;  %v6248_v43 = vld [vmem:[%s8718_s13] sm:$0xff]   ;;  %s8764_s13 = sld [smem:[#allocation43_spill]] }
 0x42d   :  { %v1495_v24 = vpack.c.bf16 %v1471_v22, %v1471_v22  ;;  %v1547_v32 = vrot.slane %v7392_v27, 6  ;;  %v1572_v2 = vsel %vm1554_vm9, %v1571_v37, %v1570_v21  ;;  %v1573_v50 = vrot.slane %v1541_v35, 3  ;;  %v6249_v29 = vld [vmem:[%s8719_s17] sm:$0xff]   ;;  %v6250_v22 = vld [vmem:[%s8719_s17 + $0x8] sm:$0xff]  }
 0x42e   :  { %v1480_v15 = vmul.f32 %v1448_v56, %v1400_v47  ;;  %v1392_v8 = vadd.f32 %v8717_v0, %v1287_v60  ;;  %v1550_v42 = vrot.slane %v7361_v10, 5  ;;  %v1553_v53 = vrot.slane %v1532_v40, 4  ;;  %v6478_v21 = vld [vmem:[%s6685_s5 + $0x8] sm:$0xff]  ;;  %v6251_v0 = vld [vmem:[%s8722_s25] sm:$0xff]  }
 0x42f   :  { %v1534_v28 = vunpack.c.l.b16 %v1495_v24  ;;  %v1549_v7 = vsel %vm1548_vm7, %v1547_v32, %v1546_v59  ;;  %v1575_v63 = vrot.slane %v1542_v17, 2  ;;  %v1574_v55 = vsel %vm1557_vm10, %v1573_v50, %v1572_v2  ;;  %v6477_v24 = vld [vmem:[%s6685_s5] sm:$0xff]  ;;  %v6253_v32 = vld [vmem:[%s8722_s25 + $0x10] sm:$0xff]   ;;  %v6254_v2 = vld [vmem:[%s8722_s25 + $0x18] sm:$0xff]   ;;  %s8725_s5 = sld [smem:[#allocation22_spill]] }
 0x430   :  { %v1504_v33 = vpack.c.bf16 %v1480_v15, %v1480_v15  ;;  %v1472_v13 = vmul.f32 %v1432_v25, %v1392_v8  ;;  %v1556_v3 = vrot.slane %v1533_v18, 3  ;;  %v1552_v9 = vsel %vm1551_vm8, %v1550_v42, %v1549_v7  ;;  %v6252_v8 = vld [vmem:[%s8722_s25 + $0x8] sm:$0xff]  }
 0x431   :  { %v1559_v12 = vrot.slane %v1534_v28, 2  ;;  %v1555_v20 = vsel %vm1554_vm9, %v1553_v53, %v1552_v9  ;;  %v1576_v10 = vsel %vm1560_vm11, %v1575_v63, %v1574_v55  ;;  %v8720_v23 = vmov 0.0   ;;  %v5864_v28 = vld [vmem:[%s8723_s29] ss:$0 sm:$0xff] }
 0x432   :  { %v1543_v4 = vunpack.c.l.b16 %v1504_v33  ;;  %v1496_v27 = vpack.c.bf16 %v1472_v13, %v1472_v13  ;;  %v1558_v52 = vsel %vm1557_vm10, %v1556_v3, %v1555_v20  ;;  %v5868_v33 = vld [vmem:[%s8724_s3] ss:$0 sm:$0xff] }
 0x433   :  { %v1561_v30 = vsel %vm1560_vm11, %v1559_v12, %v1558_v52 }
 0x434   :  { %v1577_v14 = vrot.slane %v1543_v4, 1  ;;  %v1535_v49 = vunpack.c.l.b16 %v1496_v27 }
 0x436   :  { %v1578_v6 = vsel %vm1563_vm12, %v1577_v14, %v1576_v10  ;;  %v1562_v62 = vrot.slane %v1535_v49, 1 }
 0x438   :  { %v1564_v26 = vsel %vm1563_vm12, %v1562_v62, %v1561_v30 }
 0x439   :  { %v1579_v19 = vpack.c.b16 %v1578_v6, %v1564_v26 }
 0x43b   :  { %6042 = vmatmul.mubr.msk.bf16.vlgmr.msra.gmra.mrb[4].mxu0 %vm481_vm3, %v1579_v19  ;;  %6054 = vmatmul.mubr.msk.bf16.vlgmr.msra.gmra.mrb[8].mxu1 %vm481_vm3, %v1579_v19 }
 0x43c   :  { %6058 = vmatpush3.bf16.msra.mxu0 %v6248_v43  ;;  %6059 = vmatprep.mubr.msk.bf16.mxu0 %vm6671_vm0, %v8720_v23 }
 0x43d   :  { %6063 = vmatprep.subr.bf16.mxu0 %v8720_v23  ;;  %6079 = vmatprep.mubr.msk.bf16.mxu1 %vm6671_vm0, %v8720_v23 }
 0x43e   :  { %6072 = vmatpush3.bf16.msra.mxu1 %v6251_v0 }
 0x43f   :  { %6073 = vmatprep.subr.bf16.mxu1 %v8720_v23 }
 0x442   :  { %6074 = vmatpush3.bf16.msra.mxu1 %v6252_v8 }
 0x443   :  { %6075 = vmatprep.subr.bf16.mxu1 %v8720_v23 }
 0x446   :  { %6076 = vmatpush3.bf16.msra.mxu1 %v6253_v32 }
 0x447   :  { %6077 = vmatprep.subr.bf16.mxu1 %v8720_v23 }
 0x44a   :  { %6078 = vmatpush3.bf16.msra.mxu1 %v6254_v2 }
 0x44b   :  { %6095 = vmatprep.subr.bf16.mxu1 %v8720_v23 }
 0x50e   :  { %v1641_v41 = vpop.f32.mrb[4].mxu0  ;;  %v1714_v36 = vpop.f32.mrb[8].mxu1 }
 0x50f   :  { %v6043_v16 = vpop.f32.mrb[5].mxu0  ;;  %v6055_v59 = vpop.f32.mrb[9].mxu1  ;;  %v1642_v35 = vadd.f32 %v5851_v61, %v1641_v41 }
 0x510   :  { %v1644_v58 = vpop.f32.mrb[6].mxu0  ;;  %v1717_v34 = vpop.f32.mrb[10].mxu1 }
 0x511   :  { %v1723_v46 = vpack.c.bf16 %v1717_v34, %v1714_v36  ;;  %v6044_v48 = vpop.f32.mrb[7].mxu0  ;;  %v6056_v40 = vpop.f32.mrb[11].mxu1  ;;  %v1645_v5 = vadd.f32 %v5851_v61, %v1644_v58 }
 0x513   :  { %6060 = vmatmul.mubr.msk.bf16.vlgmr.msra.gmra.mrb[8].mxu0 %vm387_vm2, %v1723_v46 }
 0x514   :  { %6067 = vmatprep.mubr.msk.bf16.mxu0 %vm6671_vm0, %v8720_v23  ;;  %6064 = vmatpush3.bf16.msra.mxu0 %v6249_v29 }
 0x515   :  { %6065 = vmatprep.subr.bf16.mxu0 %v8720_v23 }
 0x518   :  { %6066 = vmatpush3.bf16.msra.mxu0 %v6250_v22 }
 0x519   :  { %6083 = vmatprep.subr.bf16.mxu0 %v8720_v23 }
 0x5e6   :  { %v1767_v56 = vpop.f32.mrb[8].mxu0 }
 0x5e7   :  { %v1774_v47 = vadd.f32 %v1767_v56, %v1642_v35  ;;  %v6061_v60 = vpop.f32.mrb[9].mxu0 }
 0x5e8   :  { %v1770_v11 = vpop.f32.mrb[10].mxu0 }
 0x5e9   :  { %v1775_v37 = vadd.f32 %v1770_v11, %v1645_v5  ;;  %v6062_v17 = vpop.f32.mrb[11].mxu0  ;;  %v7452_v25 = vadd.f32 %v6477_v24, %v1774_v47  ;;  %v5876_v11 = vld [vmem:[%s8725_s5] ss:$0 sm:$0xff] }
 0x5eb   :  { %v7455_v18 = vadd.f32 %v6478_v21, %v1775_v37 }
 0x5ed   :  { %v1782_v15 = vpack.c.bf16 %v7455_v18, %v7452_v25 }
 0x5ef   :  { %6068 = vmatmul.mubr.msk.bf16.vlgmr.msra.gmra.mrb[12].mxu0 %vm276_vm1, %v1782_v15 }
 0x5f0   :  { %6091 = vmatprep.mubr.msk.bf16.mxu0 %vm6671_vm0, %v8720_v23 }
 0x6c2   :  { %v1839_v50 = vpop.f32.mrb[12].mxu0 }
 0x6c3   :  { %v1840_v13 = vadd.f32 %v5864_v28, %v1839_v50  ;;  %v6069_v42 = vpop.f32.mrb[13].mxu0 }
 0x6c4   :  { %v1842_v7 = vpop.f32.mrb[14].mxu0 }
 0x6c5   :  { %v1853_v53 = vmul.f32 %v5868_v33, %v1840_v13  ;;  %v1843_v63 = vadd.f32 %v5864_v28, %v1842_v7  ;;  %v6070_v55 = vpop.f32.mrb[15].mxu0 }
 0x6c7   :  { %v5869_v3 = vmul.f32 -1.442695, %v1853_v53  ;;  %v1854_v4 = vmul.f32 %v5868_v33, %v1843_v63 }
 0x6c9   :  { %6329 = vpow2.f32 %v5869_v3  ;;  %v5870_v27 = vmul.f32 -1.442695, %v1854_v4 }
 0x6cb   :  { %6331 = vpow2.f32 %v5870_v27 }
 0x6d3   :  { %v6330_v12 = vpop.eup %6329 }
 0x6d4   :  { %v1861_v9 = vadd.f32 1.0, %v6330_v12 }
 0x6d5   :  { %v6332_v14 = vpop.eup %6331 }
 0x6d6   :  { %6333 = vrcp.f32 %v1861_v9  ;;  %v1862_v49 = vadd.f32 1.0, %v6332_v14 }
 0x6d8   :  { %6335 = vrcp.f32 %v1862_v49 }
 0x6e0   :  { %v6334_v20 = vpop.eup %6333 }
 0x6e1   :  { %v7472_v10 = vmul.f32 %v6334_v20, %v1853_v53 }
 0x6e2   :  { %v6336_v52 = vpop.eup %6335 }
 0x6e3   :  { %v7474_v6 = vmul.f32 %v6336_v52, %v1854_v4  ;;  %v2823_v62 = vrot.slane %v7472_v10, 1  ;;  %v2824_v43 = vrot.slane %v7472_v10, 2  ;;  %v2825_v33 = vrot.slane %v7472_v10, 3 }
 0x6e4   :  { %v2826_v12 = vrot.slane %v7472_v10, 4 }
 0x6e5   :  { %2839 = vrot.lane.b32.xlu0 %v2823_v62, %s6672_s9  ;;  %v2830_v30 = vrot.slane %v7474_v6, 1  ;;  %v1877_v26 = vpack.c.bf16 %v7474_v6, %v7472_v10  ;;  %v2831_v19 = vrot.slane %v7474_v6, 2  ;;  %v2832_v55 = vrot.slane %v7474_v6, 3 }
 0x6e6   :  { %v2833_v9 = vrot.slane %v7474_v6, 4 }
 0x6e7   :  { %2855 = vrot.lane.b32.xlu1 %v2830_v30, %s6672_s9  ;;  %6080 = vmatmul.mubr.msk.bf16.vlgmr.msra.gmra.mrb[12].mxu1 %vm481_vm3, %v1877_v26  ;;  %v2827_v30 = vrot.slane %v7472_v10, 5  ;;  %v2834_v26 = vrot.slane %v7474_v6, 5 }
 0x6e8   :  { %6099 = vmatprep.mubr.msk.bf16.mxu1 %vm6671_vm0, %v8720_v23 }
 0x6e9   :  { %2841 = vrot.lane.b32.xlu0 %v2824_v43, %s6672_s9 }
 0x6eb   :  { %2857 = vrot.lane.b32.xlu1 %v2831_v19, %s6672_s9 }
 0x7ba   :  { %v1939_v41 = vpop.f32.mrb[12].mxu1 }
 0x7bb   :  { %v6081_v36 = vpop.f32.mrb[13].mxu1  ;;  %v2343_v16 = vrot.slane %v1939_v41, %v6993_v44  ;;  %v2319_v59 = vrot.slane %v1939_v41, %v6985_v38  ;;  %v2327_v46 = vrot.slane %v1939_v41, %v6988_v39  ;;  %v2335_v40 = vrot.slane %v1939_v41, %v6996_v45 }
 0x7bc   :  { %v1942_v58 = vpop.f32.mrb[14].mxu1  ;;  %v2351_v61 = vrot.slane %v1939_v41, %v7004_v51  ;;  %v2359_v56 = vrot.slane %v1939_v41, %v7010_v54  ;;  %v2367_v47 = vrot.slane %v1939_v41, %v7017_v57  ;;  %v7503_v37 = vadd.f32 %v5876_v11, %v1939_v41 }
 0x7bd   :  { %2586 = vbcast.lane.b32.xlu1 %v2343_v16, 328  ;;  %2322 = vbcast.lane.b32.xlu0 %v2319_v59, 320  ;;  %v6082_v34 = vpop.f32.mrb[15].mxu1  ;;  %v2383_v48 = vrot.slane %v1942_v58, %v6985_v38  ;;  %v2391_v29 = vrot.slane %v1942_v58, %v6988_v39  ;;  %v2399_v22 = vrot.slane %v1942_v58, %v6996_v45 }
 0x7be   :  { %v2407_v35 = vrot.slane %v1942_v58, %v6993_v44  ;;  %v2415_v5 = vrot.slane %v1942_v58, %v7004_v51  ;;  %v2423_v60 = vrot.slane %v1942_v58, %v7010_v54  ;;  %v2431_v17 = vrot.slane %v1942_v58, %v7017_v57 }
 0x7bf   :  { %v1957_v24 = vand.u32 2147483647, %v7503_v37  ;;  %v7507_v21 = vadd.f32 %v5876_v11, %v1942_v58  ;;  %v2375_v8 = vrot.slane %v1939_v41, %v7030_v1  ;;  %v2439_v28 = vrot.slane %v1942_v58, %v7030_v1 }
 0x7c0   :  { %v1955_v36 = vmax.f32 %v7503_v37, 0.0  ;;  %v2828_v58 = vrot.slane %v7472_v10, 6  ;;  %v2835_v34 = vrot.slane %v7474_v6, 6 }
 0x7c1   :  { %2330 = vbcast.lane.b32.xlu0 %v2327_v46, 320  ;;  %2386 = vbcast.lane.b32.xlu1 %v2383_v48, 320  ;;  %v1959_v15 = vsub.f32 0.0, %v1957_v24  ;;  %v1958_v0 = vand.u32 2147483647, %v7507_v21  ;;  %v7549_v24 = vld [vmem:[%s8727_s14] sm:$0xff] }
 0x7c3   :  { %v1961_v32 = vmul.f32 1.442695, %v1959_v15  ;;  %v1960_v2 = vsub.f32 0.0, %v1958_v0 }
 0x7c5   :  { %2338 = vbcast.lane.b32.xlu0 %v2335_v40, 320  ;;  %2394 = vbcast.lane.b32.xlu1 %v2391_v29, 320  ;;  %6337 = vpow2.f32 %v1961_v32  ;;  %v1963_v50 = vmul.f32 1.442695, %v1960_v2 }
 0x7c7   :  { %6339 = vpow2.f32 %v1963_v50 }
 0x7c9   :  { %2346 = vbcast.lane.b32.xlu0 %v2343_v16, 320  ;;  %2402 = vbcast.lane.b32.xlu1 %v2399_v22, 320  ;;  %v6255_v16 = vld [vmem:[%s8726_s8] sm:$0xff]  }
 0x7ca   :  { %6084 = vmatpush3.bf16.msra.mxu0 %v6255_v16 }
 0x7cb   :  { %6085 = vmatprep.subr.bf16.mxu0 %v8720_v23 }
 0x7cd   :  { %2354 = vbcast.lane.b32.xlu0 %v2351_v61, 320  ;;  %2410 = vbcast.lane.b32.xlu1 %v2407_v35, 320 }
 0x7cf   :  { %v6338_v13 = vpop.eup %6337 }
 0x7d0   :  { %v1965_v42 = vadd.f32 1.0, %v6338_v13  ;;  %v1968_v63 = vmul.f32 -0.5, %v6338_v13  ;;  %v1971_v14 = vand.u32 2147483647, %v6338_v13 }
 0x7d1   :  { %2362 = vbcast.lane.b32.xlu0 %v2359_v56, 320  ;;  %2418 = vbcast.lane.b32.xlu1 %v2415_v5, 320  ;;  %v6340_v7 = vpop.eup %6339 }
 0x7d2   :  { %6341 = vlog2.f32 %v1965_v42  ;;  %v1974_v53 = vadd.f32 1.0, %v6340_v7  ;;  %v1969_v4 = vadd.f32 1.0, %v1968_v63  ;;  %v1977_v27 = vmul.f32 -0.5, %v6340_v7 }
 0x7d3   :  { %vm1972_vm13 = vcmp.lt.f32.partialorder %v1971_v14, 0.0004427343  ;;  %v1980_v43 = vand.u32 2147483647, %v6340_v7 }
 0x7d4   :  { %6343 = vlog2.f32 %v1974_v53  ;;  %v1970_v52 = vmul.f32 %v6338_v13, %v1969_v4  ;;  %v1978_v62 = vadd.f32 1.0, %v1977_v27 }
 0x7d5   :  { %2370 = vbcast.lane.b32.xlu0 %v2367_v47, 320  ;;  %2426 = vbcast.lane.b32.xlu1 %v2423_v60, 320  ;;  %vm1981_vm14 = vcmp.lt.f32.partialorder %v1980_v43, 0.0004427343 }
 0x7d9   :  { %2578 = vbcast.lane.b32.xlu0 %v2327_v46, 328  ;;  %2434 = vbcast.lane.b32.xlu1 %v2431_v17, 320 }
 0x7dc   :  { %v6342_v3 = vpop.eup %6341 }
 0x7dd   :  { %2582 = vbcast.lane.b32.xlu0 %v2335_v40, 328  ;;  %2610 = vbcast.lane.b32.xlu1 %v2391_v29, 328  ;;  %v1967_v49 = vmul.f32 0.6931472, %v6342_v3  ;;  %v1956_v40 = vmax.f32 %v7507_v21, 0.0  ;;  %v2829_v29 = vrot.slane %v7472_v10, 7 }
 0x7de   :  { %v6344_v20 = vpop.eup %6343  ;;  %v6258_v21 = vld [vmem:[%s8726_s8 + $0x18] sm:$0xff]  }
 0x7df   :  { %v1973_v19 = vsel %vm1972_vm13, %v1970_v52, %v1967_v49  ;;  %v1976_v41 = vmul.f32 0.6931472, %v6344_v20  ;;  %v7571_v49 = vpop.permute.xlu0 %2839  ;;  %v7573_v20 = vpop.permute.xlu1 %2855 }
 0x7e0   :  { %v1983_v46 = vadd.f32 %v1973_v19, %v1955_v36 }
 0x7e1   :  { %2378 = vbcast.lane.b32.xlu0 %v2375_v8, 320  ;;  %2614 = vbcast.lane.b32.xlu1 %v2399_v22, 328  ;;  %v2836_v22 = vrot.slane %v7474_v6, 7 }
 0x7e2   :  { %v7562_v53 = vmul.f32 %v1983_v46, %v7472_v10  ;;  %v1988_v4 = vcombine.high %v1983_v46, %v1983_v46 }
 0x7e4   :  { %v2225_v52 = vrot.slane %v7562_v53, %v7060_v31  ;;  %v2002_v43 = vrot.slane %v1988_v4, %v7060_v31 }
 0x7e5   :  { %2574 = vbcast.lane.b32.xlu0 %v2319_v59, 328  ;;  %2442 = vbcast.lane.b32.xlu1 %v2439_v28, 320  ;;  %v1979_v59 = vmul.f32 %v6340_v7, %v1978_v62 }
 0x7e9   :  { %2590 = vbcast.lane.b32.xlu0 %v2351_v61, 328  ;;  %2843 = vrot.lane.b32.xlu1 %v2825_v33, %s6672_s9  ;;  %v1995_v61 = vrot.slane %v1983_v46, %v7060_v31 }
 0x7eb   :  { %v2003_v11 = vcombine.high %v1995_v61, %v1995_v61 }
 0x7ed   :  { %2594 = vbcast.lane.b32.xlu0 %v2359_v56, 328  ;;  %2618 = vbcast.lane.b32.xlu1 %v2407_v35, 328  ;;  %v6256_v56 = vld [vmem:[%s8726_s8 + $0x8] sm:$0xff]   ;;  %v2025_v15 = vrot.slane %v2003_v11, %v7060_v31 }
 0x7ee   :  { %6086 = vmatpush3.bf16.msra.mxu0 %v6256_v56 }
 0x7ef   :  { %6087 = vmatprep.subr.bf16.mxu0 %v8720_v23  ;;  %v2035_v42 = vcombine.high %v2025_v15, %v2025_v15 }
 0x7f1   :  { %2598 = vbcast.lane.b32.xlu0 %v2367_v47, 328  ;;  %2622 = vbcast.lane.b32.xlu1 %v2415_v5, 328  ;;  %v2011_v5 = vrot.slane %v1995_v61, %v7060_v31  ;;  %v2101_v14 = vrot.slane %v2035_v42, %v6985_v38 }
 0x7f3   :  { %v2089_v37 = vrot.slane %v2011_v5, %v6985_v38  ;;  %v2033_v2 = vcombine.high %v2011_v5, %v2011_v5 }
 0x7f5   :  { %2602 = vbcast.lane.b32.xlu0 %v2375_v8, 328  ;;  %2626 = vbcast.lane.b32.xlu1 %v2423_v60, 328  ;;  %v6257_v60 = vld [vmem:[%s8726_s8 + $0x10] sm:$0xff]   ;;  %v2166_v8 = vmul.f32 %v2089_v37, %v7549_v24  ;;  %v2097_v7 = vrot.slane %v2033_v2, %v6985_v38 }
 0x7f6   :  { %6088 = vmatpush3.bf16.msra.mxu0 %v6257_v60 }
 0x7f7   :  { %6089 = vmatprep.subr.bf16.mxu0 %v8720_v23  ;;  %v2182_v33 = vmul.f32 1.442695, %v2166_v8 }
 0x7f9   :  { %2606 = vbcast.lane.b32.xlu0 %v2383_v48, 328  ;;  %2630 = vbcast.lane.b32.xlu1 %v2431_v17, 328  ;;  %v1982_v48 = vsel %vm1981_vm14, %v1979_v59, %v1976_v41  ;;  %6345 = vpow2.f32 %v2182_v33  ;;  %v2169_v59 = vmul.f32 %v2101_v14, %v7549_v24 }
 0x7fa   :  { %v1984_v35 = vadd.f32 %v1982_v48, %v1956_v40  ;;  %6090 = vmatpush3.bf16.msra.mxu0 %v6258_v21  ;;  %v2241_v48 = vrot.slane %v2225_v52, %v7060_v31  ;;  %v7586_v40 = vrot.slane %v2002_v43, %v7060_v31 }
 0x7fb   :  { %6103 = vmatprep.subr.bf16.mxu0 %v8720_v23  ;;  %v2188_v56 = vmul.f32 1.442695, %v2169_v59 }
 0x7fc   :  { %v2044_v47 = vrot.slane %v1984_v35, %v7060_v31  ;;  %v2037_v41 = vcombine.high %v1984_v35, %v1984_v35  ;;  %v2447_v37 = vrot.slane %v2241_v48, %v6985_v38  ;;  %v2105_v21 = vrot.slane %v7586_v40, %v6985_v38 }
 0x7fd   :  { %2837 = vrot.lane.b32.xlu0 %v7472_v10, %s6672_s9  ;;  %2634 = vbcast.lane.b32.xlu1 %v2439_v28, 328  ;;  %v2093_v28 = vrot.slane %v2025_v15, %v6985_v38  ;;  %v2004_v15 = vcombine.high %v2002_v43, %v2002_v43  ;;  %v2263_v42 = vcombine.high %v2241_v48, %v2241_v48 }
 0x7fe   :  { %v2060_v17 = vrot.slane %v2044_v47, %v7060_v31  ;;  %v2052_v0 = vcombine.high %v2044_v47, %v2044_v47 }
 0x7ff   :  { %v2167_v63 = vmul.f32 %v2093_v28, %v7549_v24  ;;  %v7614_v4 = vrot.slane %v2004_v15, %v7060_v31 }
 0x800   :  { %v2121_v32 = vrot.slane %v2060_v17, %v6985_v38  ;;  %v2074_v50 = vrot.slane %v2052_v0, %v7060_v31 }
 0x801   :  { %2853 = vrot.lane.b32.xlu0 %v7474_v6, %s6672_s9  ;;  %2859 = vrot.lane.b32.xlu1 %v2832_v55, %s6672_s9  ;;  %v2082_v55 = vcombine.high %v2060_v17, %v2060_v17  ;;  %v2184_v62 = vmul.f32 1.442695, %v2167_v63 }
 0x802   :  { %v2174_v13 = vmul.f32 %v2121_v32, %v7549_v24  ;;  %v2125_v3 = vrot.slane %v2074_v50, %v6985_v38  ;;  %v2084_v19 = vcombine.high %v2074_v50, %v2074_v50 }
 0x803   :  { %v6346_v5 = vpop.eup %6345 }
 0x804   :  { %v2198_v27 = vmul.f32 1.442695, %v2174_v13  ;;  %v2133_v61 = vrot.slane %v2084_v19, %v6985_v38  ;;  %v2540_v50 = vmul.f32 0.0, %v6346_v5 }
 0x805   :  { %2845 = vrot.lane.b32.xlu0 %v2826_v12, %s6672_s9  ;;  %2861 = vrot.lane.b32.xlu1 %v2833_v9, %s6672_s9  ;;  %v7567_v12 = vmul.f32 %v1984_v35, %v7474_v6  ;;  %v2168_v9 = vmul.f32 %v2097_v7, %v7549_v24  ;;  %v2051_v35 = vrot.slane %v2037_v41, %v7060_v31 }
 0x806   :  { %6347 = vpow2.f32 %v2198_v27  ;;  %v2177_v32 = vmul.f32 %v2133_v61, %v7549_v24 }
 0x807   :  { %v2274_v36 = vrot.slane %v7567_v12, %v7060_v31  ;;  %v2186_v16 = vmul.f32 1.442695, %v2168_v9  ;;  %6349 = vpow2.f32 %v2184_v62  ;;  %v7603_v2 = vrot.slane %v2051_v35, %v7060_v31 }
 0x808   :  { %v2204_v62 = vmul.f32 1.442695, %v2177_v32 }
 0x809   :  { %2847 = vrot.lane.b32.xlu0 %v2827_v30, %s6672_s9  ;;  %2863 = vrot.lane.b32.xlu1 %v2834_v26, %s6672_s9  ;;  %v2129_v30 = vrot.slane %v2082_v55, %v6985_v38  ;;  %v2175_v26 = vmul.f32 %v2125_v3, %v7549_v24  ;;  %6351 = vpow2.f32 %v2186_v16  ;;  %v2282_v60 = vcombine.high %v2274_v36, %v2274_v36 }
 0x80a   :  { %v2290_v17 = vrot.slane %v2274_v36, %v7060_v31  ;;  %v2170_v3 = vmul.f32 %v2105_v21, %v7549_v24  ;;  %v2455_v16 = vrot.slane %v2263_v42, %v6985_v38 }
 0x80b   :  { %v2176_v46 = vmul.f32 %v2129_v30, %v7549_v24  ;;  %v7607_v7 = vrot.slane %v2282_v60, %v7060_v31  ;;  %v2137_v30 = vrot.slane %v7603_v2, %v6985_v38 }
 0x80c   :  { %v2479_v55 = vrot.slane %v2290_v17, %v6985_v38  ;;  %v2190_v61 = vmul.f32 1.442695, %v2170_v3 }
 0x80d   :  { %2849 = vrot.lane.b32.xlu0 %v2828_v58, %s6672_s9  ;;  %2865 = vrot.lane.b32.xlu1 %v2835_v34, %s6672_s9  ;;  %v2233_v58 = vcombine.high %v2225_v52, %v2225_v52  ;;  %v2200_v34 = vmul.f32 1.442695, %v2175_v26  ;;  %v2202_v11 = vmul.f32 1.442695, %v2176_v46  ;;  %v2218_v52 = vcombine.high %v7562_v53, %v7562_v53 }
 0x80e   :  { %v2053_v26 = vcombine.high %v2051_v35, %v2051_v35  ;;  %v2483_v59 = vrot.slane %v7607_v7, %v6985_v38  ;;  %v2109_v35 = vrot.slane %v7614_v4, %v6985_v38 }
 0x80f   :  { %v2255_v47 = vrot.slane %v2233_v58, %v7060_v31  ;;  %6353 = vpow2.f32 %v2200_v34  ;;  %v2312_v34 = vcombine.high %v2290_v17, %v2290_v17 }
 0x810   :  { %6355 = vpow2.f32 %v2188_v56  ;;  %v6348_v33 = vpop.eup %6347 }
 0x811   :  { %2851 = vrot.lane.b32.xlu0 %v2829_v29, %s6672_s9  ;;  %2867 = vrot.lane.b32.xlu1 %v2836_v22, %s6672_s9  ;;  %v7588_v29 = vpop.permute.xlu0 %2841  ;;  %v7590_v22 = vpop.permute.xlu1 %2857  ;;  %v2451_v13 = vrot.slane %v2255_v47, %v6985_v38  ;;  %6357 = vpow2.f32 %v2202_v11  ;;  %v2541_v36 = vmul.f32 0.0, %v6348_v33  ;;  %v2265_v58 = vcombine.high %v2255_v47, %v2255_v47 }
 0x812   :  { %v6350_v27 = vpop.eup %6349  ;;  %6359 = vpow2.f32 %v2204_v62  ;;  %v2178_v11 = vmul.f32 %v2137_v30, %v7549_v24  ;;  %v2487_v32 = vrot.slane %v2312_v34, %v6985_v38 }
 0x813   :  { %v6352_v46 = vpop.eup %6351  ;;  %6361 = vpow2.f32 %v2190_v61 }
 0x814   :  { %v2206_v62 = vmul.f32 1.442695, %v2178_v11  ;;  %v2036_v11 = vcombine.high %v7614_v4, %v7614_v4 }
 0x816   :  { %6363 = vpow2.f32 %v2206_v62 }
 0x819   :  { %v6354_v56 = vpop.eup %6353 }
 0x81a   :  { %v6356_v33 = vpop.eup %6355 }
 0x81b   :  { %v6358_v3 = vpop.eup %6357 }
 0x82f   :  { %v7599_v0 = vpop.permute.xlu1 %2586  ;;  %v2323_v8 = vpop.permute.xlu0 %2322 }
 0x830   :  { %v2524_v28 = vmul.f32 %v2447_v37, %v2323_v8  ;;  %v7632_v37 = vrot.slane %v2053_v26, %v7060_v31  ;;  %v2459_v8 = vrot.slane %v2265_v58, %v6985_v38 }
 0x832   :  { %v7609_v63 = vadd.f32 %v2540_v50, %v2524_v28  ;;  %v2232_v28 = vrot.slane %v2218_v52, %v7060_v31  ;;  %v2267_v50 = vcombine.high %v7567_v12, %v7567_v12  ;;  %v2034_v52 = vcombine.high %v7586_v40, %v7586_v40 }
 0x833   :  { %v2331_v9 = vpop.permute.xlu0 %2330  ;;  %v2387_v14 = vpop.permute.xlu1 %2386  ;;  %v2141_v12 = vrot.slane %v7632_v37, %v6985_v38 }
 0x834   :  { %v2525_v43 = vmul.f32 %v2451_v13, %v2331_v9  ;;  %v2544_v19 = vmul.f32 %v6350_v27, %v7609_v63  ;;  %v2532_v41 = vmul.f32 %v2479_v55, %v2387_v14  ;;  %v2171_v55 = vmul.f32 %v2109_v35, %v7549_v24 }
 0x835   :  { %v2314_v14 = vcombine.high %v7607_v7, %v7607_v7  ;;  %v2113_v58 = vrot.slane %v2034_v52, %v6985_v38  ;;  %v2179_v34 = vmul.f32 %v2141_v12, %v7549_v24 }
 0x836   :  { %v7624_v48 = vadd.f32 %v2544_v19, %v2525_v43  ;;  %v7626_v53 = vadd.f32 %v2541_v36, %v2532_v41  ;;  %v7655_v36 = vrot.slane %v2232_v28, %v7060_v31  ;;  %v2192_v7 = vmul.f32 1.442695, %v2171_v55 }
 0x837   :  { %v2339_v5 = vpop.permute.xlu0 %2338  ;;  %v2395_v60 = vpop.permute.xlu1 %2394  ;;  %v2491_v35 = vrot.slane %v2314_v14, %v6985_v38  ;;  %v2085_v14 = vcombine.high %v7632_v37, %v7632_v37 }
 0x838   :  { %v2526_v47 = vmul.f32 %v2455_v16, %v2339_v5  ;;  %v2548_v17 = vmul.f32 %v6352_v46, %v7624_v48  ;;  %v2533_v21 = vmul.f32 %v2483_v59, %v2395_v60  ;;  %v2545_v15 = vmul.f32 %v6354_v56, %v7626_v53  ;;  %v6360_v5 = vpop.eup %6359  ;;  %v5877_v60 = vld [vmem:[%s8728_s24] ss:$0 sm:$0xff] }
 0x839   :  { %v2083_v46 = vcombine.high %v7603_v2, %v7603_v2  ;;  %v2281_v56 = vrot.slane %v2267_v50, %v7060_v31  ;;  %6365 = vpow2.f32 %v2192_v7  ;;  %v7688_v62 = vmul.f32 %v5877_v60, %v7474_v6 }
 0x83a   :  { %v7641_v13 = vadd.f32 %v2548_v17, %v2526_v47  ;;  %v7643_v42 = vadd.f32 %v2545_v15, %v2533_v21  ;;  %v2234_v17 = vcombine.high %v2232_v28, %v2232_v28  ;;  %v2463_v15 = vrot.slane %v7655_v36, %v6985_v38 }
 0x83b   :  { %v2347_v27 = vpop.permute.xlu0 %2346  ;;  %v2403_v9 = vpop.permute.xlu1 %2402  ;;  %v2145_v50 = vrot.slane %v2083_v46, %v6985_v38  ;;  %v7676_v4 = vrot.slane %v2281_v56, %v7060_v31  ;;  %v7679_v28 = vmul.f32 %v5877_v60, %v7472_v10  ;;  %v2283_v37 = vcombine.high %v2281_v56, %v2281_v56 }
 0x83c   :  { %v2527_v30 = vmul.f32 %v2459_v8, %v2347_v27  ;;  %v2552_v26 = vmul.f32 %v6356_v33, %v7641_v13  ;;  %v2534_v43 = vmul.f32 %v2487_v32, %v2403_v9  ;;  %v2549_v19 = vmul.f32 %v6358_v3, %v7643_v42  ;;  %v6362_v33 = vpop.eup %6361 }
 0x83d   :  { %v2208_v32 = vmul.f32 1.442695, %v2179_v34  ;;  %v2117_v9 = vrot.slane %v2036_v11, %v6985_v38  ;;  %v7685_v52 = vrot.slane %v2234_v17, %v7060_v31  ;;  %v2775_v7 = vrot.slane %v7679_v28, 1 }
 0x83e   :  { %v2554_v41 = vadd.f32 %v2552_v26, %v2527_v30  ;;  %v7657_v16 = vadd.f32 %v2549_v19, %v2534_v43  ;;  %v2180_v19 = vmul.f32 %v2145_v50, %v7549_v24  ;;  %v2776_v6 = vrot.slane %v7679_v28, 2 }
 0x83f   :  { %v2355_v59 = vpop.permute.xlu0 %2354  ;;  %v2411_v40 = vpop.permute.xlu1 %2410  ;;  %6367 = vpow2.f32 %v2208_v32  ;;  %v2149_v34 = vrot.slane %v2085_v14, %v6985_v38  ;;  %v2467_v56 = vrot.slane %v7685_v52, %v6985_v38  ;;  %v2784_v32 = vrot.slane %v7688_v62, 3 }
 0x840   :  { %v2639_v61 = vmul.f32 %v7599_v0, %v2554_v41  ;;  %v2535_v47 = vmul.f32 %v2491_v35, %v2411_v40  ;;  %v2553_v21 = vmul.f32 %v6360_v5, %v7657_v16  ;;  %v2172_v0 = vmul.f32 %v2113_v58, %v7549_v24 }
 0x841   :  { %v2528_v3 = vmul.f32 %v2463_v15, %v2355_v59  ;;  %v2556_v27 = vmul.f32 %v6362_v33, %v2554_v41  ;;  %v2495_v41 = vrot.slane %v7676_v4, %v6985_v38  ;;  %v6364_v59 = vpop.eup %6363  ;;  %v2173_v58 = vmul.f32 %v2117_v9, %v7549_v24 }
 0x842   :  { %v2673_v55 = vsel %vm481_vm3, %v2639_v61, 0.0  ;;  %v7690_v12 = vadd.f32 %v2553_v21, %v2535_v47  ;;  %v2194_v43 = vmul.f32 1.442695, %v2172_v0  ;;  %v2782_v61 = vrot.slane %v7688_v62, 1 }
 0x843   :  { %v2363_v2 = vpop.permute.xlu0 %2362  ;;  %v2419_v8 = vpop.permute.xlu1 %2418  ;;  %v2674_v30 = vrot.slane %v2673_v55, 4  ;;  %v7699_v40 = vadd.f32 %v2556_v27, %v2528_v3  ;;  %v2783_v35 = vrot.slane %v7688_v62, 2  ;;  %v2210_v17 = vmul.f32 1.442695, %v2180_v19 }
 0x844   :  { %v2536_v46 = vmul.f32 %v2495_v41, %v2419_v8  ;;  %v2557_v5 = vmul.f32 %v6364_v59, %v7690_v12  ;;  %6369 = vpow2.f32 %v2194_v43  ;;  %v6366_v21 = vpop.eup %6365  ;;  %v7711_v15 = vrot.slane %v2283_v37, %v7060_v31 }
 0x845   :  { %v2675_v60 = vadd.f32 %v2674_v30, %v2673_v55  ;;  %v2777_v0 = vrot.slane %v7679_v28, 3  ;;  %v2529_v50 = vmul.f32 %v2467_v56, %v2363_v2  ;;  %v2560_v33 = vmul.f32 %v6366_v21, %v7699_v40 }
 0x846   :  { %v2196_v55 = vmul.f32 1.442695, %v2173_v58  ;;  %v2181_v3 = vmul.f32 %v2149_v34, %v7549_v24  ;;  %v7719_v9 = vadd.f32 %v2557_v5, %v2536_v46  ;;  %6371 = vpow2.f32 %v2210_v17 }
 0x847   :  { %v7692_v26 = vpop.permute.xlu0 %2370  ;;  %v2427_v10 = vpop.permute.xlu1 %2426  ;;  %v2676_v41 = vrot.slane %v2675_v60, 2  ;;  %v2264_v37 = vcombine.high %v7655_v36, %v7655_v36  ;;  %v2499_v24 = vrot.slane %v7711_v15, %v6985_v38  ;;  %v7730_v5 = vadd.f32 %v2560_v33, %v2529_v50 }
 0x848   :  { %6373 = vpow2.f32 %v2196_v55  ;;  %v2212_v56 = vmul.f32 1.442695, %v2181_v3  ;;  %v2313_v50 = vcombine.high %v7676_v4, %v7676_v4 }
 0x849   :  { %v6368_v34 = vpop.eup %6367 }
 0x84a   :  { %v2561_v36 = vmul.f32 %v6368_v34, %v7719_v9  ;;  %6375 = vpow2.f32 %v2212_v56 }
 0x84b   :  { %v2579_v11 = vpop.permute.xlu0 %2578  ;;  %v7708_v47 = vpop.permute.xlu1 %2434 }
 0x84c   :  { %v2637_v8 = vmul.f32 %v2579_v11, %v7624_v48  ;;  %v2537_v11 = vmul.f32 %v2499_v24, %v2427_v10 }
 0x84e   :  { %v2659_v27 = vsel %vm481_vm3, %v2637_v8, 0.0  ;;  %v6370_v55 = vpop.eup %6369 }
 0x84f   :  { %v2660_v43 = vrot.slane %v2659_v27, 4  ;;  %v2583_v48 = vpop.permute.xlu0 %2582  ;;  %v2611_v19 = vpop.permute.xlu1 %2610 }
 0x850   :  { %v2638_v59 = vmul.f32 %v2583_v48, %v7641_v13  ;;  %v2645_v58 = vmul.f32 %v2611_v19, %v7643_v42  ;;  %v2677_v48 = vadd.f32 %v2676_v41, %v2675_v60  ;;  %v2471_v42 = vrot.slane %v2264_v37, %v6985_v38 }
 0x851   :  { %v2661_v46 = vadd.f32 %v2660_v43, %v2659_v27  ;;  %v2564_v60 = vmul.f32 %v6370_v55, %v7730_v5  ;;  %v7744_v41 = vadd.f32 %v2561_v36, %v2537_v11 }
 0x852   :  { %v2666_v17 = vsel %vm481_vm3, %v2638_v59, 0.0  ;;  %v2715_v21 = vsel %vm481_vm3, %v2645_v58, 0.0  ;;  %v2530_v19 = vmul.f32 %v2471_v42, %v7692_v26  ;;  %v2678_v34 = vrot.slane %v2677_v48, 1  ;;  %v6372_v26 = vpop.eup %6371 }
 0x853   :  { %v2662_v8 = vrot.slane %v2661_v46, 2  ;;  %v2667_v2 = vrot.slane %v2666_v17, 4  ;;  %v2716_v30 = vrot.slane %v2715_v21, 4  ;;  %v2379_v14 = vpop.permute.xlu0 %2378  ;;  %v2615_v13 = vpop.permute.xlu1 %2614 }
 0x854   :  { %v2646_v33 = vmul.f32 %v2615_v13, %v7657_v16  ;;  %v2266_v13 = vcombine.high %v7685_v52, %v7685_v52  ;;  %v2566_v42 = vadd.f32 %v2564_v60, %v2530_v19 }
 0x855   :  { %v2668_v3 = vadd.f32 %v2667_v2, %v2666_v17  ;;  %v2717_v27 = vadd.f32 %v2716_v30, %v2715_v21  ;;  %v2663_v37 = vadd.f32 %v2662_v8, %v2661_v46  ;;  %v2503_v2 = vrot.slane %v2313_v50, %v6985_v38 }
 0x856   :  { %v2722_v24 = vsel %vm481_vm3, %v2646_v33, 0.0  ;;  %v2315_v46 = vcombine.high %v7711_v15, %v7711_v15  ;;  %v2565_v50 = vmul.f32 %v6372_v26, %v7744_v41  ;;  %v6374_v33 = vpop.eup %6373  ;;  %v2679_v17 = vadd.f32 %v2678_v34, %v2677_v48 }
 0x857   :  { %v2669_v4 = vrot.slane %v2668_v3, 2  ;;  %v2723_v59 = vrot.slane %v2722_v24, 4  ;;  %v2575_v16 = vpop.permute.xlu0 %2574  ;;  %v2443_v58 = vpop.permute.xlu1 %2442  ;;  %v2718_v30 = vrot.slane %v2717_v27, 2  ;;  %v2538_v36 = vmul.f32 %v2503_v2, %v7708_v47 }
 0x858   :  { %v2636_v56 = vmul.f32 %v2575_v16, %v7609_v63  ;;  %v2664_v63 = vrot.slane %v2663_v37, 1  ;;  %v2475_v2 = vrot.slane %v2266_v13, %v6985_v38  ;;  %v2507_v60 = vrot.slane %v2315_v46, %v6985_v38  ;;  %v6376_v34 = vpop.eup %6375 }
 0x859   :  { %v2670_v21 = vadd.f32 %v2669_v4, %v2668_v3  ;;  %v2724_v11 = vadd.f32 %v2723_v59, %v2722_v24  ;;  %v2719_v52 = vadd.f32 %v2718_v30, %v2717_v27  ;;  %v2568_v43 = vmul.f32 %v6374_v33, %v2566_v42 }
 0x85a   :  { %v2652_v8 = vsel %vm481_vm3, %v2636_v56, 0.0  ;;  %v7762_v48 = vadd.f32 %v2565_v50, %v2538_v36  ;;  %v2665_v4 = vadd.f32 %v2664_v63, %v2663_v37  ;;  %v2531_v27 = vmul.f32 %v2475_v2, %v2379_v14 }
 0x85b   :  { %v2725_v55 = vrot.slane %v2724_v11, 2  ;;  %v2591_v16 = vpop.permute.xlu0 %2590  ;;  %v2844_v3 = vpop.permute.xlu1 %2843  ;;  %v2653_v24 = vrot.slane %v2652_v8, 4  ;;  %v2671_v47 = vrot.slane %v2670_v21, 1  ;;  %v2720_v10 = vrot.slane %v2719_v52, 1 }
 0x85c   :  { %v2640_v59 = vmul.f32 %v2591_v16, %v7699_v40  ;;  %v2808_v40 = vadd.f32 %v2777_v0, %v2679_v17  ;;  %v2569_v63 = vmul.f32 %v6376_v34, %v7762_v48  ;;  %v2806_v0 = vadd.f32 %v2775_v7, %v2665_v4 }
 0x85d   :  { %v2726_v19 = vadd.f32 %v2725_v55, %v2724_v11  ;;  %v2654_v56 = vadd.f32 %v2653_v24, %v2652_v8  ;;  %v2672_v8 = vadd.f32 %v2671_v47, %v2670_v21  ;;  %v2539_v55 = vmul.f32 %v2507_v60, %v2443_v58 }
 0x85e   :  { %v2680_v26 = vsel %vm481_vm3, %v2640_v59, 0.0  ;;  %v2888_v36 = vmul.f32 %v2844_v3, %v2808_v40  ;;  %v2570_v2 = vadd.f32 %v2568_v43, %v2531_v27 }
 0x85f   :  { %v2727_v30 = vrot.slane %v2726_v19, 1  ;;  %v2595_v16 = vpop.permute.xlu0 %2594  ;;  %v2619_v15 = vpop.permute.xlu1 %2618  ;;  %v2655_v13 = vrot.slane %v2654_v56, 2  ;;  %v2681_v33 = vrot.slane %v2680_v26, 4  ;;  %v2571_v60 = vadd.f32 %v2569_v63, %v2539_v55 }
 0x860   :  { %v2641_v11 = vmul.f32 %v2595_v16, %v7730_v5  ;;  %v2647_v46 = vmul.f32 %v2619_v15, %v7690_v12  ;;  %v2721_v12 = vadd.f32 %v2720_v10, %v2719_v52  ;;  %v2807_v15 = vadd.f32 %v2776_v6, %v2672_v8 }
 0x861   :  { %v2728_v50 = vadd.f32 %v2727_v30, %v2726_v19  ;;  %v2656_v17 = vadd.f32 %v2655_v13, %v2654_v56  ;;  %v2682_v47 = vadd.f32 %v2681_v33, %v2680_v26  ;;  %v2912_v19 = vpack.c.bf16 %v2888_v36, %v2888_v36 }
 0x862   :  { %v2687_v37 = vsel %vm481_vm3, %v2641_v11, 0.0  ;;  %v2729_v14 = vsel %vm481_vm3, %v2647_v46, 0.0  ;;  %v7781_v30 = vmul.f32 %v7571_v49, %v2806_v0  ;;  %v2814_v6 = vadd.f32 %v2782_v61, %v2721_v12 }
 0x863   :  { %v2688_v24 = vrot.slane %v2687_v37, 4  ;;  %v2599_v59 = vpop.permute.xlu0 %2598  ;;  %v2623_v5 = vpop.permute.xlu1 %2622  ;;  %v2730_v21 = vrot.slane %v2729_v14, 4  ;;  %v2815_v34 = vadd.f32 %v2783_v35, %v2728_v50  ;;  %v2887_v40 = vmul.f32 %v7588_v29, %v2807_v15 }
 0x864   :  { %v2642_v58 = vmul.f32 %v2599_v59, %v2566_v42  ;;  %v2648_v3 = vmul.f32 %v2623_v5, %v7719_v9  ;;  %v2657_v9 = vrot.slane %v2656_v17, 1  ;;  %v2683_v16 = vrot.slane %v2682_v47, 2 }
 0x865   :  { %v2731_v7 = vadd.f32 %v2730_v21, %v2729_v14  ;;  %v2689_v43 = vadd.f32 %v2688_v24, %v2687_v37  ;;  %v7787_v13 = vunpack.c.l.b16 %v2912_v19  ;;  %v2895_v49 = vmul.f32 %v7590_v22, %v2815_v34 }
 0x866   :  { %v2694_v4 = vsel %vm481_vm3, %v2642_v58, 0.0  ;;  %v2736_v56 = vsel %vm481_vm3, %v2648_v3, 0.0  ;;  %v2658_v14 = vadd.f32 %v2657_v9, %v2656_v17  ;;  %v2911_v24 = vpack.c.bf16 %v2887_v40, %v2887_v40 }
 0x867   :  { %v2695_v10 = vrot.slane %v2694_v4, 4  ;;  %v2737_v52 = vrot.slane %v2736_v56, 4  ;;  %v2603_v42 = vpop.permute.xlu0 %2602  ;;  %v2627_v27 = vpop.permute.xlu1 %2626  ;;  %v2732_v46 = vrot.slane %v2731_v7, 2  ;;  %v2690_v36 = vrot.slane %v2689_v43, 2 }
 0x868   :  { %v2643_v26 = vmul.f32 %v2603_v42, %v2570_v2  ;;  %v2649_v35 = vmul.f32 %v2627_v27, %v7744_v41  ;;  %v2894_v59 = vmul.f32 %v7573_v20, %v2814_v6  ;;  %v2684_v5 = vadd.f32 %v2683_v16, %v2682_v47 }
 0x869   :  { %v2738_v11 = vadd.f32 %v2737_v52, %v2736_v56  ;;  %v2696_v8 = vadd.f32 %v2695_v10, %v2694_v4  ;;  %v2733_v12 = vadd.f32 %v2732_v46, %v2731_v7  ;;  %v2919_v3 = vpack.c.bf16 %v2895_v49, %v2895_v49 }
 0x86a   :  { %v2701_v55 = vsel %vm481_vm3, %v2643_v26, 0.0  ;;  %v2743_v33 = vsel %vm481_vm3, %v2649_v35, 0.0  ;;  %v2805_v19 = vadd.f32 %v7679_v28, %v2658_v14  ;;  %v2691_v4 = vadd.f32 %v2690_v36, %v2689_v43 }
 0x86b   :  { %v2744_v50 = vrot.slane %v2743_v33, 4  ;;  %v2607_v61 = vpop.permute.xlu0 %2606  ;;  %v2631_v37 = vpop.permute.xlu1 %2630  ;;  %v2739_v41 = vrot.slane %v2738_v11, 2  ;;  %v2702_v63 = vrot.slane %v2701_v55, 4  ;;  %v2697_v21 = vrot.slane %v2696_v8, 2 }
 0x86c   :  { %v2644_v29 = vmul.f32 %v2607_v61, %v7626_v53  ;;  %v2650_v0 = vmul.f32 %v2631_v37, %v7762_v48  ;;  %v2910_v7 = vpack.c.bf16 %v7781_v30, %v7781_v30  ;;  %v2918_v9 = vpack.c.bf16 %v2894_v59, %v2894_v59 }
 0x86d   :  { %v2745_v2 = vadd.f32 %v2744_v50, %v2743_v33  ;;  %v2740_v48 = vadd.f32 %v2739_v41, %v2738_v11  ;;  %v2703_v56 = vadd.f32 %v2702_v63, %v2701_v55  ;;  %v2698_v42 = vadd.f32 %v2697_v21, %v2696_v8 }
 0x86e   :  { %v2708_v22 = vsel %vm481_vm3, %v2644_v29, 0.0  ;;  %v2750_v58 = vsel %vm481_vm3, %v2650_v0, 0.0  ;;  %v2734_v6 = vrot.slane %v2733_v12, 1  ;;  %v2685_v43 = vrot.slane %v2684_v5, 1 }
 0x86f   :  { %v2709_v15 = vrot.slane %v2708_v22, 4  ;;  %v2751_v17 = vrot.slane %v2750_v58, 4  ;;  %v2838_v34 = vpop.permute.xlu0 %2837  ;;  %v2635_v53 = vpop.permute.xlu1 %2634  ;;  %v2746_v20 = vrot.slane %v2745_v2, 2  ;;  %v2704_v11 = vrot.slane %v2703_v56, 2 }
 0x870   :  { %v2651_v10 = vmul.f32 %v2635_v53, %v2571_v60  ;;  %v2735_v55 = vadd.f32 %v2734_v6, %v2733_v12  ;;  %v2741_v60 = vrot.slane %v2740_v48, 1  ;;  %v2692_v33 = vrot.slane %v2691_v4, 1 }
 0x871   :  { %v2710_v47 = vadd.f32 %v2709_v15, %v2708_v22  ;;  %v2752_v52 = vadd.f32 %v2751_v17, %v2750_v58  ;;  %v2747_v49 = vadd.f32 %v2746_v20, %v2745_v2  ;;  %v2885_v50 = vmul.f32 %v2838_v34, %v2805_v19 }
 0x872   :  { %v2757_v27 = vsel %vm481_vm3, %v2651_v10, 0.0  ;;  %v2686_v61 = vadd.f32 %v2685_v43, %v2684_v5  ;;  %v2816_v37 = vadd.f32 %v2784_v32, %v2735_v55  ;;  %v2742_v14 = vadd.f32 %v2741_v60, %v2740_v48 }
 0x873   :  { %v2711_v26 = vrot.slane %v2710_v47, 2  ;;  %v2753_v35 = vrot.slane %v2752_v52, 2  ;;  %v2758_v40 = vrot.slane %v2757_v27, 4  ;;  %v2854_v16 = vpop.permute.xlu0 %2853  ;;  %v2860_v46 = vpop.permute.xlu1 %2859  ;;  %v7803_v41 = vunpack.c.l.b16 %v2911_v24 }
 0x874   :  { %v2958_v63 = vunpack.c.l.b16 %v2919_v3  ;;  %v2693_v21 = vadd.f32 %v2692_v33, %v2691_v4  ;;  %v2705_v12 = vadd.f32 %v2704_v11, %v2703_v56  ;;  %v2949_v22 = vunpack.c.l.b16 %v2910_v7 }
 0x875   :  { %v2712_v36 = vadd.f32 %v2711_v26, %v2710_v47  ;;  %v2754_v30 = vadd.f32 %v2753_v35, %v2752_v52  ;;  %v2759_v8 = vadd.f32 %v2758_v40, %v2757_v27  ;;  %v2957_v58 = vunpack.c.l.b16 %v2918_v9 }
 0x876   :  { %v2896_v2 = vmul.f32 %v2860_v46, %v2816_v37  ;;  %v2909_v15 = vpack.c.bf16 %v2885_v50, %v2885_v50  ;;  %v8729_v5 = vrot.slane %v7679_v28, 4  ;;  %v2748_v34 = vrot.slane %v2747_v49, 1 }
 0x877   :  { %v2713_v29 = vrot.slane %v2712_v36, 1  ;;  %v2846_v0 = vpop.permute.xlu0 %2845  ;;  %v2862_v59 = vpop.permute.xlu1 %2861  ;;  %v2760_v53 = vrot.slane %v2759_v8, 2  ;;  %v8730_v32 = vrot.slane %v7688_v62, 4  ;;  %v2699_v48 = vrot.slane %v2698_v42, 1 }
 0x878   :  { %v2809_v19 = vadd.f32 %v8729_v5, %v2686_v61  ;;  %v2755_v3 = vrot.slane %v2754_v30, 1  ;;  %v8731_v4 = vrot.slane %v7679_v28, 5  ;;  %v2749_v7 = vadd.f32 %v2748_v34, %v2747_v49 }
 0x879   :  { %v2714_v17 = vadd.f32 %v2713_v29, %v2712_v36  ;;  %v2817_v24 = vadd.f32 %v8730_v32, %v2742_v14  ;;  %v2920_v27 = vpack.c.bf16 %v2896_v2, %v2896_v2  ;;  %v2700_v6 = vadd.f32 %v2699_v48, %v2698_v42 }
 0x87a   :  { %v2889_v20 = vmul.f32 %v2846_v0, %v2809_v19  ;;  %v2810_v56 = vadd.f32 %v8731_v4, %v2693_v21  ;;  %v2706_v26 = vrot.slane %v2705_v12, 1  ;;  %v8732_v46 = vrot.slane %v7688_v62, 5 }
 0x87b   :  { %v2813_v10 = vadd.f32 %v7688_v62, %v2714_v17  ;;  %v2848_v47 = vpop.permute.xlu0 %2847  ;;  %v2864_v52 = vpop.permute.xlu1 %2863  ;;  %v2897_v9 = vmul.f32 %v2862_v59, %v2817_v24  ;;  %v2756_v11 = vadd.f32 %v2755_v3, %v2754_v30  ;;  %v2964_v55 = vrot.slane %v2949_v22, 7 }
 0x87c   :  { %v2890_v40 = vmul.f32 %v2848_v47, %v2810_v56  ;;  %v2818_v43 = vadd.f32 %v8732_v46, %v2749_v7  ;;  %v2948_v60 = vunpack.c.l.b16 %v2909_v15  ;;  %v2761_v33 = vadd.f32 %v2760_v53, %v2759_v8 }
 0x87d   :  { %v2893_v35 = vmul.f32 %v2854_v16, %v2813_v10  ;;  %v8733_v36 = vrot.slane %v7679_v28, 6  ;;  %v2913_v37 = vpack.c.bf16 %v2889_v20, %v2889_v20  ;;  %v8734_v42 = vrot.slane %v7688_v62, 6 }
 0x87e   :  { %v2898_v14 = vmul.f32 %v2864_v52, %v2818_v43  ;;  %v2978_v16 = vrot.slane %v2957_v58, 7  ;;  %v2921_v59 = vpack.c.bf16 %v2897_v9, %v2897_v9  ;;  %v2707_v2 = vadd.f32 %v2706_v26, %v2705_v12 }
 0x87f   :  { %v2811_v50 = vadd.f32 %v8733_v36, %v2700_v6  ;;  %v2917_v61 = vpack.c.bf16 %v2893_v35, %v2893_v35  ;;  %v2850_v49 = vpop.permute.xlu0 %2849  ;;  %v2866_v29 = vpop.permute.xlu1 %2865  ;;  %v2819_v0 = vadd.f32 %v8734_v42, %v2756_v11  ;;  %v2959_v30 = vunpack.c.l.b16 %v2920_v27 }
 0x880   :  { %v2914_v22 = vpack.c.bf16 %v2890_v40, %v2890_v40  ;;  %v2980_v8 = vrot.slane %v2958_v63, 6  ;;  %v8735_v19 = vrot.slane %v7679_v28, 7  ;;  %v2762_v53 = vrot.slane %v2761_v33, 1 }
 0x881   :  { %v2891_v21 = vmul.f32 %v2850_v49, %v2811_v50  ;;  %v2956_v17 = vunpack.c.l.b16 %v2917_v61  ;;  %v2899_v15 = vmul.f32 %v2866_v29, %v2819_v0  ;;  %v2965_v32 = vsel %vm1545_vm6, %v2964_v55, %v2948_v60 }
 0x882   :  { %v2812_v34 = vadd.f32 %v8735_v19, %v2707_v2  ;;  %v2952_v48 = vunpack.c.l.b16 %v2913_v37  ;;  %v2922_v3 = vpack.c.bf16 %v2898_v14, %v2898_v14  ;;  %v2960_v12 = vunpack.c.l.b16 %v2921_v59  ;;  %v5884_v19 = vld [vmem:[%s8739_s2] ss:$0 sm:$0xff] }
 0x883   :  { %v2915_v5 = vpack.c.bf16 %v2891_v21, %v2891_v21  ;;  %v2979_v24 = vsel %vm1545_vm6, %v2978_v16, %v2956_v17  ;;  %v2852_v58 = vpop.permute.xlu0 %2851  ;;  %v2923_v20 = vpack.c.bf16 %v2899_v15, %v2899_v15  ;;  %v2966_v56 = vrot.slane %v7803_v41, 6  ;;  %v2868_v27 = vpop.permute.xlu1 %2867  ;;  %v6260_v15 = vld [vmem:[%s8737_s12 + $0x8] sm:$0xff]  }
 0x884   :  { %v2981_v10 = vsel %vm1548_vm7, %v2980_v8, %v2979_v24  ;;  %v2892_v4 = vmul.f32 %v2852_v58, %v2812_v34  ;;  %v2982_v63 = vrot.slane %v2959_v30, 5  ;;  %v2953_v47 = vunpack.c.l.b16 %v2914_v22  ;;  %v6259_v22 = vld [vmem:[%s8737_s12] sm:$0xff]  }
 0x885   :  { %v2763_v52 = vadd.f32 %v2762_v53, %v2761_v33  ;;  %v2954_v28 = vunpack.c.l.b16 %v2915_v5  ;;  %v2967_v9 = vsel %vm1548_vm7, %v2966_v56, %v2965_v32  ;;  %v2961_v26 = vunpack.c.l.b16 %v2922_v3  ;;  %6096 = vmatpush3.bf16.msra.mxu1 %v6259_v22  ;;  %v5878_v8 = vld [vmem:[%s8738_s27] ss:$0 sm:$0xff]  ;;  %v6262_v56 = vld [vmem:[%s8740_s7 + $0x8] sm:$0xff]  }
 0x886   :  { %v2916_v7 = vpack.c.bf16 %v2892_v4, %v2892_v4  ;;  %v2983_v6 = vsel %vm1551_vm8, %v2982_v63, %v2981_v10  ;;  %v8736_v35 = vrot.slane %v7688_v62, 7  ;;  %v2970_v46 = vrot.slane %v2952_v48, 4  ;;  %6097 = vmatprep.subr.bf16.mxu1 %v8720_v23  ;;  %v6261_v4 = vld [vmem:[%s8740_s7] sm:$0xff]  }
 0x887   :  { %v2984_v43 = vrot.slane %v2960_v12, 4  ;;  %v2962_v11 = vunpack.c.l.b16 %v2923_v20  ;;  %v2968_v41 = vrot.slane %v7787_v13, 5  ;;  %v2972_v60 = vrot.slane %v2953_v47, 3  ;;  %v5885_v63 = vld [vmem:[%s8741_s4] ss:$0 sm:$0xff] }
 0x888   :  { %v2820_v40 = vadd.f32 %v8736_v35, %v2763_v52  ;;  %v2955_v55 = vunpack.c.l.b16 %v2916_v7  ;;  %v2974_v50 = vrot.slane %v2954_v28, 2  ;;  %v2986_v37 = vrot.slane %v2961_v26, 3  ;;  %v5889_v52 = vld [vmem:[%s8742_s10] ss:$0 sm:$0xff] }
 0x889   :  { %v2985_v33 = vsel %vm1554_vm9, %v2984_v43, %v2983_v6  ;;  %v2969_v61 = vsel %vm1551_vm8, %v2968_v41, %v2967_v9  ;;  %v2988_v29 = vrot.slane %v2962_v11, 2  ;;  %6098 = vmatpush3.bf16.msra.mxu1 %v6260_v15 }
 0x88a   :  { %v2900_v36 = vmul.f32 %v2868_v27, %v2820_v40  ;;  %v2976_v14 = vrot.slane %v2955_v55, 1  ;;  %v2971_v62 = vsel %vm1554_vm9, %v2970_v46, %v2969_v61  ;;  %v2987_v0 = vsel %vm1557_vm10, %v2986_v37, %v2985_v33  ;;  %6115 = vmatprep.subr.bf16.mxu1 %v8720_v23 }
 0x88b   :  { %v2973_v42 = vsel %vm1557_vm10, %v2972_v60, %v2971_v62  ;;  %v2989_v2 = vsel %vm1560_vm11, %v2988_v29, %v2987_v0 }
 0x88c   :  { %v2924_v49 = vpack.c.bf16 %v2900_v36, %v2900_v36  ;;  %v2975_v16 = vsel %vm1560_vm11, %v2974_v50, %v2973_v42 }
 0x88d   :  { %v2977_v59 = vsel %vm1563_vm12, %v2976_v14, %v2975_v16 }
 0x88e   :  { %v2963_v13 = vunpack.c.l.b16 %v2924_v49 }
 0x890   :  { %v2990_v21 = vrot.slane %v2963_v13, 1 }
 0x892   :  { %v2991_v17 = vsel %vm1563_vm12, %v2990_v21, %v2989_v2 }
 0x893   :  { %v2992_v30 = vpack.c.b16 %v2991_v17, %v2977_v59 }
 0x895   :  { %6092 = vmatmul.mubr.msk.bf16.vlgmr.msra.gmra.mrb[16].mxu0 %vm481_vm3, %v2992_v30 }
 0x896   :  { %6111 = vmatprep.mubr.msk.bf16.mxu0 %vm6671_vm0, %v8720_v23  ;;  %6104 = vmatpush3.bf16.msra.mxu0 %v6261_v4 }
 0x897   :  { %6105 = vmatprep.subr.bf16.mxu0 %v8720_v23 }
 0x89a   :  { %6106 = vmatpush3.bf16.msra.mxu0 %v6262_v56 }
 0x89b   :  { %6107 = vmatprep.subr.bf16.mxu0 %v8720_v23 }
 0x968   :  { %v3054_v5 = vpop.f32.mrb[16].mxu0 }
 0x969   :  { %v3055_v34 = vadd.f32 %v5878_v8, %v3054_v5  ;;  %v6093_v53 = vpop.f32.mrb[17].mxu0 }
 0x96a   :  { %v3057_v32 = vpop.f32.mrb[18].mxu0 }
 0x96b   :  { %v3068_v24 = vmul.f32 %v5884_v19, %v3055_v34  ;;  %v3058_v48 = vadd.f32 %v5878_v8, %v3057_v32  ;;  %v6094_v3 = vpop.f32.mrb[19].mxu0  ;;  %v5897_v32 = vld [vmem:[%s8743_s11] ss:$0 sm:$0xff] }
 0x96d   :  { %v3069_v58 = vmul.f32 %v5884_v19, %v3058_v48  ;;  %v7848_v10 = vadd.f32 %v3068_v24, %v7452_v25  ;;  %v6263_v25 = vld [vmem:[%s8740_s7 + $0x10] sm:$0xff]  }
 0x96e   :  { %6108 = vmatpush3.bf16.msra.mxu0 %v6263_v25 }
 0x96f   :  { %v7851_v12 = vadd.f32 %v3069_v58, %v7455_v18  ;;  %v6264_v18 = vld [vmem:[%s8740_s7 + $0x18] sm:$0xff]   ;;  %6109 = vmatprep.subr.bf16.mxu0 %v8720_v23 }
 0x971   :  { %v3076_v20 = vpack.c.bf16 %v7851_v12, %v7848_v10 }
 0x972   :  { %6110 = vmatpush3.bf16.msra.mxu0 %v6264_v18 }
 0x973   :  { %6100 = vmatmul.mubr.msk.bf16.vlgmr.msra.gmra.mrb[16].mxu1 %vm276_vm1, %v3076_v20  ;;  %6127 = vmatprep.subr.bf16.mxu0 %v8720_v23 }
 0x974   :  { %6123 = vmatprep.mubr.msk.bf16.mxu1 %vm6671_vm0, %v8720_v23 }
 0xa46   :  { %v3133_v47 = vpop.f32.mrb[16].mxu1 }
 0xa47   :  { %v3134_v28 = vadd.f32 %v5885_v63, %v3133_v47  ;;  %v6101_v7 = vpop.f32.mrb[17].mxu1 }
 0xa48   :  { %v3136_v27 = vpop.f32.mrb[18].mxu1 }
 0xa49   :  { %v3147_v9 = vmul.f32 %v5889_v52, %v3134_v28  ;;  %v3137_v6 = vadd.f32 %v5885_v63, %v3136_v27  ;;  %v6102_v26 = vpop.f32.mrb[19].mxu1 }
 0xa4b   :  { %v5890_v35 = vmul.f32 -1.442695, %v3147_v9  ;;  %v3148_v40 = vmul.f32 %v5889_v52, %v3137_v6 }
 0xa4d   :  { %6377 = vpow2.f32 %v5890_v35  ;;  %v5891_v46 = vmul.f32 -1.442695, %v3148_v40 }
 0xa4f   :  { %6379 = vpow2.f32 %v5891_v46 }
 0xa57   :  { %v6378_v43 = vpop.eup %6377 }
 0xa58   :  { %v3155_v11 = vadd.f32 1.0, %v6378_v43 }
 0xa59   :  { %v6380_v55 = vpop.eup %6379 }
 0xa5a   :  { %6381 = vrcp.f32 %v3155_v11  ;;  %v3156_v41 = vadd.f32 1.0, %v6380_v55 }
 0xa5c   :  { %6383 = vrcp.f32 %v3156_v41 }
 0xa64   :  { %v6382_v60 = vpop.eup %6381 }
 0xa65   :  { %v7868_v36 = vmul.f32 %v6382_v60, %v3147_v9 }
 0xa66   :  { %v6384_v33 = vpop.eup %6383 }
 0xa67   :  { %v7870_v50 = vmul.f32 %v6384_v33, %v3148_v40  ;;  %v4117_v61 = vrot.slane %v7868_v36, 1  ;;  %v4118_v49 = vrot.slane %v7868_v36, 2  ;;  %v4119_v52 = vrot.slane %v7868_v36, 3 }
 0xa68   :  { %v4120_v43 = vrot.slane %v7868_v36, 4 }
 0xa69   :  { %4133 = vrot.lane.b32.xlu0 %v4117_v61, %s6672_s9  ;;  %v4124_v37 = vrot.slane %v7870_v50, 1  ;;  %v3171_v14 = vpack.c.bf16 %v7870_v50, %v7868_v36  ;;  %v4125_v62 = vrot.slane %v7870_v50, 2  ;;  %v4126_v26 = vrot.slane %v7870_v50, 3 }
 0xa6a   :  { %v4127_v11 = vrot.slane %v7870_v50, 4 }
 0xa6b   :  { %4149 = vrot.lane.b32.xlu1 %v4124_v37, %s6672_s9  ;;  %6112 = vmatmul.mubr.msk.bf16.vlgmr.msra.gmra.mrb[20].mxu0 %vm481_vm3, %v3171_v14  ;;  %v4121_v37 = vrot.slane %v7868_v36, 5  ;;  %v4128_v14 = vrot.slane %v7870_v50, 5 }
 0xa6c   :  { %6131 = vmatprep.mubr.msk.bf16.mxu0 %vm6671_vm0, %v8720_v23 }
 0xa6d   :  { %4135 = vrot.lane.b32.xlu0 %v4118_v49, %s6672_s9 }
 0xa6f   :  { %4151 = vrot.lane.b32.xlu1 %v4125_v62, %s6672_s9 }
 0xb3e   :  { %v3233_v29 = vpop.f32.mrb[20].mxu0 }
 0xb3f   :  { %v6113_v42 = vpop.f32.mrb[21].mxu0  ;;  %v3637_v0 = vrot.slane %v3233_v29, %v6993_v44  ;;  %v3613_v13 = vrot.slane %v3233_v29, %v6985_v38  ;;  %v3621_v21 = vrot.slane %v3233_v29, %v6988_v39  ;;  %v3629_v17 = vrot.slane %v3233_v29, %v6996_v45 }
 0xb40   :  { %v3236_v16 = vpop.f32.mrb[22].mxu0  ;;  %v3645_v15 = vrot.slane %v3233_v29, %v7004_v51  ;;  %v3653_v5 = vrot.slane %v3233_v29, %v7010_v54  ;;  %v3661_v34 = vrot.slane %v3233_v29, %v7017_v57  ;;  %v7899_v24 = vadd.f32 %v5897_v32, %v3233_v29 }
 0xb41   :  { %3880 = vbcast.lane.b32.xlu1 %v3637_v0, 328  ;;  %3616 = vbcast.lane.b32.xlu0 %v3613_v13, 320  ;;  %v6114_v59 = vpop.f32.mrb[23].mxu0  ;;  %v3677_v2 = vrot.slane %v3236_v16, %v6985_v38  ;;  %v3685_v30 = vrot.slane %v3236_v16, %v6988_v39  ;;  %v3693_v22 = vrot.slane %v3236_v16, %v6996_v45 }
 0xb42   :  { %v3701_v8 = vrot.slane %v3236_v16, %v6993_v44  ;;  %v3709_v19 = vrot.slane %v3236_v16, %v7004_v51  ;;  %v3717_v53 = vrot.slane %v3236_v16, %v7010_v54  ;;  %v3725_v48 = vrot.slane %v3236_v16, %v7017_v57 }
 0xb43   :  { %v3251_v3 = vand.u32 2147483647, %v7899_v24  ;;  %v7903_v58 = vadd.f32 %v5897_v32, %v3236_v16  ;;  %v3669_v56 = vrot.slane %v3233_v29, %v7030_v1  ;;  %v3733_v63 = vrot.slane %v3236_v16, %v7030_v1 }
 0xb44   :  { %v3249_v42 = vmax.f32 %v7899_v24, 0.0  ;;  %v4122_v16 = vrot.slane %v7868_v36, 6  ;;  %v4129_v59 = vrot.slane %v7870_v50, 6 }
 0xb45   :  { %3624 = vbcast.lane.b32.xlu0 %v3621_v21, 320  ;;  %3680 = vbcast.lane.b32.xlu1 %v3677_v2, 320  ;;  %v3253_v20 = vsub.f32 0.0, %v3251_v3  ;;  %v3252_v4 = vand.u32 2147483647, %v7903_v58  ;;  %v7945_v3 = vld [vmem:[%s8745_s16] sm:$0xff] }
 0xb47   :  { %v3255_v25 = vmul.f32 1.442695, %v3253_v20  ;;  %v3254_v18 = vsub.f32 0.0, %v3252_v4 }
 0xb49   :  { %3632 = vbcast.lane.b32.xlu0 %v3629_v17, 320  ;;  %3688 = vbcast.lane.b32.xlu1 %v3685_v30, 320  ;;  %6385 = vpow2.f32 %v3255_v25  ;;  %v3257_v47 = vmul.f32 1.442695, %v3254_v18 }
 0xb4b   :  { %6387 = vpow2.f32 %v3257_v47 }
 0xb4d   :  { %3640 = vbcast.lane.b32.xlu0 %v3637_v0, 320  ;;  %3696 = vbcast.lane.b32.xlu1 %v3693_v22, 320  ;;  %v6265_v0 = vld [vmem:[%s8744_s15] sm:$0xff]  }
 0xb4e   :  { %6116 = vmatpush3.bf16.msra.mxu1 %v6265_v0 }
 0xb4f   :  { %6117 = vmatprep.subr.bf16.mxu1 %v8720_v23 }
 0xb51   :  { %3648 = vbcast.lane.b32.xlu0 %v3645_v15, 320  ;;  %3704 = vbcast.lane.b32.xlu1 %v3701_v8, 320 }
 0xb53   :  { %v6386_v28 = vpop.eup %6385 }
 0xb54   :  { %v3259_v7 = vadd.f32 1.0, %v6386_v28  ;;  %v3262_v6 = vmul.f32 -0.5, %v6386_v28  ;;  %v3265_v55 = vand.u32 2147483647, %v6386_v28 }
 0xb55   :  { %3656 = vbcast.lane.b32.xlu0 %v3653_v5, 320  ;;  %3712 = vbcast.lane.b32.xlu1 %v3709_v19, 320  ;;  %v6388_v27 = vpop.eup %6387 }
 0xb56   :  { %6389 = vlog2.f32 %v3259_v7  ;;  %v3268_v9 = vadd.f32 1.0, %v6388_v27  ;;  %v3263_v40 = vadd.f32 1.0, %v3262_v6  ;;  %v3271_v46 = vmul.f32 -0.5, %v6388_v27 }
 0xb57   :  { %vm3266_vm15 = vcmp.lt.f32.partialorder %v3265_v55, 0.0004427343  ;;  %v3274_v49 = vand.u32 2147483647, %v6388_v27 }
 0xb58   :  { %6391 = vlog2.f32 %v3268_v9  ;;  %v3264_v33 = vmul.f32 %v6386_v28, %v3263_v40  ;;  %v3272_v61 = vadd.f32 1.0, %v3271_v46 }
 0xb59   :  { %3664 = vbcast.lane.b32.xlu0 %v3661_v34, 320  ;;  %3720 = vbcast.lane.b32.xlu1 %v3717_v53, 320  ;;  %vm3275_vm2 = vcmp.lt.f32.partialorder %v3274_v49, 0.0004427343 }
 0xb5d   :  { %3872 = vbcast.lane.b32.xlu0 %v3621_v21, 328  ;;  %3728 = vbcast.lane.b32.xlu1 %v3725_v48, 320 }
 0xb60   :  { %v6390_v35 = vpop.eup %6389 }
 0xb61   :  { %3876 = vbcast.lane.b32.xlu0 %v3629_v17, 328  ;;  %3904 = vbcast.lane.b32.xlu1 %v3685_v30, 328  ;;  %v3261_v41 = vmul.f32 0.6931472, %v6390_v35  ;;  %v3250_v17 = vmax.f32 %v7903_v58, 0.0  ;;  %v4123_v30 = vrot.slane %v7868_v36, 7 }
 0xb62   :  { %v6392_v60 = vpop.eup %6391  ;;  %v6268_v58 = vld [vmem:[%s8744_s15 + $0x18] sm:$0xff]  }
 0xb63   :  { %v3267_v62 = vsel %vm3266_vm15, %v3264_v33, %v3261_v41  ;;  %v3270_v29 = vmul.f32 0.6931472, %v6392_v60  ;;  %v7966_v60 = vpop.permute.xlu0 %4133  ;;  %v7968_v33 = vpop.permute.xlu1 %4149 }
 0xb64   :  { %v3277_v21 = vadd.f32 %v3267_v62, %v3249_v42 }
 0xb65   :  { %3672 = vbcast.lane.b32.xlu0 %v3669_v56, 320  ;;  %3908 = vbcast.lane.b32.xlu1 %v3693_v22, 328  ;;  %v4130_v22 = vrot.slane %v7870_v50, 7 }
 0xb66   :  { %v7958_v9 = vmul.f32 %v3277_v21, %v7868_v36  ;;  %v3282_v40 = vcombine.high %v3277_v21, %v3277_v21 }
 0xb69   :  { %3868 = vbcast.lane.b32.xlu0 %v3613_v13, 328  ;;  %3736 = vbcast.lane.b32.xlu1 %v3733_v63, 320  ;;  %v3273_v13 = vmul.f32 %v6388_v27, %v3272_v61 }
 0xb6d   :  { %3884 = vbcast.lane.b32.xlu0 %v3645_v15, 328  ;;  %4137 = vrot.lane.b32.xlu1 %v4119_v52, %s6672_s9  ;;  %v3289_v15 = vrot.slane %v3277_v21, %v7060_v31 }
 0xb6f   :  { %v3297_v32 = vcombine.high %v3289_v15, %v3289_v15 }
 0xb71   :  { %3888 = vbcast.lane.b32.xlu0 %v3653_v5, 328  ;;  %3912 = vbcast.lane.b32.xlu1 %v3701_v8, 328  ;;  %v6266_v5 = vld [vmem:[%s8744_s15 + $0x8] sm:$0xff]   ;;  %v3319_v20 = vrot.slane %v3297_v32, %v7060_v31 }
 0xb72   :  { %6118 = vmatpush3.bf16.msra.mxu1 %v6266_v5 }
 0xb73   :  { %6119 = vmatprep.subr.bf16.mxu1 %v8720_v23  ;;  %v3329_v7 = vcombine.high %v3319_v20, %v3319_v20 }
 0xb75   :  { %3892 = vbcast.lane.b32.xlu0 %v3661_v34, 328  ;;  %3916 = vbcast.lane.b32.xlu1 %v3709_v19, 328  ;;  %v3305_v19 = vrot.slane %v3289_v15, %v7060_v31  ;;  %v3395_v41 = vrot.slane %v3329_v7, %v6985_v38  ;;  %v7986_v15 = vpop.permute.xlu0 %4135 }
 0xb77   :  { %v3383_v24 = vrot.slane %v3305_v19, %v6985_v38  ;;  %v3327_v18 = vcombine.high %v3305_v19, %v3305_v19 }
 0xb79   :  { %3896 = vbcast.lane.b32.xlu0 %v3669_v56, 328  ;;  %3920 = vbcast.lane.b32.xlu1 %v3717_v53, 328  ;;  %v6267_v53 = vld [vmem:[%s8744_s15 + $0x10] sm:$0xff]   ;;  %v3460_v56 = vmul.f32 %v3383_v24, %v7945_v3  ;;  %v3391_v27 = vrot.slane %v3327_v18, %v6985_v38 }
 0xb7a   :  { %6120 = vmatpush3.bf16.msra.mxu1 %v6267_v53 }
 0xb7b   :  { %6121 = vmatprep.subr.bf16.mxu1 %v8720_v23  ;;  %v3476_v52 = vmul.f32 1.442695, %v3460_v56  ;;  %v3462_v55 = vmul.f32 %v3391_v27, %v7945_v3 }
 0xb7d   :  { %3900 = vbcast.lane.b32.xlu0 %v3677_v2, 328  ;;  %3924 = vbcast.lane.b32.xlu1 %v3725_v48, 328  ;;  %v3276_v2 = vsel %vm3275_vm2, %v3273_v13, %v3270_v29  ;;  %6393 = vpow2.f32 %v3476_v52  ;;  %v3296_v29 = vrot.slane %v3282_v40, %v7060_v31  ;;  %v3480_v13 = vmul.f32 1.442695, %v3462_v55 }
 0xb7e   :  { %v3278_v8 = vadd.f32 %v3276_v2, %v3250_v17  ;;  %6122 = vmatpush3.bf16.msra.mxu1 %v6268_v58 }
 0xb7f   :  { %6135 = vmatprep.subr.bf16.mxu1 %v8720_v23 }
 0xb80   :  { %v3338_v34 = vrot.slane %v3278_v8, %v7060_v31 }
 0xb81   :  { %4131 = vrot.lane.b32.xlu0 %v7868_v36, %s6672_s9  ;;  %3928 = vbcast.lane.b32.xlu1 %v3733_v63, 328  ;;  %v3387_v63 = vrot.slane %v3319_v20, %v6985_v38 }
 0xb82   :  { %v3354_v48 = vrot.slane %v3338_v34, %v7060_v31  ;;  %v3346_v4 = vcombine.high %v3338_v34, %v3338_v34 }
 0xb83   :  { %v3461_v6 = vmul.f32 %v3387_v63, %v7945_v3 }
 0xb84   :  { %v3415_v25 = vrot.slane %v3354_v48, %v6985_v38  ;;  %v3368_v47 = vrot.slane %v3346_v4, %v7060_v31 }
 0xb85   :  { %4147 = vrot.lane.b32.xlu0 %v7870_v50, %s6672_s9  ;;  %4153 = vrot.lane.b32.xlu1 %v4126_v26, %s6672_s9  ;;  %v3376_v26 = vcombine.high %v3354_v48, %v3354_v48  ;;  %v3478_v61 = vmul.f32 1.442695, %v3461_v6  ;;  %v3298_v48 = vcombine.high %v3296_v29, %v3296_v29 }
 0xb86   :  { %v3468_v28 = vmul.f32 %v3415_v25, %v7945_v3  ;;  %v3419_v35 = vrot.slane %v3368_v47, %v6985_v38  ;;  %v3378_v62 = vcombine.high %v3368_v47, %v3368_v47 }
 0xb87   :  { %v6394_v53 = vpop.eup %6393 }
 0xb88   :  { %v3492_v46 = vmul.f32 1.442695, %v3468_v28  ;;  %v3469_v49 = vmul.f32 %v3419_v35, %v7945_v3  ;;  %v3834_v7 = vmul.f32 0.0, %v6394_v53  ;;  %v8006_v35 = vrot.slane %v3298_v48, %v7060_v31 }
 0xb89   :  { %4139 = vrot.lane.b32.xlu0 %v4120_v43, %s6672_s9  ;;  %4155 = vrot.lane.b32.xlu1 %v4127_v11, %s6672_s9  ;;  %v3331_v43 = vcombine.high %v3278_v8, %v3278_v8  ;;  %v3519_v11 = vrot.slane %v7958_v9, %v7060_v31 }
 0xb8a   :  { %6395 = vpow2.f32 %v3492_v46  ;;  %v3494_v21 = vmul.f32 1.442695, %v3469_v49  ;;  %v3512_v49 = vcombine.high %v7958_v9, %v7958_v9 }
 0xb8b   :  { %v3345_v42 = vrot.slane %v3331_v43, %v7060_v31  ;;  %v3527_v0 = vcombine.high %v3519_v11, %v3519_v11  ;;  %6397 = vpow2.f32 %v3478_v61  ;;  %v3535_v17 = vrot.slane %v3519_v11, %v7060_v31 }
 0xb8c   :  { %6399 = vpow2.f32 %v3480_v13 }
 0xb8d   :  { %4141 = vrot.lane.b32.xlu0 %v4121_v37, %s6672_s9  ;;  %4157 = vrot.lane.b32.xlu1 %v4128_v14, %s6672_s9  ;;  %v3423_v37 = vrot.slane %v3376_v26, %v6985_v38  ;;  %v7972_v14 = vmul.f32 %v3278_v8, %v7870_v50  ;;  %v7988_v8 = vpop.permute.xlu1 %4151  ;;  %v7991_v5 = vrot.slane %v3345_v42, %v7060_v31  ;;  %6401 = vpow2.f32 %v3494_v21 }
 0xb8e   :  { %v3549_v19 = vrot.slane %v3527_v0, %v7060_v31  ;;  %v3741_v58 = vrot.slane %v3535_v17, %v6985_v38  ;;  %v3557_v63 = vcombine.high %v3535_v17, %v3535_v17  ;;  %v3347_v52 = vcombine.high %v3345_v42, %v3345_v42 }
 0xb8f   :  { %v3470_v2 = vmul.f32 %v3423_v37, %v7945_v3  ;;  %v3431_v47 = vrot.slane %v7991_v5, %v6985_v38  ;;  %v3403_v17 = vrot.slane %v8006_v35, %v6985_v38 }
 0xb90   :  { %v3745_v6 = vrot.slane %v3549_v19, %v6985_v38  ;;  %v3749_v37 = vrot.slane %v3557_v63, %v6985_v38  ;;  %v3559_v21 = vcombine.high %v3549_v19, %v3549_v19  ;;  %v3561_v19 = vcombine.high %v7972_v14, %v7972_v14 }
 0xb91   :  { %4143 = vrot.lane.b32.xlu0 %v4122_v16, %s6672_s9  ;;  %4159 = vrot.lane.b32.xlu1 %v4129_v59, %s6672_s9  ;;  %v3463_v16 = vmul.f32 %v3395_v41, %v7945_v3  ;;  %v3568_v59 = vrot.slane %v7972_v14, %v7060_v31  ;;  %v3496_v24 = vmul.f32 1.442695, %v3470_v2 }
 0xb93   :  { %v3482_v34 = vmul.f32 1.442695, %v3463_v16  ;;  %v3576_v32 = vcombine.high %v3568_v59, %v3568_v59  ;;  %v3584_v20 = vrot.slane %v3568_v59, %v7060_v31 }
 0xb94   :  { %v6396_v27 = vpop.eup %6395 }
 0xb95   :  { %4145 = vrot.lane.b32.xlu0 %v4123_v30, %s6672_s9  ;;  %4161 = vrot.lane.b32.xlu1 %v4130_v22, %s6672_s9  ;;  %v7983_v30 = vrot.slane %v3296_v29, %v7060_v31  ;;  %v3427_v22 = vrot.slane %v3378_v62, %v6985_v38  ;;  %6403 = vpow2.f32 %v3482_v34  ;;  %v3598_v26 = vrot.slane %v3576_v32, %v7060_v31  ;;  %v6398_v55 = vpop.eup %6397 }
 0xb96   :  { %6405 = vpow2.f32 %v3496_v24  ;;  %v3773_v46 = vrot.slane %v3584_v20, %v6985_v38  ;;  %v3472_v62 = vmul.f32 %v3431_v47, %v7945_v3  ;;  %v8017_v29 = vrot.slane %v3347_v52, %v7060_v31 }
 0xb97   :  { %v3399_v4 = vrot.slane %v7983_v30, %v6985_v38  ;;  %v3471_v56 = vmul.f32 %v3427_v22, %v7945_v3  ;;  %v3835_v16 = vmul.f32 0.0, %v6396_v27  ;;  %v3777_v59 = vrot.slane %v3598_v26, %v6985_v38  ;;  %v6400_v22 = vpop.eup %6399 }
 0xb98   :  { %v3606_v2 = vcombine.high %v3584_v20, %v3584_v20  ;;  %v6402_v32 = vpop.eup %6401  ;;  %v3500_v20 = vmul.f32 1.442695, %v3472_v62  ;;  %v3753_v52 = vrot.slane %v3559_v21, %v6985_v38  ;;  %v3328_v27 = vcombine.high %v7983_v30, %v7983_v30 }
 0xb99   :  { %v3464_v43 = vmul.f32 %v3399_v4, %v7945_v3  ;;  %v3498_v11 = vmul.f32 1.442695, %v3471_v56  ;;  %v3435_v4 = vrot.slane %v8017_v29, %v6985_v38 }
 0xb9b   :  { %v3484_v53 = vmul.f32 1.442695, %v3464_v43  ;;  %6407 = vpow2.f32 %v3498_v11  ;;  %v3465_v43 = vmul.f32 %v3403_v17, %v7945_v3 }
 0xb9d   :  { %6409 = vpow2.f32 %v3484_v53  ;;  %v3486_v21 = vmul.f32 1.442695, %v3465_v43 }
 0xb9e   :  { %6411 = vpow2.f32 %v3500_v20 }
 0xb9f   :  { %6413 = vpow2.f32 %v3486_v21 }
 0xbb3   :  { %v7999_v25 = vpop.permute.xlu1 %3880  ;;  %v3617_v18 = vpop.permute.xlu0 %3616 }
 0xbb4   :  { %v3818_v28 = vmul.f32 %v3741_v58, %v3617_v18  ;;  %v8028_v58 = vrot.slane %v3512_v49, %v7060_v31 }
 0xbb6   :  { %v8008_v40 = vadd.f32 %v3834_v7, %v3818_v28  ;;  %v3781_v28 = vrot.slane %v3606_v2, %v6985_v38  ;;  %v3608_v7 = vcombine.high %v3598_v26, %v3598_v26  ;;  %v3377_v26 = vcombine.high %v7991_v5, %v7991_v5 }
 0xbb7   :  { %v3625_v41 = vpop.permute.xlu0 %3624  ;;  %v3681_v61 = vpop.permute.xlu1 %3680 }
 0xbb8   :  { %v3819_v42 = vmul.f32 %v3745_v6, %v3625_v41  ;;  %v3838_v0 = vmul.f32 %v6398_v55, %v8008_v40  ;;  %v3826_v13 = vmul.f32 %v3773_v46, %v3681_v61  ;;  %v6404_v6 = vpop.eup %6403  ;;  %v3575_v61 = vrot.slane %v3561_v19, %v7060_v31 }
 0xbb9   :  { %v6406_v11 = vpop.eup %6405  ;;  %v3439_v5 = vrot.slane %v3377_v26, %v6985_v38 }
 0xbba   :  { %v8023_v34 = vadd.f32 %v3838_v0, %v3819_v42  ;;  %v8025_v9 = vadd.f32 %v3835_v16, %v3826_v13  ;;  %v3407_v0 = vrot.slane %v3328_v27, %v6985_v38  ;;  %v3785_v16 = vrot.slane %v3608_v7, %v6985_v38  ;;  %v6408_v53 = vpop.eup %6407 }
 0xbbb   :  { %v3633_v24 = vpop.permute.xlu0 %3632  ;;  %v3689_v48 = vpop.permute.xlu1 %3688  ;;  %v8062_v19 = vrot.slane %v3575_v61, %v7060_v31  ;;  %v3474_v7 = vmul.f32 %v3439_v5, %v7945_v3 }
 0xbbc   :  { %v3820_v56 = vmul.f32 %v3749_v37, %v3633_v24  ;;  %v3842_v18 = vmul.f32 %v6400_v22, %v8023_v34  ;;  %v3827_v63 = vmul.f32 %v3777_v59, %v3689_v48  ;;  %v3839_v47 = vmul.f32 %v6402_v32, %v8025_v9  ;;  %v6410_v27 = vpop.eup %6409 }
 0xbbd   :  { %v3473_v37 = vmul.f32 %v3435_v4, %v7945_v3  ;;  %v8059_v24 = vrot.slane %v8028_v58, %v7060_v31  ;;  %v3466_v4 = vmul.f32 %v3407_v0, %v7945_v3  ;;  %v3789_v43 = vrot.slane %v8062_v19, %v6985_v38 }
 0xbbe   :  { %v8040_v14 = vadd.f32 %v3842_v18, %v3820_v56  ;;  %v8042_v46 = vadd.f32 %v3839_v47, %v3827_v63  ;;  %v3528_v18 = vcombine.high %v8028_v58, %v8028_v58  ;;  %v5898_v63 = vld [vmem:[%s8746_s18] ss:$0 sm:$0xff]  ;;  %v3577_v58 = vcombine.high %v3575_v61, %v3575_v61 }
 0xbbf   :  { %v3641_v55 = vpop.permute.xlu0 %3640  ;;  %v3697_v41 = vpop.permute.xlu1 %3696  ;;  %v3502_v22 = vmul.f32 1.442695, %v3473_v37  ;;  %v8082_v37 = vmul.f32 %v5898_v63, %v7868_v36  ;;  %v3488_v26 = vmul.f32 1.442695, %v3466_v4  ;;  %v3504_v21 = vmul.f32 1.442695, %v3474_v7 }
 0xbc0   :  { %v3821_v30 = vmul.f32 %v3753_v52, %v3641_v55  ;;  %v3846_v49 = vmul.f32 %v6404_v6, %v8040_v14  ;;  %v3828_v62 = vmul.f32 %v3781_v28, %v3697_v41  ;;  %v3843_v42 = vmul.f32 %v6406_v11, %v8042_v46  ;;  %v6412_v55 = vpop.eup %6411 }
 0xbc1   :  { %v3330_v28 = vcombine.high %v8006_v35, %v8006_v35  ;;  %6415 = vpow2.f32 %v3502_v22  ;;  %v3757_v6 = vrot.slane %v8059_v24, %v6985_v38  ;;  %v3379_v11 = vcombine.high %v8017_v29, %v8017_v29 }
 0xbc2   :  { %v3848_v13 = vadd.f32 %v3846_v49, %v3821_v30  ;;  %v8053_v59 = vadd.f32 %v3843_v42, %v3828_v62  ;;  %v8085_v35 = vmul.f32 %v5898_v63, %v7870_v50  ;;  %v8089_v0 = vrot.slane %v3528_v18, %v7060_v31  ;;  %v6414_v63 = vpop.eup %6413 }
 0xbc3   :  { %v3649_v2 = vpop.permute.xlu0 %3648  ;;  %v3705_v17 = vpop.permute.xlu1 %3704  ;;  %v8095_v36 = vrot.slane %v3577_v58, %v7060_v31  ;;  %v3443_v50 = vrot.slane %v3379_v11, %v6985_v38  ;;  %6417 = vpow2.f32 %v3488_v26  ;;  %v3558_v58 = vcombine.high %v8059_v24, %v8059_v24 }
 0xbc4   :  { %v3933_v32 = vmul.f32 %v7999_v25, %v3848_v13  ;;  %v3829_v48 = vmul.f32 %v3785_v16, %v3705_v17  ;;  %v3847_v20 = vmul.f32 %v6408_v53, %v8053_v59  ;;  %v3822_v30 = vmul.f32 %v3757_v6, %v3649_v2 }
 0xbc5   :  { %v3850_v62 = vmul.f32 %v6410_v27, %v3848_v13  ;;  %v3411_v16 = vrot.slane %v3330_v28, %v6985_v38  ;;  %v4069_v2 = vrot.slane %v8082_v37, 1  ;;  %v4070_v13 = vrot.slane %v8082_v37, 2 }
 0xbc6   :  { %v3967_v56 = vsel %vm481_vm3, %v3933_v32, 0.0  ;;  %v8070_v52 = vadd.f32 %v3847_v20, %v3829_v48  ;;  %v4076_v22 = vrot.slane %v8085_v35, 1  ;;  %v4077_v5 = vrot.slane %v8085_v35, 2 }
 0xbc7   :  { %v3657_v25 = vpop.permute.xlu0 %3656  ;;  %v3713_v47 = vpop.permute.xlu1 %3712  ;;  %v3968_v41 = vrot.slane %v3967_v56, 4  ;;  %v8102_v53 = vadd.f32 %v3850_v62, %v3822_v30  ;;  %v3761_v48 = vrot.slane %v8089_v0, %v6985_v38  ;;  %v3467_v18 = vmul.f32 %v3411_v16, %v7945_v3 }
 0xbc8   :  { %v3830_v49 = vmul.f32 %v3789_v43, %v3713_v47  ;;  %v3851_v42 = vmul.f32 %v6412_v55, %v8070_v52  ;;  %6419 = vpow2.f32 %v3504_v21  ;;  %v3793_v47 = vrot.slane %v8095_v36, %v6985_v38 }
 0xbc9   :  { %v3969_v17 = vadd.f32 %v3968_v41, %v3967_v56  ;;  %v4071_v56 = vrot.slane %v8082_v37, 3  ;;  %v3475_v7 = vmul.f32 %v3443_v50, %v7945_v3  ;;  %v3823_v43 = vmul.f32 %v3761_v48, %v3657_v25 }
 0xbca   :  { %v8104_v32 = vadd.f32 %v3851_v42, %v3830_v49  ;;  %v3854_v30 = vmul.f32 %v6414_v63, %v8102_v53  ;;  %v3490_v42 = vmul.f32 1.442695, %v3467_v18  ;;  %v3607_v24 = vcombine.high %v8062_v19, %v8062_v19 }
 0xbcb   :  { %v8091_v61 = vpop.permute.xlu0 %3664  ;;  %v3721_v29 = vpop.permute.xlu1 %3720  ;;  %v3970_v11 = vrot.slane %v3969_v17, 2  ;;  %v3506_v50 = vmul.f32 1.442695, %v3475_v7  ;;  %v3765_v48 = vrot.slane %v3558_v58, %v6985_v38 }
 0xbcc   :  { %v6416_v6 = vpop.eup %6415  ;;  %v3831_v41 = vmul.f32 %v3793_v47, %v3721_v29  ;;  %6421 = vpow2.f32 %v3490_v42  ;;  %v3797_v58 = vrot.slane %v3607_v24, %v6985_v38 }
 0xbcd   :  { %v3855_v49 = vmul.f32 %v6416_v6, %v8104_v32  ;;  %v3971_v63 = vadd.f32 %v3970_v11, %v3969_v17  ;;  %v8131_v6 = vadd.f32 %v3854_v30, %v3823_v43  ;;  %v6418_v7 = vpop.eup %6417  ;;  %6423 = vpow2.f32 %v3506_v50 }
 0xbce   :  { %v3824_v43 = vmul.f32 %v3765_v48, %v8091_v61  ;;  %v3560_v11 = vcombine.high %v8089_v0, %v8089_v0 }
 0xbcf   :  { %v3873_v20 = vpop.permute.xlu0 %3872  ;;  %v3729_v4 = vpop.permute.xlu1 %3728  ;;  %v8133_v25 = vadd.f32 %v3855_v49, %v3831_v41  ;;  %v3972_v49 = vrot.slane %v3971_v63, 1 }
 0xbd0   :  { %v3931_v28 = vmul.f32 %v3873_v20, %v8023_v34 }
 0xbd2   :  { %v3953_v26 = vsel %vm481_vm3, %v3931_v28, 0.0 }
 0xbd3   :  { %v3954_v34 = vrot.slane %v3953_v26, 4  ;;  %v3877_v62 = vpop.permute.xlu0 %3876  ;;  %v3905_v3 = vpop.permute.xlu1 %3904 }
 0xbd4   :  { %v3932_v21 = vmul.f32 %v3877_v62, %v8040_v14  ;;  %v3939_v29 = vmul.f32 %v3905_v3, %v8042_v46 }
 0xbd5   :  { %v3955_v20 = vadd.f32 %v3954_v34, %v3953_v26  ;;  %v6420_v26 = vpop.eup %6419  ;;  %v3832_v34 = vmul.f32 %v3797_v58, %v3729_v4  ;;  %v3609_v4 = vcombine.high %v8095_v36, %v8095_v36 }
 0xbd6   :  { %v3960_v18 = vsel %vm481_vm3, %v3932_v21, 0.0  ;;  %v4009_v28 = vsel %vm481_vm3, %v3939_v29, 0.0  ;;  %v3858_v21 = vmul.f32 %v6418_v7, %v8131_v6  ;;  %v3859_v42 = vmul.f32 %v6420_v26, %v8133_v25 }
 0xbd7   :  { %v3956_v19 = vrot.slane %v3955_v20, 2  ;;  %v3961_v16 = vrot.slane %v3960_v18, 4  ;;  %v4010_v14 = vrot.slane %v4009_v28, 4  ;;  %v3673_v62 = vpop.permute.xlu0 %3672  ;;  %v3909_v46 = vpop.permute.xlu1 %3908 }
 0xbd8   :  { %v3940_v17 = vmul.f32 %v3909_v46, %v8053_v59  ;;  %v8151_v55 = vadd.f32 %v3859_v42, %v3832_v34 }
 0xbd9   :  { %v3962_v30 = vadd.f32 %v3961_v16, %v3960_v18  ;;  %v4011_v41 = vadd.f32 %v4010_v14, %v4009_v28  ;;  %v3957_v29 = vadd.f32 %v3956_v19, %v3955_v20  ;;  %v3973_v14 = vadd.f32 %v3972_v49, %v3971_v63 }
 0xbda   :  { %v4016_v3 = vsel %vm481_vm3, %v3940_v17, 0.0  ;;  %v3860_v19 = vadd.f32 %v3858_v21, %v3824_v43 }
 0xbdb   :  { %v3963_v24 = vrot.slane %v3962_v30, 2  ;;  %v4012_v47 = vrot.slane %v4011_v41, 2  ;;  %v4017_v59 = vrot.slane %v4016_v3, 4  ;;  %v3869_v50 = vpop.permute.xlu0 %3868  ;;  %v3737_v46 = vpop.permute.xlu1 %3736  ;;  %v3958_v17 = vrot.slane %v3957_v29, 1 }
 0xbdc   :  { %v3930_v61 = vmul.f32 %v3869_v50, %v8008_v40  ;;  %v4102_v21 = vadd.f32 %v4071_v56, %v3973_v14 }
 0xbdd   :  { %v3964_v48 = vadd.f32 %v3963_v24, %v3962_v30  ;;  %v4013_v18 = vadd.f32 %v4012_v47, %v4011_v41  ;;  %v4018_v28 = vadd.f32 %v4017_v59, %v4016_v3  ;;  %v3769_v30 = vrot.slane %v3560_v11, %v6985_v38  ;;  %v6422_v41 = vpop.eup %6421 }
 0xbde   :  { %v3946_v20 = vsel %vm481_vm3, %v3930_v61, 0.0  ;;  %v3801_v3 = vrot.slane %v3609_v4, %v6985_v38  ;;  %v6424_v24 = vpop.eup %6423  ;;  %v3862_v42 = vmul.f32 %v6422_v41, %v3860_v19  ;;  %v3959_v58 = vadd.f32 %v3958_v17, %v3957_v29 }
 0xbdf   :  { %v3965_v0 = vrot.slane %v3964_v48, 1  ;;  %v4019_v26 = vrot.slane %v4018_v28, 2  ;;  %v3885_v40 = vpop.permute.xlu0 %3884  ;;  %v4138_v50 = vpop.permute.xlu1 %4137  ;;  %v4014_v36 = vrot.slane %v4013_v18, 1  ;;  %v3947_v47 = vrot.slane %v3946_v20, 4 }
 0xbe0   :  { %v3934_v63 = vmul.f32 %v3885_v40, %v8102_v53  ;;  %v3825_v59 = vmul.f32 %v3769_v30, %v3673_v62  ;;  %v4182_v11 = vmul.f32 %v4138_v50, %v4102_v21  ;;  %v3863_v53 = vmul.f32 %v6424_v24, %v8151_v55 }
 0xbe1   :  { %v3966_v49 = vadd.f32 %v3965_v0, %v3964_v48  ;;  %v4020_v43 = vadd.f32 %v4019_v26, %v4018_v28  ;;  %v3948_v61 = vadd.f32 %v3947_v47, %v3946_v20  ;;  %v4015_v48 = vadd.f32 %v4014_v36, %v4013_v18 }
 0xbe2   :  { %v3974_v34 = vsel %vm481_vm3, %v3934_v63, 0.0  ;;  %v3833_v14 = vmul.f32 %v3801_v3, %v3737_v46  ;;  %v3864_v40 = vadd.f32 %v3862_v42, %v3825_v59  ;;  %v4100_v18 = vadd.f32 %v4069_v2, %v3959_v58 }
 0xbe3   :  { %v4021_v7 = vrot.slane %v4020_v43, 1  ;;  %v3889_v16 = vpop.permute.xlu0 %3888  ;;  %v3913_v27 = vpop.permute.xlu1 %3912  ;;  %v3949_v28 = vrot.slane %v3948_v61, 2  ;;  %v4101_v56 = vadd.f32 %v4070_v13, %v3966_v49  ;;  %v3975_v20 = vrot.slane %v3974_v34, 4 }
 0xbe4   :  { %v3935_v4 = vmul.f32 %v3889_v16, %v8131_v6  ;;  %v3941_v0 = vmul.f32 %v3913_v27, %v8070_v52  ;;  %v4206_v16 = vpack.c.bf16 %v4182_v11, %v4182_v11  ;;  %v4108_v13 = vadd.f32 %v4076_v22, %v4015_v48 }
 0xbe5   :  { %v4022_v62 = vadd.f32 %v4021_v7, %v4020_v43  ;;  %v3950_v26 = vadd.f32 %v3949_v28, %v3948_v61  ;;  %v4181_v30 = vmul.f32 %v7986_v15, %v4101_v56  ;;  %v3976_v63 = vadd.f32 %v3975_v20, %v3974_v34 }
 0xbe6   :  { %v3981_v29 = vsel %vm481_vm3, %v3935_v4, 0.0  ;;  %v4023_v17 = vsel %vm481_vm3, %v3941_v0, 0.0  ;;  %v3865_v2 = vadd.f32 %v3863_v53, %v3833_v14  ;;  %v4180_v43 = vmul.f32 %v7966_v60, %v4100_v18 }
 0xbe7   :  { %v4109_v6 = vadd.f32 %v4077_v5, %v4022_v62  ;;  %v3982_v52 = vrot.slane %v3981_v29, 4  ;;  %v3893_v27 = vpop.permute.xlu0 %3892  ;;  %v3917_v50 = vpop.permute.xlu1 %3916  ;;  %v4024_v46 = vrot.slane %v4023_v17, 4  ;;  %v3951_v49 = vrot.slane %v3950_v26, 1 }
 0xbe8   :  { %v3936_v7 = vmul.f32 %v3893_v27, %v3860_v19  ;;  %v3942_v36 = vmul.f32 %v3917_v50, %v8104_v32  ;;  %v8179_v32 = vmul.f32 %v7968_v33, %v4108_v13  ;;  %v8181_v15 = vunpack.c.l.b16 %v4206_v16 }
 0xbe9   :  { %v4189_v47 = vmul.f32 %v7988_v8, %v4109_v6  ;;  %v4025_v58 = vadd.f32 %v4024_v46, %v4023_v17  ;;  %v3983_v3 = vadd.f32 %v3982_v52, %v3981_v29  ;;  %v4205_v61 = vpack.c.bf16 %v4181_v30, %v4181_v30 }
 0xbea   :  { %v3988_v5 = vsel %vm481_vm3, %v3936_v7, 0.0  ;;  %v4030_v41 = vsel %vm481_vm3, %v3942_v36, 0.0  ;;  %v3977_v34 = vrot.slane %v3976_v63, 2  ;;  %v3952_v28 = vadd.f32 %v3951_v49, %v3950_v26 }
 0xbeb   :  { %v3989_v22 = vrot.slane %v3988_v5, 4  ;;  %v4031_v21 = vrot.slane %v4030_v41, 4  ;;  %v3897_v19 = vpop.permute.xlu0 %3896  ;;  %v3921_v24 = vpop.permute.xlu1 %3920  ;;  %v4026_v53 = vrot.slane %v4025_v58, 2  ;;  %v4213_v4 = vpack.c.bf16 %v4189_v47, %v4189_v47 }
 0xbec   :  { %v3937_v8 = vmul.f32 %v3897_v19, %v3864_v40  ;;  %v3943_v59 = vmul.f32 %v3921_v24, %v8133_v25  ;;  %v3984_v0 = vrot.slane %v3983_v3, 2  ;;  %v4204_v17 = vpack.c.bf16 %v4180_v43, %v4180_v43 }
 0xbed   :  { %v3990_v42 = vadd.f32 %v3989_v22, %v3988_v5  ;;  %v4032_v11 = vadd.f32 %v4031_v21, %v4030_v41  ;;  %v8188_v40 = vunpack.c.l.b16 %v4205_v61  ;;  %v3978_v18 = vadd.f32 %v3977_v34, %v3976_v63 }
 0xbee   :  { %v3995_v60 = vsel %vm481_vm3, %v3937_v8, 0.0  ;;  %v4037_v48 = vsel %vm481_vm3, %v3943_v59, 0.0  ;;  %v4027_v52 = vadd.f32 %v4026_v53, %v4025_v58  ;;  %v8192_v13 = vunpack.c.l.b16 %v4213_v4 }
 0xbef   :  { %v3996_v56 = vrot.slane %v3995_v60, 4  ;;  %v4038_v33 = vrot.slane %v4037_v48, 4  ;;  %v3901_v62 = vpop.permute.xlu0 %3900  ;;  %v3925_v14 = vpop.permute.xlu1 %3924  ;;  %v4033_v20 = vrot.slane %v4032_v11, 2  ;;  %v3991_v6 = vrot.slane %v3990_v42, 2 }
 0xbf0   :  { %v3938_v29 = vmul.f32 %v3901_v62, %v8025_v9  ;;  %v3944_v25 = vmul.f32 %v3925_v14, %v8151_v55  ;;  %v4099_v9 = vadd.f32 %v8082_v37, %v3952_v28  ;;  %v3985_v30 = vadd.f32 %v3984_v0, %v3983_v3 }
 0xbf1   :  { %v4039_v16 = vadd.f32 %v4038_v33, %v4037_v48  ;;  %v3997_v27 = vadd.f32 %v3996_v56, %v3995_v60  ;;  %v4034_v47 = vadd.f32 %v4033_v20, %v4032_v11  ;;  %v8195_v5 = vunpack.c.l.b16 %v4204_v17 }
 0xbf2   :  { %v4002_v26 = vsel %vm481_vm3, %v3938_v29, 0.0  ;;  %v4044_v50 = vsel %vm481_vm3, %v3944_v25, 0.0  ;;  %v3992_v41 = vadd.f32 %v3991_v6, %v3990_v42  ;;  %v4212_v19 = vpack.c.bf16 %v8179_v32, %v8179_v32 }
 0xbf3   :  { %v4003_v46 = vrot.slane %v4002_v26, 4  ;;  %v4045_v7 = vrot.slane %v4044_v50, 4  ;;  %v4132_v36 = vpop.permute.xlu0 %4131  ;;  %v3929_v55 = vpop.permute.xlu1 %3928  ;;  %v4040_v58 = vrot.slane %v4039_v16, 2  ;;  %v3998_v22 = vrot.slane %v3997_v27, 2 }
 0xbf4   :  { %v3945_v63 = vmul.f32 %v3929_v55, %v3865_v2  ;;  %v4028_v24 = vrot.slane %v4027_v52, 1  ;;  %v3979_v11 = vrot.slane %v3978_v18, 1  ;;  %v4179_v53 = vmul.f32 %v4132_v36, %v4099_v9 }
 0xbf5   :  { %v4004_v49 = vadd.f32 %v4003_v46, %v4002_v26  ;;  %v4046_v43 = vadd.f32 %v4045_v7, %v4044_v50  ;;  %v4035_v2 = vrot.slane %v4034_v47, 1  ;;  %v3986_v42 = vrot.slane %v3985_v30, 1 }
 0xbf6   :  { %v4051_v21 = vsel %vm481_vm3, %v3945_v63, 0.0  ;;  %v4029_v60 = vadd.f32 %v4028_v24, %v4027_v52  ;;  %v4041_v48 = vadd.f32 %v4040_v58, %v4039_v16  ;;  %v3980_v0 = vadd.f32 %v3979_v11, %v3978_v18 }
 0xbf7   :  { %v4005_v8 = vrot.slane %v4004_v49, 2  ;;  %v4047_v59 = vrot.slane %v4046_v43, 2  ;;  %v4052_v61 = vrot.slane %v4051_v21, 4  ;;  %v4148_v34 = vpop.permute.xlu0 %4147  ;;  %v4154_v3 = vpop.permute.xlu1 %4153  ;;  %v8747_v33 = vrot.slane %v8085_v35, 3 }
 0xbf8   :  { %v4036_v32 = vadd.f32 %v4035_v2, %v4034_v47  ;;  %v3987_v14 = vadd.f32 %v3986_v42, %v3985_v30  ;;  %v3999_v20 = vadd.f32 %v3998_v22, %v3997_v27  ;;  %v4258_v29 = vrot.slane %v8195_v5, 7 }
 0xbf9   :  { %v4006_v28 = vadd.f32 %v4005_v8, %v4004_v49  ;;  %v4053_v4 = vadd.f32 %v4052_v61, %v4051_v21  ;;  %v4048_v56 = vadd.f32 %v4047_v59, %v4046_v43  ;;  %v4110_v62 = vadd.f32 %v8747_v33, %v4029_v60 }
 0xbfa   :  { %v4251_v17 = vunpack.c.l.b16 %v4212_v19  ;;  %v4203_v52 = vpack.c.bf16 %v4179_v53, %v4179_v53  ;;  %v8748_v16 = vrot.slane %v8082_v37, 4  ;;  %v8749_v18 = vrot.slane %v8085_v35, 4 }
 0xbfb   :  { %v4007_v25 = vrot.slane %v4006_v28, 1  ;;  %v4140_v6 = vpop.permute.xlu0 %4139  ;;  %v4156_v26 = vpop.permute.xlu1 %4155  ;;  %v4190_v50 = vmul.f32 %v4154_v3, %v4110_v62  ;;  %v4054_v9 = vrot.slane %v4053_v4, 2  ;;  %v8750_v55 = vrot.slane %v8082_v37, 5 }
 0xbfc   :  { %v4103_v46 = vadd.f32 %v8748_v16, %v3980_v0  ;;  %v4111_v7 = vadd.f32 %v8749_v18, %v4036_v32  ;;  %v4042_v27 = vrot.slane %v4041_v48, 1  ;;  %v3993_v63 = vrot.slane %v3992_v41, 1 }
 0xbfd   :  { %v4008_v36 = vadd.f32 %v4007_v25, %v4006_v28  ;;  %v4104_v30 = vadd.f32 %v8750_v55, %v3987_v14  ;;  %v4049_v58 = vrot.slane %v4048_v56, 1  ;;  %v4274_v43 = vrot.slane %v8192_v13, 6 }
 0xbfe   :  { %v4183_v47 = vmul.f32 %v4140_v6, %v4103_v46  ;;  %v4191_v5 = vmul.f32 %v4156_v26, %v4111_v7  ;;  %v4214_v22 = vpack.c.bf16 %v4190_v50, %v4190_v50  ;;  %v4043_v24 = vadd.f32 %v4042_v27, %v4041_v48 }
 0xbff   :  { %v4107_v49 = vadd.f32 %v8085_v35, %v4008_v36  ;;  %v4142_v21 = vpop.permute.xlu0 %4141  ;;  %v4158_v19 = vpop.permute.xlu1 %4157  ;;  %v3994_v61 = vadd.f32 %v3993_v63, %v3992_v41  ;;  %v4000_v3 = vrot.slane %v3999_v20, 1  ;;  %v4242_v11 = vunpack.c.l.b16 %v4203_v52 }
 0xc00   :  { %v4215_v8 = vpack.c.bf16 %v4191_v5, %v4191_v5  ;;  %v4184_v59 = vmul.f32 %v4142_v21, %v4104_v30  ;;  %v8751_v60 = vrot.slane %v8085_v35, 5  ;;  %v4050_v42 = vadd.f32 %v4049_v58, %v4048_v56 }
 0xc01   :  { %v4187_v53 = vmul.f32 %v4148_v34, %v4107_v49  ;;  %v4055_v28 = vadd.f32 %v4054_v9, %v4053_v4  ;;  %v4272_v0 = vrot.slane %v4251_v17, 7  ;;  %v4207_v33 = vpack.c.bf16 %v4183_v47, %v4183_v47 }
 0xc02   :  { %v4112_v2 = vadd.f32 %v8751_v60, %v4043_v24  ;;  %v8752_v62 = vrot.slane %v8082_v37, 6  ;;  %v4253_v14 = vunpack.c.l.b16 %v4214_v22  ;;  %v8753_v41 = vrot.slane %v8085_v35, 6 }
 0xc03   :  { %v4211_v32 = vpack.c.bf16 %v4187_v53, %v4187_v53  ;;  %v4144_v48 = vpop.permute.xlu0 %4143  ;;  %v4160_v6 = vpop.permute.xlu1 %4159  ;;  %v4254_v52 = vunpack.c.l.b16 %v4215_v8  ;;  %v4208_v34 = vpack.c.bf16 %v4184_v59, %v4184_v59  ;;  %v4001_v16 = vadd.f32 %v4000_v3, %v3999_v20 }
 0xc04   :  { %v4105_v13 = vadd.f32 %v8752_v62, %v3994_v61  ;;  %v4192_v25 = vmul.f32 %v4158_v19, %v4112_v2  ;;  %v4113_v26 = vadd.f32 %v8753_v41, %v4050_v42  ;;  %v4259_v56 = vsel %vm1545_vm6, %v4258_v29, %v4242_v11 }
 0xc05   :  { %v4250_v4 = vunpack.c.l.b16 %v4211_v32  ;;  %v4246_v18 = vunpack.c.l.b16 %v4207_v33  ;;  %v8754_v9 = vrot.slane %v8082_v37, 7  ;;  %v4056_v55 = vrot.slane %v4055_v28, 1 }
 0xc06   :  { %v4185_v50 = vmul.f32 %v4144_v48, %v4105_v13  ;;  %v4216_v17 = vpack.c.bf16 %v4192_v25, %v4192_v25  ;;  %v4193_v46 = vmul.f32 %v4160_v6, %v4113_v26  ;;  %v4276_v27 = vrot.slane %v4253_v14, 5 }
 0xc07   :  { %v4106_v36 = vadd.f32 %v8754_v9, %v4001_v16  ;;  %v4273_v30 = vsel %vm1545_vm6, %v4272_v0, %v4250_v4  ;;  %v4146_v63 = vpop.permute.xlu0 %4145  ;;  %v4278_v20 = vrot.slane %v4254_v52, 4  ;;  %v4247_v49 = vunpack.c.l.b16 %v4208_v34  ;;  %v4162_v3 = vpop.permute.xlu1 %4161  ;;  %v6270_v16 = vld [vmem:[%s8756_s19 + $0x8] sm:$0xff]  }
 0xc08   :  { %v4209_v7 = vpack.c.bf16 %v4185_v50, %v4185_v50  ;;  %v4255_v47 = vunpack.c.l.b16 %v4216_v17  ;;  %v4217_v5 = vpack.c.bf16 %v4193_v46, %v4193_v46  ;;  %v4275_v58 = vsel %vm1548_vm7, %v4274_v43, %v4273_v30  ;;  %v6269_v50 = vld [vmem:[%s8756_s19] sm:$0xff]  }
 0xc09   :  { %v4186_v29 = vmul.f32 %v4146_v63, %v4106_v36  ;;  %v4277_v22 = vsel %vm1551_vm8, %v4276_v27, %v4275_v58  ;;  %v4057_v24 = vadd.f32 %v4056_v55, %v4055_v28  ;;  %v4260_v37 = vrot.slane %v8188_v40, 6  ;;  %6128 = vmatpush3.bf16.msra.mxu0 %v6269_v50  ;;  %v5905_v17 = vld [vmem:[%s8758_s23] ss:$0 sm:$0xff]  ;;  %v6272_v58 = vld [vmem:[%s8759_s0 + $0x8] sm:$0xff]  }
 0xc0a   :  { %v4280_v21 = vrot.slane %v4255_v47, 3  ;;  %v4256_v19 = vunpack.c.l.b16 %v4217_v5  ;;  %v4279_v8 = vsel %vm1554_vm9, %v4278_v20, %v4277_v22  ;;  %v4248_v59 = vunpack.c.l.b16 %v4209_v7  ;;  %6129 = vmatprep.subr.bf16.mxu0 %v8720_v23  ;;  %v6271_v63 = vld [vmem:[%s8759_s0] sm:$0xff]  }
 0xc0b   :  { %v4210_v61 = vpack.c.bf16 %v4186_v29, %v4186_v29  ;;  %v8755_v43 = vrot.slane %v8085_v35, 7  ;;  %v4261_v2 = vsel %vm1548_vm7, %v4260_v37, %v4259_v56  ;;  %v4264_v42 = vrot.slane %v4246_v18, 4  ;;  %v5899_v56 = vld [vmem:[%s8757_s22] ss:$0 sm:$0xff] }
 0xc0c   :  { %v4281_v11 = vsel %vm1557_vm10, %v4280_v21, %v4279_v8  ;;  %v4282_v53 = vrot.slane %v4256_v19, 2  ;;  %v4262_v33 = vrot.slane %v8181_v15, 5  ;;  %v4266_v28 = vrot.slane %v4247_v49, 3  ;;  %v5906_v20 = vld [vmem:[%s8760_s20] ss:$0 sm:$0xff] }
 0xc0d   :  { %v4114_v60 = vadd.f32 %v8755_v43, %v4057_v24  ;;  %v4249_v0 = vunpack.c.l.b16 %v4210_v61  ;;  %v4268_v13 = vrot.slane %v4248_v59, 2  ;;  %6130 = vmatpush3.bf16.msra.mxu0 %v6270_v16  ;;  %v5910_v29 = vld [vmem:[%s8761_s26] ss:$0 sm:$0xff] }
 0xc0e   :  { %v4283_v40 = vsel %vm1560_vm11, %v4282_v53, %v4281_v11  ;;  %v4263_v32 = vsel %vm1551_vm8, %v4262_v33, %v4261_v2  ;;  %6147 = vmatprep.subr.bf16.mxu0 %v8720_v23 }
 0xc0f   :  { %v4194_v62 = vmul.f32 %v4162_v3, %v4114_v60  ;;  %v4270_v14 = vrot.slane %v4249_v0, 1  ;;  %v4265_v35 = vsel %vm1554_vm9, %v4264_v42, %v4263_v32 }
 0xc10   :  { %v4267_v48 = vsel %vm1557_vm10, %v4266_v28, %v4265_v35 }
 0xc11   :  { %v4218_v25 = vpack.c.bf16 %v4194_v62, %v4194_v62  ;;  %v4269_v15 = vsel %vm1560_vm11, %v4268_v13, %v4267_v48 }
 0xc12   :  { %v4271_v41 = vsel %vm1563_vm12, %v4270_v14, %v4269_v15 }
 0xc13   :  { %v4257_v6 = vunpack.c.l.b16 %v4218_v25 }
 0xc15   :  { %v4284_v26 = vrot.slane %v4257_v6, 1 }
 0xc17   :  { %v4285_v52 = vsel %vm1563_vm12, %v4284_v26, %v4283_v40 }
 0xc18   :  { %v4286_v34 = vpack.c.b16 %v4285_v52, %v4271_v41 }
 0xc1a   :  { %6124 = vmatmul.mubr.msk.bf16.vlgmr.msra.gmra.mrb[20].mxu1 %vm481_vm3, %v4286_v34 }
 0xc1b   :  { %6143 = vmatprep.mubr.msk.bf16.mxu1 %vm6671_vm0, %v8720_v23  ;;  %6136 = vmatpush3.bf16.msra.mxu1 %v6271_v63 }
 0xc1c   :  { %6137 = vmatprep.subr.bf16.mxu1 %v8720_v23 }
 0xc1f   :  { %6138 = vmatpush3.bf16.msra.mxu1 %v6272_v58 }
 0xc20   :  { %6139 = vmatprep.subr.bf16.mxu1 %v8720_v23 }
 0xced   :  { %v4348_v4 = vpop.f32.mrb[20].mxu1 }
 0xcee   :  { %v4349_v46 = vadd.f32 %v5899_v56, %v4348_v4  ;;  %v6125_v18 = vpop.f32.mrb[21].mxu1 }
 0xcef   :  { %v4351_v7 = vpop.f32.mrb[22].mxu1  ;;  %v5918_v18 = vld [vmem:[%s8762_s28] ss:$0 sm:$0xff] }
 0xcf0   :  { %v4362_v9 = vmul.f32 %v5905_v17, %v4349_v46  ;;  %v4352_v36 = vadd.f32 %v5899_v56, %v4351_v7  ;;  %v6126_v55 = vpop.f32.mrb[23].mxu1 }
 0xcf2   :  { %v4363_v30 = vmul.f32 %v5905_v17, %v4352_v36  ;;  %v8247_v27 = vadd.f32 %v4362_v9, %v7848_v10  ;;  %v6273_v10 = vld [vmem:[%s8759_s0 + $0x10] sm:$0xff]  }
 0xcf3   :  { %6140 = vmatpush3.bf16.msra.mxu1 %v6273_v10 }
 0xcf4   :  { %v8250_v47 = vadd.f32 %v4363_v30, %v7851_v12  ;;  %v6274_v12 = vld [vmem:[%s8759_s0 + $0x18] sm:$0xff]   ;;  %6141 = vmatprep.subr.bf16.mxu1 %v8720_v23 }
 0xcf6   :  { %v4370_v5 = vpack.c.bf16 %v8250_v47, %v8247_v27 }
 0xcf7   :  { %6142 = vmatpush3.bf16.msra.mxu1 %v6274_v12 }
 0xcf8   :  { %6132 = vmatmul.mubr.msk.bf16.vlgmr.msra.gmra.mrb[24].mxu0 %vm276_vm1, %v4370_v5  ;;  %6159 = vmatprep.subr.bf16.mxu1 %v8720_v23 }
 0xcf9   :  { %6155 = vmatprep.mubr.msk.bf16.mxu0 %vm6671_vm0, %v8720_v23 }
 0xdcb   :  { %v4427_v49 = vpop.f32.mrb[24].mxu0 }
 0xdcc   :  { %v4428_v22 = vadd.f32 %v5906_v20, %v4427_v49  ;;  %v6133_v21 = vpop.f32.mrb[25].mxu0 }
 0xdcd   :  { %v4430_v19 = vpop.f32.mrb[26].mxu0 }
 0xdce   :  { %v4441_v24 = vmul.f32 %v5910_v29, %v4428_v22  ;;  %v4431_v37 = vadd.f32 %v5906_v20, %v4430_v19  ;;  %v6134_v8 = vpop.f32.mrb[27].mxu0 }
 0xdd0   :  { %v5911_v59 = vmul.f32 -1.442695, %v4441_v24  ;;  %v4442_v61 = vmul.f32 %v5910_v29, %v4431_v37 }
 0xdd2   :  { %6425 = vpow2.f32 %v5911_v59  ;;  %v5912_v3 = vmul.f32 -1.442695, %v4442_v61 }
 0xdd4   :  { %6427 = vpow2.f32 %v5912_v3 }
 0xddc   :  { %v6426_v11 = vpop.eup %6425 }
 0xddd   :  { %v4449_v53 = vadd.f32 1.0, %v6426_v11 }
 0xdde   :  { %v6428_v43 = vpop.eup %6427 }
 0xddf   :  { %6429 = vrcp.f32 %v4449_v53  ;;  %v4450_v60 = vadd.f32 1.0, %v6428_v43 }
 0xde1   :  { %6431 = vrcp.f32 %v4450_v60 }
 0xde9   :  { %v6430_v2 = vpop.eup %6429 }
 0xdea   :  { %v8267_v42 = vmul.f32 %v6430_v2, %v4441_v24 }
 0xdeb   :  { %v6432_v0 = vpop.eup %6431 }
 0xdec   :  { %v8269_v33 = vmul.f32 %v6432_v0, %v4442_v61  ;;  %v5411_v28 = vrot.slane %v8267_v42, 1  ;;  %v5412_v13 = vrot.slane %v8267_v42, 2  ;;  %v5413_v63 = vrot.slane %v8267_v42, 3 }
 0xded   :  { %v5414_v19 = vrot.slane %v8267_v42, 4  ;;  %v5415_v11 = vrot.slane %v8267_v42, 5 }
 0xdee   :  { %5427 = vrot.lane.b32.xlu0 %v5411_v28, %s6672_s9  ;;  %v5418_v40 = vrot.slane %v8269_v33, 1  ;;  %v4465_v62 = vpack.c.bf16 %v8269_v33, %v8267_v42  ;;  %v5419_v32 = vrot.slane %v8269_v33, 2  ;;  %v5420_v49 = vrot.slane %v8269_v33, 3  ;;  %v6275_v28 = vld [vmem:[%s8763_s1] sm:$0xff]  }
 0xdef   :  { %v5421_v24 = vrot.slane %v8269_v33, 4  ;;  %v5422_v53 = vrot.slane %v8269_v33, 5  ;;  %6148 = vmatpush3.bf16.msra.mxu0 %v6275_v28 }
 0xdf0   :  { %5443 = vrot.lane.b32.xlu1 %v5418_v40, %s6672_s9  ;;  %6144 = vmatmul.mubr.msk.bf16.vlgmr.msra.gmra.mrb[24].mxu1 %vm481_vm3, %v4465_v62  ;;  %v5416_v62 = vrot.slane %v8267_v42, 6 }
 0xdf1   :  { %6163 = vmatprep.mubr.msk.bf16.mxu1 %vm6671_vm0, %v8720_v23  ;;  %6149 = vmatprep.subr.bf16.mxu0 %v8720_v23 }
 0xdf2   :  { %5429 = vrot.lane.b32.xlu0 %v5412_v13, %s6672_s9  ;;  %v5423_v13 = vrot.slane %v8269_v33, 6 }
 0xdf4   :  { %5445 = vrot.lane.b32.xlu1 %v5419_v32, %s6672_s9 }
 0xec3   :  { %v4527_v14 = vpop.f32.mrb[24].mxu1 }
 0xec4   :  { %v6145_v25 = vpop.f32.mrb[25].mxu1  ;;  %v4931_v35 = vrot.slane %v4527_v14, %v6993_v44  ;;  %v4907_v48 = vrot.slane %v4527_v14, %v6985_v38  ;;  %v4915_v41 = vrot.slane %v4527_v14, %v6988_v39  ;;  %v4923_v52 = vrot.slane %v4527_v14, %v6996_v45 }
 0xec5   :  { %v4530_v6 = vpop.f32.mrb[26].mxu1  ;;  %v4939_v16 = vrot.slane %v4527_v14, %v7004_v51  ;;  %v4947_v4 = vrot.slane %v4527_v14, %v7010_v54 }
 0xec6   :  { %5174 = vbcast.lane.b32.xlu1 %v4931_v35, 328  ;;  %4910 = vbcast.lane.b32.xlu0 %v4907_v48, 320  ;;  %v6146_v15 = vpop.f32.mrb[27].mxu1  ;;  %v4971_v26 = vrot.slane %v4530_v6, %v6985_v38  ;;  %v4979_v34 = vrot.slane %v4530_v6, %v6988_v39  ;;  %v4987_v50 = vrot.slane %v4530_v6, %v6996_v45 }
 0xec7   :  { %v4995_v56 = vrot.slane %v4530_v6, %v6993_v44  ;;  %v5003_v17 = vrot.slane %v4530_v6, %v7004_v51  ;;  %v4955_v39 = vrot.slane %v4527_v14, %v7017_v57  ;;  %v5011_v46 = vrot.slane %v4530_v6, %v7010_v54 }
 0xec8   :  { %v8298_v45 = vadd.f32 %v5918_v18, %v4527_v14  ;;  %v5019_v7 = vrot.slane %v4530_v6, %v7017_v57  ;;  %v8302_v9 = vadd.f32 %v5918_v18, %v4530_v6  ;;  %v4963_v54 = vrot.slane %v4527_v14, %v7030_v1 }
 0xec9   :  { %v5027_v5 = vrot.slane %v4530_v6, %v7030_v1 }
 0xeca   :  { %4918 = vbcast.lane.b32.xlu0 %v4915_v41, 320  ;;  %4974 = vbcast.lane.b32.xlu1 %v4971_v26, 320  ;;  %v4545_v44 = vand.u32 2147483647, %v8298_v45  ;;  %v4546_v36 = vand.u32 2147483647, %v8302_v9 }
 0xecb   :  { %v4543_v0 = vmax.f32 %v8298_v45, 0.0  ;;  %v4544_v25 = vmax.f32 %v8302_v9, 0.0 }
 0xecc   :  { %v4547_v51 = vsub.f32 0.0, %v4545_v44  ;;  %v4548_v30 = vsub.f32 0.0, %v4546_v36 }
 0xece   :  { %4926 = vbcast.lane.b32.xlu0 %v4923_v52, 320  ;;  %4982 = vbcast.lane.b32.xlu1 %v4979_v34, 320  ;;  %v4549_v55 = vmul.f32 1.442695, %v4547_v51  ;;  %v4551_v57 = vmul.f32 1.442695, %v4548_v30 }
 0xed0   :  { %6433 = vpow2.f32 %v4549_v55 }
 0xed1   :  { %6435 = vpow2.f32 %v4551_v57 }
 0xed2   :  { %4934 = vbcast.lane.b32.xlu0 %v4931_v35, 320  ;;  %4990 = vbcast.lane.b32.xlu1 %v4987_v50, 320  ;;  %v5417_v35 = vrot.slane %v8267_v42, 7 }
 0xed6   :  { %4942 = vbcast.lane.b32.xlu0 %v4939_v16, 320  ;;  %4998 = vbcast.lane.b32.xlu1 %v4995_v56, 320 }
 0xeda   :  { %4950 = vbcast.lane.b32.xlu0 %v4947_v4, 320  ;;  %5006 = vbcast.lane.b32.xlu1 %v5003_v17, 320  ;;  %v6434_v58 = vpop.eup %6433 }
 0xedb   :  { %v4553_v10 = vadd.f32 1.0, %v6434_v58  ;;  %v6436_v12 = vpop.eup %6435  ;;  %v4556_v20 = vmul.f32 -0.5, %v6434_v58  ;;  %v4559_v37 = vand.u32 2147483647, %v6434_v58 }
 0xedc   :  { %v4562_v1 = vadd.f32 1.0, %v6436_v12  ;;  %v4565_v21 = vmul.f32 -0.5, %v6436_v12  ;;  %v4568_v43 = vand.u32 2147483647, %v6436_v12 }
 0xedd   :  { %6437 = vlog2.f32 %v4553_v10  ;;  %v4557_v22 = vadd.f32 1.0, %v4556_v20  ;;  %vm4560_vm0 = vcmp.lt.f32.partialorder %v4559_v37, 0.0004427343 }
 0xede   :  { %4958 = vbcast.lane.b32.xlu0 %v4955_v39, 320  ;;  %5014 = vbcast.lane.b32.xlu1 %v5011_v46, 320  ;;  %6439 = vlog2.f32 %v4562_v1  ;;  %v4566_v3 = vadd.f32 1.0, %v4565_v21  ;;  %vm4569_vm4 = vcmp.lt.f32.partialorder %v4568_v43, 0.0004427343 }
 0xedf   :  { %v4558_v61 = vmul.f32 %v6434_v58, %v4557_v22 }
 0xee0   :  { %v4567_v40 = vmul.f32 %v6436_v12, %v4566_v3 }
 0xee2   :  { %5166 = vbcast.lane.b32.xlu0 %v4915_v41, 328  ;;  %5022 = vbcast.lane.b32.xlu1 %v5019_v7, 320  ;;  %v6276_v41 = vld [vmem:[%s8763_s1 + $0x8] sm:$0xff]  }
 0xee3   :  { %6150 = vmatpush3.bf16.msra.mxu0 %v6276_v41 }
 0xee4   :  { %6151 = vmatprep.subr.bf16.mxu0 %v8720_v23 }
 0xee6   :  { %5170 = vbcast.lane.b32.xlu0 %v4923_v52, 328  ;;  %5198 = vbcast.lane.b32.xlu1 %v4979_v34, 328 }
 0xee7   :  { %v6438_v29 = vpop.eup %6437 }
 0xee8   :  { %v4555_v8 = vmul.f32 0.6931472, %v6438_v29  ;;  %v6440_v59 = vpop.eup %6439 }
 0xee9   :  { %v4564_v2 = vmul.f32 0.6931472, %v6440_v59 }
 0xeea   :  { %4966 = vbcast.lane.b32.xlu0 %v4963_v54, 320  ;;  %5202 = vbcast.lane.b32.xlu1 %v4987_v50, 328  ;;  %v4561_v60 = vsel %vm4560_vm0, %v4558_v61, %v4555_v8  ;;  %v6277_v50 = vld [vmem:[%s8763_s1 + $0x10] sm:$0xff]  }
 0xeeb   :  { %v4571_v32 = vadd.f32 %v4561_v60, %v4543_v0  ;;  %v4570_v14 = vsel %vm4569_vm4, %v4567_v40, %v4564_v2  ;;  %6152 = vmatpush3.bf16.msra.mxu0 %v6277_v50 }
 0xeec   :  { %v4572_v15 = vadd.f32 %v4570_v14, %v4544_v25  ;;  %6153 = vmatprep.subr.bf16.mxu0 %v8720_v23 }
 0xeed   :  { %v4583_v6 = vrot.slane %v4571_v32, %v7060_v31  ;;  %v4576_v51 = vcombine.high %v4571_v32, %v4571_v32 }
 0xeee   :  { %5162 = vbcast.lane.b32.xlu0 %v4907_v48, 328  ;;  %5030 = vbcast.lane.b32.xlu1 %v5027_v5, 320  ;;  %v5424_v48 = vrot.slane %v8269_v33, 7  ;;  %v4632_v52 = vrot.slane %v4572_v15, %v7060_v31  ;;  %v4625_v12 = vcombine.high %v4572_v15, %v4572_v15  ;;  %v8362_v20 = vmul.f32 %v4572_v15, %v8269_v33 }
 0xeef   :  { %v4591_v34 = vcombine.high %v4583_v6, %v4583_v6  ;;  %v4590_v10 = vrot.slane %v4576_v51, %v7060_v31 }
 0xef0   :  { %v4639_v3 = vrot.slane %v4625_v12, %v7060_v31 }
 0xef1   :  { %v8375_v61 = vrot.slane %v4590_v10, %v7060_v31  ;;  %v4592_v28 = vcombine.high %v4590_v10, %v4590_v10 }
 0xef2   :  { %5178 = vbcast.lane.b32.xlu0 %v4939_v16, 328  ;;  %5431 = vrot.lane.b32.xlu1 %v5413_v63, %s6672_s9 }
 0xef6   :  { %5182 = vbcast.lane.b32.xlu0 %v4947_v4, 328  ;;  %5206 = vbcast.lane.b32.xlu1 %v4995_v56, 328  ;;  %v4648_v56 = vrot.slane %v4632_v52, %v7060_v31  ;;  %v8344_v4 = vld [vmem:[%s8764_s13] sm:$0xff] }
 0xef8   :  { %v4709_v45 = vrot.slane %v4648_v56, %v6985_v38  ;;  %v4670_v63 = vcombine.high %v4648_v56, %v4648_v56 }
 0xefa   :  { %5186 = vbcast.lane.b32.xlu0 %v4955_v39, 328  ;;  %5210 = vbcast.lane.b32.xlu1 %v5003_v17, 328  ;;  %v4613_v17 = vrot.slane %v4591_v34, %v7060_v31  ;;  %v6278_v39 = vld [vmem:[%s8763_s1 + $0x18] sm:$0xff]   ;;  %v4717_v8 = vrot.slane %v4670_v63, %v6985_v38 }
 0xefb   :  { %6154 = vmatpush3.bf16.msra.mxu0 %v6278_v39 }
 0xefc   :  { %v4681_v44 = vrot.slane %v4613_v17, %v6985_v38  ;;  %v4623_v55 = vcombine.high %v4613_v17, %v4613_v17  ;;  %v4764_v0 = vmul.f32 %v4717_v8, %v8344_v4 }
 0xefe   :  { %5190 = vbcast.lane.b32.xlu0 %v4963_v54, 328  ;;  %5214 = vbcast.lane.b32.xlu1 %v5011_v46, 328  ;;  %v4640_v46 = vcombine.high %v4632_v52, %v4632_v52  ;;  %v4762_v54 = vmul.f32 %v4709_v45, %v8344_v4  ;;  %v4755_v57 = vmul.f32 %v4681_v44, %v8344_v4 }
 0xeff   :  { %v4689_v21 = vrot.slane %v4623_v55, %v6985_v38  ;;  %v8395_v52 = vrot.slane %v4592_v28, %v7060_v31 }
 0xf00   :  { %v4662_v9 = vrot.slane %v4640_v46, %v7060_v31  ;;  %v4786_v1 = vmul.f32 1.442695, %v4762_v54  ;;  %v4772_v29 = vmul.f32 1.442695, %v4755_v57 }
 0xf01   :  { %v4757_v60 = vmul.f32 %v4689_v21, %v8344_v4 }
 0xf02   :  { %5194 = vbcast.lane.b32.xlu0 %v4971_v26, 328  ;;  %5218 = vbcast.lane.b32.xlu1 %v5019_v7, 328  ;;  %v4599_v26 = vrot.slane %v4583_v6, %v7060_v31  ;;  %v4713_v58 = vrot.slane %v4662_v9, %v6985_v38  ;;  %v4672_v37 = vcombine.high %v4662_v9, %v4662_v9 }
 0xf03   :  { %v4776_v15 = vmul.f32 1.442695, %v4757_v60 }
 0xf04   :  { %v4677_v16 = vrot.slane %v4599_v26, %v6985_v38  ;;  %v4621_v7 = vcombine.high %v4599_v26, %v4599_v26  ;;  %v4763_v59 = vmul.f32 %v4713_v58, %v8344_v4  ;;  %v4721_v40 = vrot.slane %v4672_v37, %v6985_v38 }
 0xf05   :  { %v4790_v26 = vmul.f32 1.442695, %v4764_v0 }
 0xf06   :  { %5425 = vrot.lane.b32.xlu0 %v8267_v42, %s6672_s9  ;;  %5222 = vbcast.lane.b32.xlu1 %v5027_v5, 328  ;;  %v4754_v18 = vmul.f32 %v4677_v16, %v8344_v4  ;;  %v4685_v30 = vrot.slane %v4621_v7, %v6985_v38  ;;  %v8356_v5 = vmul.f32 %v4571_v32, %v8267_v42  ;;  %v4788_v2 = vmul.f32 1.442695, %v4763_v59 }
 0xf07   :  { %v8387_v32 = vrot.slane %v4639_v3, %v7060_v31  ;;  %v4765_v34 = vmul.f32 %v4721_v40, %v8344_v4  ;;  %v4855_v7 = vcombine.high %v8362_v20, %v8362_v20 }
 0xf08   :  { %v4770_v36 = vmul.f32 1.442695, %v4754_v18  ;;  %v4756_v22 = vmul.f32 %v4685_v30, %v8344_v4  ;;  %v4806_v45 = vcombine.high %v8356_v5, %v8356_v5  ;;  %v4697_v30 = vrot.slane %v8395_v52, %v6985_v38 }
 0xf09   :  { %v4725_v17 = vrot.slane %v8387_v32, %v6985_v38  ;;  %v4792_v57 = vmul.f32 1.442695, %v4765_v34 }
 0xf0a   :  { %5441 = vrot.lane.b32.xlu0 %v8269_v33, %s6672_s9  ;;  %5447 = vrot.lane.b32.xlu1 %v5420_v49, %s6672_s9  ;;  %6441 = vpow2.f32 %v4770_v36  ;;  %v4813_v49 = vrot.slane %v8356_v5, %v7060_v31  ;;  %v4774_v43 = vmul.f32 1.442695, %v4756_v22 }
 0xf0b   :  { %6443 = vpow2.f32 %v4786_v1  ;;  %v4766_v12 = vmul.f32 %v4725_v17, %v8344_v4 }
 0xf0c   :  { %6445 = vpow2.f32 %v4772_v29 }
 0xf0d   :  { %6447 = vpow2.f32 %v4774_v43  ;;  %v4622_v43 = vcombine.high %v8375_v61, %v8375_v61  ;;  %v4794_v28 = vmul.f32 1.442695, %v4766_v12 }
 0xf0e   :  { %5433 = vrot.lane.b32.xlu0 %v5414_v19, %s6672_s9  ;;  %5449 = vrot.lane.b32.xlu1 %v5421_v24, %s6672_s9  ;;  %v8368_v19 = vpop.permute.xlu0 %5427  ;;  %v8370_v24 = vpop.permute.xlu1 %5443  ;;  %6449 = vpow2.f32 %v4788_v2 }
 0xf0f   :  { %6451 = vpow2.f32 %v4776_v15  ;;  %v4671_v15 = vcombine.high %v8387_v32, %v8387_v32  ;;  %v4701_v17 = vrot.slane %v4622_v43, %v6985_v38 }
 0xf10   :  { %6453 = vpow2.f32 %v4790_v26 }
 0xf11   :  { %6455 = vpow2.f32 %v4792_v57 }
 0xf12   :  { %5435 = vrot.lane.b32.xlu0 %v5415_v11, %s6672_s9  ;;  %5451 = vrot.lane.b32.xlu1 %v5422_v53, %s6672_s9  ;;  %v4862_v11 = vrot.slane %v8362_v20, %v7060_v31  ;;  %v4821_v53 = vcombine.high %v4813_v49, %v4813_v49  ;;  %v8389_v14 = vpop.permute.xlu0 %5429  ;;  %v8391_v25 = vpop.permute.xlu1 %5445 }
 0xf14   :  { %v4870_v6 = vcombine.high %v4862_v11, %v4862_v11  ;;  %v6442_v41 = vpop.eup %6441  ;;  %v4878_v16 = vrot.slane %v4862_v11, %v7060_v31 }
 0xf15   :  { %v5128_v51 = vmul.f32 0.0, %v6442_v41  ;;  %v6444_v54 = vpop.eup %6443 }
 0xf16   :  { %5437 = vrot.lane.b32.xlu0 %v5416_v62, %s6672_s9  ;;  %5453 = vrot.lane.b32.xlu1 %v5423_v13, %s6672_s9  ;;  %v4829_v62 = vrot.slane %v4813_v49, %v7060_v31  ;;  %v4693_v13 = vrot.slane %v8375_v61, %v6985_v38  ;;  %v4892_v55 = vrot.slane %v4870_v6, %v7060_v31  ;;  %v6446_v5 = vpop.eup %6445 }
 0xf17   :  { %v5067_v58 = vrot.slane %v4878_v16, %v6985_v38  ;;  %v4900_v22 = vcombine.high %v4878_v16, %v4878_v16  ;;  %v6448_v60 = vpop.eup %6447 }
 0xf18   :  { %v5035_v50 = vrot.slane %v4829_v62, %v6985_v38  ;;  %v4758_v56 = vmul.f32 %v4693_v13, %v8344_v4  ;;  %v4851_v18 = vcombine.high %v4829_v62, %v4829_v62  ;;  %v5071_v11 = vrot.slane %v4892_v55, %v6985_v38  ;;  %v6450_v40 = vpop.eup %6449 }
 0xf19   :  { %v4902_v16 = vcombine.high %v4892_v55, %v4892_v55  ;;  %v4733_v55 = vrot.slane %v4671_v15, %v6985_v38 }
 0xf1a   :  { %5439 = vrot.lane.b32.xlu0 %v5417_v35, %s6672_s9  ;;  %5455 = vrot.lane.b32.xlu1 %v5424_v48, %s6672_s9  ;;  %v4641_v35 = vcombine.high %v4639_v3, %v4639_v3  ;;  %v4843_v48 = vrot.slane %v4821_v53, %v7060_v31  ;;  %v4778_v10 = vmul.f32 1.442695, %v4758_v56  ;;  %v5043_v49 = vrot.slane %v4851_v18, %v6985_v38 }
 0xf1b   :  { %v5129_v3 = vmul.f32 0.0, %v6444_v54  ;;  %v4759_v53 = vmul.f32 %v4697_v30, %v8344_v4  ;;  %v4869_v56 = vrot.slane %v4855_v7, %v7060_v31 }
 0xf1c   :  { %v8410_v44 = vrot.slane %v4641_v35, %v7060_v31  ;;  %v5039_v36 = vrot.slane %v4843_v48, %v6985_v38  ;;  %v4853_v29 = vcombine.high %v4843_v48, %v4843_v48  ;;  %6457 = vpow2.f32 %v4778_v10 }
 0xf1d   :  { %v4820_v48 = vrot.slane %v4806_v45, %v7060_v31  ;;  %6459 = vpow2.f32 %v4794_v28  ;;  %v5079_v10 = vrot.slane %v4902_v16, %v6985_v38 }
 0xf1e   :  { %v4729_v21 = vrot.slane %v8410_v44, %v6985_v38  ;;  %v5047_v35 = vrot.slane %v4853_v29, %v6985_v38  ;;  %v4760_v29 = vmul.f32 %v4701_v17, %v8344_v4  ;;  %v4673_v28 = vcombine.high %v8410_v44, %v8410_v44 }
 0xf1f   :  { %v8447_v54 = vrot.slane %v4820_v48, %v7060_v31  ;;  %v4822_v12 = vcombine.high %v4820_v48, %v4820_v48 }
 0xf20   :  { %v4767_v6 = vmul.f32 %v4729_v21, %v8344_v4  ;;  %v4782_v15 = vmul.f32 1.442695, %v4760_v29  ;;  %v4737_v17 = vrot.slane %v4673_v28, %v6985_v38 }
 0xf21   :  { %v8470_v48 = vrot.slane %v4822_v12, %v7060_v31 }
 0xf22   :  { %v4796_v30 = vmul.f32 1.442695, %v4767_v6  ;;  %v5919_v6 = vld [vmem:[#allocation2] ss:$0 sm:$0xff] }
 0xf38   :  { %v8403_v39 = vpop.permute.xlu1 %5174  ;;  %v4911_v46 = vpop.permute.xlu0 %4910 }
 0xf39   :  { %v5112_v9 = vmul.f32 %v5035_v50, %v4911_v46  ;;  %v5075_v50 = vrot.slane %v4900_v22, %v6985_v38  ;;  %v6452_v46 = vpop.eup %6451 }
 0xf3a   :  { %v6454_v32 = vpop.eup %6453 }
 0xf3b   :  { %v8416_v63 = vadd.f32 %v5128_v51, %v5112_v9  ;;  %v4780_v9 = vmul.f32 1.442695, %v4759_v53  ;;  %v6456_v22 = vpop.eup %6455 }
 0xf3c   :  { %v4919_v1 = vpop.permute.xlu0 %4918  ;;  %v4975_v20 = vpop.permute.xlu1 %4974 }
 0xf3d   :  { %v5113_v37 = vmul.f32 %v5039_v36, %v4919_v1  ;;  %v5132_v8 = vmul.f32 %v6446_v5, %v8416_v63  ;;  %v5120_v59 = vmul.f32 %v5067_v58, %v4975_v20  ;;  %v8454_v1 = vrot.slane %v4869_v56, %v7060_v31 }
 0xf3e   :  { %6461 = vpow2.f32 %v4780_v9  ;;  %v8482_v9 = vmul.f32 %v5919_v6, %v8267_v42 }
 0xf3f   :  { %v8428_v2 = vadd.f32 %v5132_v8, %v5113_v37  ;;  %v8430_v0 = vadd.f32 %v5129_v3, %v5120_v59  ;;  %v5051_v37 = vrot.slane %v8447_v54, %v6985_v38  ;;  %v4624_v59 = vcombine.high %v8395_v52, %v8395_v52 }
 0xf40   :  { %v4927_v62 = vpop.permute.xlu0 %4926  ;;  %v4983_v13 = vpop.permute.xlu1 %4982  ;;  %6463 = vpow2.f32 %v4796_v30  ;;  %v4768_v3 = vmul.f32 %v4733_v55, %v8344_v4  ;;  %v5083_v52 = vrot.slane %v8454_v1, %v6985_v38  ;;  %v5055_v30 = vrot.slane %v8470_v48, %v6985_v38 }
 0xf41   :  { %v5114_v61 = vmul.f32 %v5043_v49, %v4927_v62  ;;  %v5136_v41 = vmul.f32 %v6448_v60, %v8428_v2  ;;  %v5121_v26 = vmul.f32 %v5071_v11, %v4983_v13  ;;  %v5133_v34 = vmul.f32 %v6450_v40, %v8430_v0  ;;  %v6458_v11 = vpop.eup %6457 }
 0xf42   :  { %v4871_v60 = vcombine.high %v4869_v56, %v4869_v56  ;;  %v4705_v44 = vrot.slane %v4624_v59, %v6985_v38  ;;  %6465 = vpow2.f32 %v4782_v15  ;;  %v5363_v12 = vrot.slane %v8482_v9, 1 }
 0xf43   :  { %v8442_v18 = vadd.f32 %v5136_v41, %v5114_v61  ;;  %v8444_v45 = vadd.f32 %v5133_v34, %v5121_v26  ;;  %v4798_v34 = vmul.f32 1.442695, %v4768_v3  ;;  %v4852_v59 = vcombine.high %v8447_v54, %v8447_v54 }
 0xf44   :  { %v4935_v51 = vpop.permute.xlu0 %4934  ;;  %v4991_v36 = vpop.permute.xlu1 %4990  ;;  %v8478_v56 = vrot.slane %v4871_v60, %v7060_v31  ;;  %v5365_v28 = vrot.slane %v8482_v9, 3  ;;  %v5366_v54 = vrot.slane %v8482_v9, 4  ;;  %v5367_v15 = vrot.slane %v8482_v9, 5 }
 0xf45   :  { %v5115_v57 = vmul.f32 %v5047_v35, %v4935_v51  ;;  %v5140_v7 = vmul.f32 %v6452_v46, %v8442_v18  ;;  %v5122_v5 = vmul.f32 %v5075_v50, %v4991_v36  ;;  %v5137_v58 = vmul.f32 %v6454_v32, %v8444_v45  ;;  %v6460_v50 = vpop.eup %6459 }
 0xf46   :  { %v8488_v36 = vmul.f32 %v5919_v6, %v8269_v33  ;;  %6467 = vpow2.f32 %v4798_v34 }
 0xf47   :  { %v5142_v20 = vadd.f32 %v5140_v7, %v5115_v57  ;;  %v8456_v49 = vadd.f32 %v5137_v58, %v5122_v5  ;;  %v4761_v7 = vmul.f32 %v4705_v44, %v8344_v4  ;;  %v5087_v5 = vrot.slane %v8478_v56, %v6985_v38 }
 0xf48   :  { %v4943_v21 = vpop.permute.xlu0 %4942  ;;  %v4999_v8 = vpop.permute.xlu1 %4998  ;;  %v4769_v58 = vmul.f32 %v4737_v17, %v8344_v4  ;;  %v4901_v4 = vcombine.high %v8454_v1, %v8454_v1 }
 0xf49   :  { %v5227_v53 = vmul.f32 %v8403_v39, %v5142_v20  ;;  %v5123_v43 = vmul.f32 %v5079_v10, %v4999_v8  ;;  %v5116_v40 = vmul.f32 %v5051_v37, %v4943_v21  ;;  %v5144_v62 = vmul.f32 %v6458_v11, %v5142_v20  ;;  %v6462_v42 = vpop.eup %6461 }
 0xf4a   :  { %v5141_v13 = vmul.f32 %v6456_v22, %v8456_v49  ;;  %v6464_v10 = vpop.eup %6463  ;;  %v5364_v21 = vrot.slane %v8482_v9, 2  ;;  %v5370_v37 = vrot.slane %v8488_v36, 1 }
 0xf4b   :  { %v5261_v35 = vsel %vm481_vm3, %v5227_v53, 0.0  ;;  %v8484_v32 = vadd.f32 %v5144_v62, %v5116_v40  ;;  %v5371_v53 = vrot.slane %v8488_v36, 2  ;;  %v4800_v40 = vmul.f32 1.442695, %v4769_v58 }
 0xf4c   :  { %v5262_v39 = vrot.slane %v5261_v35, 4  ;;  %v4951_v61 = vpop.permute.xlu0 %4950  ;;  %v5007_v41 = vpop.permute.xlu1 %5006  ;;  %v8474_v26 = vadd.f32 %v5141_v13, %v5123_v43  ;;  %v4784_v43 = vmul.f32 1.442695, %v4761_v7  ;;  %v5372_v62 = vrot.slane %v8488_v36, 3 }
 0xf4d   :  { %v5124_v16 = vmul.f32 %v5083_v52, %v5007_v41  ;;  %v5117_v33 = vmul.f32 %v5055_v30, %v4951_v61  ;;  %v5148_v29 = vmul.f32 %v6462_v42, %v8484_v32  ;;  %v5373_v52 = vrot.slane %v8488_v36, 4 }
 0xf4e   :  { %v5263_v46 = vadd.f32 %v5262_v39, %v5261_v35  ;;  %v5145_v51 = vmul.f32 %v6460_v50, %v8474_v26  ;;  %v5059_v39 = vrot.slane %v4852_v59, %v6985_v38  ;;  %v5091_v41 = vrot.slane %v4901_v4, %v6985_v38  ;;  %v6466_v50 = vpop.eup %6465 }
 0xf4f   :  { %v8511_v35 = vadd.f32 %v5148_v29, %v5117_v33  ;;  %6469 = vpow2.f32 %v4784_v43  ;;  %v5375_v59 = vrot.slane %v8488_v36, 6 }
 0xf50   :  { %v4959_v55 = vpop.permute.xlu0 %4958  ;;  %v5015_v31 = vpop.permute.xlu1 %5014  ;;  %v8492_v57 = vadd.f32 %v5145_v51, %v5124_v16  ;;  %v5264_v20 = vrot.slane %v5263_v46, 2  ;;  %6471 = vpow2.f32 %v4800_v40 }
 0xf51   :  { %v5125_v22 = vmul.f32 %v5087_v5, %v5015_v31  ;;  %v6468_v51 = vpop.eup %6467  ;;  %v5118_v30 = vmul.f32 %v5059_v39, %v4959_v55  ;;  %v5152_v42 = vmul.f32 %v6466_v50, %v8511_v35 }
 0xf52   :  { %v5149_v8 = vmul.f32 %v6464_v10, %v8492_v57  ;;  %v5265_v13 = vadd.f32 %v5264_v20, %v5263_v46  ;;  %v4854_v46 = vcombine.high %v8470_v48, %v8470_v48  ;;  %v5368_v48 = vrot.slane %v8482_v9, 6 }
 0xf53   :  { %v8538_v39 = vadd.f32 %v5152_v42, %v5118_v30 }
 0xf54   :  { %v5167_v3 = vpop.permute.xlu0 %5166  ;;  %v5023_v11 = vpop.permute.xlu1 %5022  ;;  %v8516_v1 = vadd.f32 %v5149_v8, %v5125_v22  ;;  %v5266_v7 = vrot.slane %v5265_v13, 1  ;;  %v4903_v8 = vcombine.high %v8478_v56, %v8478_v56 }
 0xf55   :  { %v5225_v60 = vmul.f32 %v5167_v3, %v8428_v2  ;;  %v5374_v2 = vrot.slane %v8488_v36, 5  ;;  %v5126_v5 = vmul.f32 %v5091_v41, %v5023_v11  ;;  %v5369_v3 = vrot.slane %v8482_v9, 7 }
 0xf56   :  { %v5153_v33 = vmul.f32 %v6468_v51, %v8516_v1  ;;  %v5095_v51 = vrot.slane %v4903_v8, %v6985_v38 }
 0xf57   :  { %v5247_v6 = vsel %vm481_vm3, %v5225_v60, 0.0  ;;  %v5063_v60 = vrot.slane %v4854_v46, %v6985_v38  ;;  %v5376_v46 = vrot.slane %v8488_v36, 7 }
 0xf58   :  { %v5248_v61 = vrot.slane %v5247_v6, 4  ;;  %v5171_v44 = vpop.permute.xlu0 %5170  ;;  %v5199_v34 = vpop.permute.xlu1 %5198 }
 0xf59   :  { %v5226_v16 = vmul.f32 %v5171_v44, %v8442_v18  ;;  %v5233_v17 = vmul.f32 %v5199_v34, %v8444_v45 }
 0xf5a   :  { %v5249_v31 = vadd.f32 %v5248_v61, %v5247_v6  ;;  %v5267_v6 = vadd.f32 %v5266_v7, %v5265_v13  ;;  %v8540_v61 = vadd.f32 %v5153_v33, %v5126_v5 }
 0xf5b   :  { %v5254_v58 = vsel %vm481_vm3, %v5226_v16, 0.0  ;;  %v5303_v10 = vsel %vm481_vm3, %v5233_v17, 0.0 }
 0xf5c   :  { %v5250_v18 = vrot.slane %v5249_v31, 2  ;;  %v5255_v20 = vrot.slane %v5254_v58, 4  ;;  %v5304_v45 = vrot.slane %v5303_v10, 4  ;;  %v4967_v29 = vpop.permute.xlu0 %4966  ;;  %v5203_v22 = vpop.permute.xlu1 %5202  ;;  %v5396_v33 = vadd.f32 %v5365_v28, %v5267_v6 }
 0xf5d   :  { %v5234_v55 = vmul.f32 %v5203_v22, %v8456_v49  ;;  %v5119_v16 = vmul.f32 %v5063_v60, %v4967_v29 }
 0xf5e   :  { %v5251_v11 = vadd.f32 %v5250_v18, %v5249_v31  ;;  %v5256_v4 = vadd.f32 %v5255_v20, %v5254_v58  ;;  %v5305_v43 = vadd.f32 %v5304_v45, %v5303_v10  ;;  %v6470_v31 = vpop.eup %6469 }
 0xf5f   :  { %v5310_v40 = vsel %vm481_vm3, %v5234_v55, 0.0  ;;  %v6472_v42 = vpop.eup %6471  ;;  %v5156_v18 = vmul.f32 %v6470_v31, %v8538_v39 }
 0xf60   :  { %v5252_v49 = vrot.slane %v5251_v11, 1  ;;  %v5257_v41 = vrot.slane %v5256_v4, 2  ;;  %v5306_v44 = vrot.slane %v5305_v43, 2  ;;  %v5311_v56 = vrot.slane %v5310_v40, 4  ;;  %v5163_v34 = vpop.permute.xlu0 %5162  ;;  %v5031_v50 = vpop.permute.xlu1 %5030 }
 0xf61   :  { %v5224_v17 = vmul.f32 %v5163_v34, %v8416_v63  ;;  %v5127_v10 = vmul.f32 %v5095_v51, %v5031_v50  ;;  %v5157_v22 = vmul.f32 %v6472_v42, %v8540_v61  ;;  %v5158_v28 = vadd.f32 %v5156_v18, %v5119_v16 }
 0xf62   :  { %v5253_v58 = vadd.f32 %v5252_v49, %v5251_v11  ;;  %v5258_v13 = vadd.f32 %v5257_v41, %v5256_v4  ;;  %v5307_v30 = vadd.f32 %v5306_v44, %v5305_v43  ;;  %v5312_v7 = vadd.f32 %v5311_v56, %v5310_v40 }
 0xf63   :  { %v5240_v5 = vsel %vm481_vm3, %v5224_v17, 0.0  ;;  %v8554_v44 = vadd.f32 %v5157_v22, %v5127_v10 }
 0xf64   :  { %v5259_v20 = vrot.slane %v5258_v13, 1  ;;  %v5308_v63 = vrot.slane %v5307_v30, 1  ;;  %v5313_v45 = vrot.slane %v5312_v7, 2  ;;  %v5179_v38 = vpop.permute.xlu0 %5178  ;;  %v5432_v29 = vpop.permute.xlu1 %5431  ;;  %v5394_v55 = vadd.f32 %v5363_v12, %v5253_v58 }
 0xf65   :  { %v5241_v8 = vrot.slane %v5240_v5, 4  ;;  %v5228_v11 = vmul.f32 %v5179_v38, %v8484_v32  ;;  %v5476_v4 = vmul.f32 %v5432_v29, %v5396_v33 }
 0xf66   :  { %v5260_v43 = vadd.f32 %v5259_v20, %v5258_v13  ;;  %v5309_v60 = vadd.f32 %v5308_v63, %v5307_v30  ;;  %v5314_v40 = vadd.f32 %v5313_v45, %v5312_v7  ;;  %v5474_v51 = vmul.f32 %v8368_v19, %v5394_v55 }
 0xf67   :  { %v5242_v6 = vadd.f32 %v5241_v8, %v5240_v5  ;;  %v5268_v49 = vsel %vm481_vm3, %v5228_v11, 0.0  ;;  %v5500_v41 = vpack.c.bf16 %v5476_v4, %v5476_v4 }
 0xf68   :  { %v5395_v56 = vadd.f32 %v5364_v21, %v5260_v43  ;;  %v5402_v12 = vadd.f32 %v5370_v37, %v5309_v60  ;;  %v5315_v34 = vrot.slane %v5314_v40, 1  ;;  %v5269_v50 = vrot.slane %v5268_v49, 4  ;;  %v5183_v32 = vpop.permute.xlu0 %5182  ;;  %v5207_v17 = vpop.permute.xlu1 %5206 }
 0xf69   :  { %v5243_v31 = vrot.slane %v5242_v6, 2  ;;  %v5229_v16 = vmul.f32 %v5183_v32, %v8511_v35  ;;  %v5235_v58 = vmul.f32 %v5207_v17, %v8474_v26  ;;  %v8564_v42 = vunpack.c.l.b16 %v5500_v41 }
 0xf6a   :  { %v5475_v13 = vmul.f32 %v8389_v14, %v5395_v56  ;;  %v5316_v30 = vadd.f32 %v5315_v34, %v5314_v40  ;;  %v5270_v7 = vadd.f32 %v5269_v50, %v5268_v49  ;;  %v8567_v21 = vmul.f32 %v8370_v24, %v5402_v12 }
 0xf6b   :  { %v5244_v37 = vadd.f32 %v5243_v31, %v5242_v6  ;;  %v5275_v5 = vsel %vm481_vm3, %v5229_v16, 0.0  ;;  %v5317_v10 = vsel %vm481_vm3, %v5235_v58, 0.0  ;;  %v5556_v22 = vrot.slane %v8564_v42, 5 }
 0xf6c   :  { %v5499_v19 = vpack.c.bf16 %v5475_v13, %v5475_v13  ;;  %v5403_v35 = vadd.f32 %v5371_v53, %v5316_v30  ;;  %v5271_v33 = vrot.slane %v5270_v7, 2  ;;  %v5276_v26 = vrot.slane %v5275_v5, 4  ;;  %v5187_v18 = vpop.permute.xlu0 %5186  ;;  %v5211_v14 = vpop.permute.xlu1 %5210 }
 0xf6d   :  { %v5318_v20 = vrot.slane %v5317_v10, 4  ;;  %v5230_v63 = vmul.f32 %v5187_v18, %v8538_v39  ;;  %v5236_v45 = vmul.f32 %v5211_v14, %v8492_v57  ;;  %v5245_v24 = vrot.slane %v5244_v37, 1 }
 0xf6e   :  { %v8575_v38 = vunpack.c.l.b16 %v5499_v19  ;;  %v5483_v29 = vmul.f32 %v8391_v25, %v5403_v35  ;;  %v5277_v55 = vadd.f32 %v5276_v26, %v5275_v5  ;;  %v5272_v49 = vadd.f32 %v5271_v33, %v5270_v7 }
 0xf6f   :  { %v5319_v8 = vadd.f32 %v5318_v20, %v5317_v10  ;;  %v5282_v53 = vsel %vm481_vm3, %v5230_v63, 0.0  ;;  %v5324_v11 = vsel %vm481_vm3, %v5236_v45, 0.0  ;;  %v5246_v4 = vadd.f32 %v5245_v24, %v5244_v37 }
 0xf70   :  { %v5507_v43 = vpack.c.bf16 %v5483_v29, %v5483_v29  ;;  %v5278_v60 = vrot.slane %v5277_v55, 2  ;;  %v5283_v40 = vrot.slane %v5282_v53, 4  ;;  %v5325_v39 = vrot.slane %v5324_v11, 4  ;;  %v5191_v6 = vpop.permute.xlu0 %5190  ;;  %v5215_v57 = vpop.permute.xlu1 %5214 }
 0xf71   :  { %v5320_v41 = vrot.slane %v5319_v8, 2  ;;  %v5231_v56 = vmul.f32 %v5191_v6, %v5158_v28  ;;  %v5237_v25 = vmul.f32 %v5215_v57, %v8516_v1  ;;  %v5393_v32 = vadd.f32 %v8482_v9, %v5246_v4 }
 0xf72   :  { %v8582_v12 = vunpack.c.l.b16 %v5507_v43  ;;  %v5284_v34 = vadd.f32 %v5283_v40, %v5282_v53  ;;  %v5326_v50 = vadd.f32 %v5325_v39, %v5324_v11  ;;  %v5279_v17 = vadd.f32 %v5278_v60, %v5277_v55 }
 0xf73   :  { %v5289_v31 = vsel %vm481_vm3, %v5231_v56, 0.0  ;;  %v5331_v16 = vsel %vm481_vm3, %v5237_v25, 0.0  ;;  %v5498_v58 = vpack.c.bf16 %v5474_v51, %v5474_v51  ;;  %v5321_v10 = vadd.f32 %v5320_v41, %v5319_v8 }
 0xf74   :  { %v5285_v13 = vrot.slane %v5284_v34, 2  ;;  %v5327_v30 = vrot.slane %v5326_v50, 2  ;;  %v5290_v37 = vrot.slane %v5289_v31, 4  ;;  %v5332_v7 = vrot.slane %v5331_v16, 4  ;;  %v5195_v5 = vpop.permute.xlu0 %5194  ;;  %v5219_v28 = vpop.permute.xlu1 %5218 }
 0xf75   :  { %v5232_v1 = vmul.f32 %v5195_v5, %v8430_v0  ;;  %v5238_v19 = vmul.f32 %v5219_v28, %v8540_v61  ;;  %v5537_v35 = vunpack.c.l.b16 %v5498_v58  ;;  %v5554_v14 = vrot.slane %v8575_v38, 6 }
 0xf76   :  { %v8589_v33 = vadd.f32 %v5285_v13, %v5284_v34  ;;  %v5291_v26 = vadd.f32 %v5290_v37, %v5289_v31  ;;  %v5333_v18 = vadd.f32 %v5332_v7, %v5331_v16  ;;  %v5328_v20 = vadd.f32 %v5327_v30, %v5326_v50 }
 0xf77   :  { %v5296_v51 = vsel %vm481_vm3, %v5232_v1, 0.0  ;;  %v5338_v63 = vsel %vm481_vm3, %v5238_v19, 0.0  ;;  %v5506_v45 = vpack.c.bf16 %v8567_v21, %v8567_v21  ;;  %v5552_v53 = vrot.slane %v5537_v35, 7 }
 0xf78   :  { %v5292_v24 = vrot.slane %v5291_v26, 2  ;;  %v5334_v29 = vrot.slane %v5333_v18, 2  ;;  %v5297_v0 = vrot.slane %v5296_v51, 4  ;;  %v5339_v55 = vrot.slane %v5338_v63, 4  ;;  %v5426_v61 = vpop.permute.xlu0 %5425  ;;  %v5223_v8 = vpop.permute.xlu1 %5222 }
 0xf79   :  { %v5473_v11 = vmul.f32 %v5426_v61, %v5393_v32  ;;  %v5239_v4 = vmul.f32 %v5223_v8, %v8554_v44  ;;  %v8597_v43 = vunpack.c.l.b16 %v5506_v45  ;;  %v5568_v39 = vrot.slane %v8582_v12, 6 }
 0xf7a   :  { %v8599_v38 = vadd.f32 %v5292_v24, %v5291_v26  ;;  %v5298_v60 = vadd.f32 %v5297_v0, %v5296_v51  ;;  %v5340_v40 = vadd.f32 %v5339_v55, %v5338_v63  ;;  %v5335_v6 = vadd.f32 %v5334_v29, %v5333_v18 }
 0xf7b   :  { %v5497_v21 = vpack.c.bf16 %v5473_v11, %v5473_v11  ;;  %v5345_v57 = vsel %vm481_vm3, %v5239_v4, 0.0  ;;  %v5322_v41 = vrot.slane %v5321_v10, 1  ;;  %v5273_v31 = vrot.slane %v5272_v49, 1 }
 0xf7c   :  { %v5299_v56 = vrot.slane %v5298_v60, 2  ;;  %v5341_v25 = vrot.slane %v5340_v40, 2  ;;  %v5346_v34 = vrot.slane %v5345_v57, 4  ;;  %v5442_v50 = vpop.permute.xlu0 %5441  ;;  %v5448_v32 = vpop.permute.xlu1 %5447  ;;  %v5329_v58 = vrot.slane %v5328_v20, 1 }
 0xf7d   :  { %v5536_v44 = vunpack.c.l.b16 %v5497_v21  ;;  %v5323_v16 = vadd.f32 %v5322_v41, %v5321_v10  ;;  %v5280_v13 = vrot.slane %v5279_v17, 1  ;;  %v5274_v5 = vadd.f32 %v5273_v31, %v5272_v49 }
 0xf7e   :  { %v5300_v30 = vadd.f32 %v5299_v56, %v5298_v60  ;;  %v5342_v37 = vadd.f32 %v5341_v25, %v5340_v40  ;;  %v5347_v7 = vadd.f32 %v5346_v34, %v5345_v57  ;;  %v5330_v19 = vadd.f32 %v5329_v58, %v5328_v20 }
 0xf7f   :  { %v5553_v28 = vsel %vm1545_vm6, %v5552_v53, %v5536_v44  ;;  %v5404_v1 = vadd.f32 %v5372_v62, %v5323_v16  ;;  %v5281_v35 = vadd.f32 %v5280_v13, %v5279_v17  ;;  %v5566_v51 = vrot.slane %v8597_v43, 7 }
 0xf80   :  { %v5555_v26 = vsel %vm1548_vm7, %v5554_v14, %v5553_v28  ;;  %v5301_v18 = vrot.slane %v5300_v30, 1  ;;  %v5397_v10 = vadd.f32 %v5366_v54, %v5274_v5  ;;  %v5434_v63 = vpop.permute.xlu0 %5433  ;;  %v5450_v45 = vpop.permute.xlu1 %5449  ;;  %v5348_v24 = vrot.slane %v5347_v7, 2 }
 0xf81   :  { %v5484_v29 = vmul.f32 %v5448_v32, %v5404_v1  ;;  %v5557_v49 = vsel %vm1551_vm8, %v5556_v22, %v5555_v26  ;;  %v5405_v62 = vadd.f32 %v5373_v52, %v5330_v19  ;;  %v5398_v14 = vadd.f32 %v5367_v15, %v5281_v35 }
 0xf82   :  { %v5302_v17 = vadd.f32 %v5301_v18, %v5300_v30  ;;  %v5477_v20 = vmul.f32 %v5434_v63, %v5397_v10  ;;  %v5336_v0 = vrot.slane %v5335_v6, 1  ;;  %v5287_v54 = vrot.slane %v8589_v33, 1 }
 0xf83   :  { %v5508_v55 = vpack.c.bf16 %v5484_v29, %v5484_v29  ;;  %v5485_v61 = vmul.f32 %v5450_v45, %v5405_v62  ;;  %v5343_v8 = vrot.slane %v5342_v37, 1  ;;  %v5294_v43 = vrot.slane %v8599_v38, 1 }
 0xf84   :  { %v5401_v53 = vadd.f32 %v8488_v36, %v5302_v17  ;;  %v5501_v11 = vpack.c.bf16 %v5477_v20, %v5477_v20  ;;  %v5436_v42 = vpop.permute.xlu0 %5435  ;;  %v5452_v4 = vpop.permute.xlu1 %5451  ;;  %v5337_v22 = vadd.f32 %v5336_v0, %v5335_v6  ;;  %v5288_v21 = vadd.f32 %v5287_v54, %v8589_v33 }
 0xf85   :  { %v5547_v52 = vunpack.c.l.b16 %v5508_v55  ;;  %v5509_v60 = vpack.c.bf16 %v5485_v61, %v5485_v61  ;;  %v5478_v40 = vmul.f32 %v5436_v42, %v5398_v14  ;;  %v5344_v56 = vadd.f32 %v5343_v8, %v5342_v37 }
 0xf86   :  { %v5481_v15 = vmul.f32 %v5442_v50, %v5401_v53  ;;  %v5540_v57 = vunpack.c.l.b16 %v5501_v11  ;;  %v5406_v41 = vadd.f32 %v5374_v2, %v5337_v22  ;;  %v5349_v25 = vadd.f32 %v5348_v24, %v5347_v7 }
 0xf87   :  { %v5548_v34 = vunpack.c.l.b16 %v5509_v60  ;;  %v5502_v32 = vpack.c.bf16 %v5478_v40, %v5478_v40  ;;  %v5399_v31 = vadd.f32 %v5368_v48, %v5288_v21  ;;  %v5407_v33 = vadd.f32 %v5375_v59, %v5344_v56  ;;  %v5920_v40 = vld [vmem:[#allocation5] ss:$0 sm:$0xff] }
 0xf88   :  { %v5505_v6 = vpack.c.bf16 %v5481_v15, %v5481_v15  ;;  %v5558_v44 = vrot.slane %v5540_v57, 4  ;;  %v5486_v16 = vmul.f32 %v5452_v4, %v5406_v41  ;;  %v5438_v58 = vpop.permute.xlu0 %5437  ;;  %v5454_v13 = vpop.permute.xlu1 %5453  ;;  %v5570_v50 = vrot.slane %v5547_v52, 5 }
 0xf89   :  { %v5541_v30 = vunpack.c.l.b16 %v5502_v32  ;;  %v5479_v5 = vmul.f32 %v5438_v58, %v5399_v31  ;;  %v5295_v2 = vadd.f32 %v5294_v43, %v8599_v38  ;;  %v5487_v1 = vmul.f32 %v5454_v13, %v5407_v33 }
 0xf8a   :  { %v5544_v37 = vunpack.c.l.b16 %v5505_v6  ;;  %v5559_v7 = vsel %vm1554_vm9, %v5558_v44, %v5557_v49  ;;  %v5510_v28 = vpack.c.bf16 %v5486_v16, %v5486_v16  ;;  %v5350_v26 = vrot.slane %v5349_v25, 1 }
 0xf8b   :  { %v5560_v19 = vrot.slane %v5541_v30, 3  ;;  %v5503_v48 = vpack.c.bf16 %v5479_v5, %v5479_v5  ;;  %v5400_v35 = vadd.f32 %v5369_v3, %v5295_v2  ;;  %v5572_v10 = vrot.slane %v5548_v34, 4 }
 0xf8c   :  { %v5567_v18 = vsel %vm1545_vm6, %v5566_v51, %v5544_v37  ;;  %v5549_v59 = vunpack.c.l.b16 %v5510_v28  ;;  %v5511_v63 = vpack.c.bf16 %v5487_v1, %v5487_v1  ;;  %v5440_v45 = vpop.permute.xlu0 %5439  ;;  %v5351_v3 = vadd.f32 %v5350_v26, %v5349_v25  ;;  %v5456_v0 = vpop.permute.xlu1 %5455 }
 0xf8d   :  { %v5569_v38 = vsel %vm1548_vm7, %v5568_v39, %v5567_v18  ;;  %v5561_v24 = vsel %vm1557_vm10, %v5560_v19, %v5559_v7  ;;  %v5542_v29 = vunpack.c.l.b16 %v5503_v48  ;;  %v5480_v49 = vmul.f32 %v5440_v45, %v5400_v35  ;;  %v6280_v7 = vld [vmem:[%s6910_s6 + $0x8] sm:$0xff]  }
 0xf8e   :  { %v5571_v62 = vsel %vm1551_vm8, %v5570_v50, %v5569_v38  ;;  %v5574_v17 = vrot.slane %v5549_v59, 3  ;;  %v5550_v9 = vunpack.c.l.b16 %v5511_v63  ;;  %v5408_v12 = vadd.f32 %v5376_v46, %v5351_v3  ;;  %v5926_v46 = vld [vmem:[#allocation7] ss:$0 sm:$0xff]  ;;  %v5927_v59 = vld [vmem:[#allocation8] ss:$0 sm:$0xff] }
 0xf8f   :  { %v5573_v20 = vsel %vm1554_vm9, %v5572_v10, %v5571_v62  ;;  %v5562_v51 = vrot.slane %v5542_v29, 2  ;;  %v5504_v14 = vpack.c.bf16 %v5480_v49, %v5480_v49 }
 0xf90   :  { %v5575_v55 = vsel %vm1557_vm10, %v5574_v17, %v5573_v20  ;;  %v5576_v61 = vrot.slane %v5550_v9, 2  ;;  %v5488_v53 = vmul.f32 %v5456_v0, %v5408_v12 }
 0xf91   :  { %v5563_v39 = vsel %vm1560_vm11, %v5562_v51, %v5561_v24  ;;  %v5543_v54 = vunpack.c.l.b16 %v5504_v14  ;;  %v5928_v24 = vld [vmem:[#allocation10] ss:$0 sm:$0xff] }
 0xf92   :  { %v5577_v8 = vsel %vm1560_vm11, %v5576_v61, %v5575_v55  ;;  %v5512_v42 = vpack.c.bf16 %v5488_v53, %v5488_v53 }
 0xf93   :  { %v5564_v11 = vrot.slane %v5543_v54, 1 }
 0xf94   :  { %v5551_v22 = vunpack.c.l.b16 %v5512_v42 }
 0xf95   :  { %v5565_v4 = vsel %vm1563_vm12, %v5564_v11, %v5563_v39 }
 0xf96   :  { %v5578_v43 = vrot.slane %v5551_v22, 1 }
 0xf98   :  { %v5579_v52 = vsel %vm1563_vm12, %v5578_v43, %v5577_v8 }
 0xf99   :  { %v5580_v60 = vpack.c.b16 %v5579_v52, %v5565_v4 }
 0xf9b   :  { %6156 = vmatmul.mubr.msk.bf16.vlgmr.msra.gmra.mrb[28].mxu0 %vm481_vm3, %v5580_v60 }
0x106e   :  { %v5642_v36 = vpop.f32.mrb[28].mxu0 }
0x106f   :  { %v5643_v21 = vadd.f32 %v5920_v40, %v5642_v36  ;;  %v6157_v15 = vpop.f32.mrb[29].mxu0 }
0x1070   :  { %v5645_v57 = vpop.f32.mrb[30].mxu0 }
0x1071   :  { %v5656_v41 = vmul.f32 %v5926_v46, %v5643_v21  ;;  %v5646_v56 = vadd.f32 %v5920_v40, %v5645_v57  ;;  %v6158_v25 = vpop.f32.mrb[31].mxu0 }
0x1073   :  { %v5657_v34 = vmul.f32 %v5926_v46, %v5646_v56  ;;  %v5658_v32 = vadd.f32 %v5656_v41, %v8247_v27 }
0x1075   :  { %v5660_v31 = vsel %vm276_vm1, %v5658_v32, 0.0  ;;  %v5659_v6 = vadd.f32 %v5657_v34, %v8250_v47  ;;  %v6279_v47 = vld [vmem:[%s6910_s6] sm:$0xff]   ;;  %s6674_s6 = smov [#allocation11]  }
0x1076   :  { %5661 = vadd.xlane.f32.xlu0 %v5660_v31  ;;  %6160 = vmatpush3.bf16.msra.mxu1 %v6279_v47  ;;  %s5773_s9 = sshll.u32 %s6674_s6, 4  ;;  %s5774_s9 = int_to_ptr.vmem [resolvable:$true] %s5773_s9 }
0x1077   :  { %v5663_v44 = vsel %vm276_vm1, %v5659_v6, 0.0  ;;  %6161 = vmatprep.subr.bf16.mxu1 %v8720_v23  ;;  %s6589_s17 = scalar_lea.vmem %s5774_s9, 256  ;;  %p6594_p13 = scmp.lt.s32.totalorder %s5774_s9, %s5774_s9 }
0x1078   :  { %5664 = vadd.xlane.f32.xlu1 %v5663_v44  ;;  %p6590_p12 = scmp.ne.s32.totalorder %s5774_s9, %s6589_s17  ;;  %p6595_p0 = scmp.lt.s32.totalorder %s6589_s17, %s6589_s17 }
0x107a   :  { %6162 = vmatpush3.bf16.msra.mxu1 %v6280_v7  ;;  %p6596_p1 = por %p6595_p0, %p6594_p13 }
0x107c   :  { %p6597_p2 = pnand %p6596_p1, %p6590_p12 }
0x1103   :  { %v5662_v16 = vpop.xlane.xlu0 %5661 }
0x1104   :  { %v5667_v58 = vmul.f32 0.03125, %v5662_v16 }
0x1105   :  { %v5665_v13 = vpop.xlane.xlu1 %5664 }
0x1106   :  { %v5669_v33 = vsub.f32 %v5658_v32, %v5667_v58  ;;  %v5668_v50 = vmul.f32 0.03125, %v5665_v13 }
0x1108   :  { %v5670_v30 = vsub.f32 %v5659_v6, %v5668_v50  ;;  %v5671_v5 = vmul.f32 %v5669_v33, %v5669_v33 }
0x110a   :  { %v5673_v2 = vsel %vm276_vm1, %v5671_v5, 0.0  ;;  %v5672_v27 = vmul.f32 %v5670_v30, %v5670_v30 }
0x110b   :  { %5674 = vadd.xlane.f32.xlu0 %v5673_v2 }
0x110c   :  { %v5676_v37 = vsel %vm276_vm1, %v5672_v27, 0.0 }
0x110f   :  { %5677 = vadd.xlane.f32.xlu0 %v5676_v37 }
0x1198   :  { %v5675_v28 = vpop.xlane.xlu0 %5674 }
0x1199   :  { %v5679_v1 = vmul.f32 0.03125, %v5675_v28 }
0x119b   :  { %v5681_v19 = vadd.f32 1e-05, %v5679_v1 }
0x119c   :  { %v5678_v48 = vpop.xlane.xlu0 %5677 }
0x119d   :  { %6473 = vrsqrt.f32 %v5681_v19  ;;  %v5680_v35 = vmul.f32 0.03125, %v5678_v48 }
0x119f   :  { %v5682_v26 = vadd.f32 1e-05, %v5680_v35 }
0x11a1   :  { %6475 = vrsqrt.f32 %v5682_v26 }
0x11a7   :  { %v6474_v18 = vpop.eup %6473 }
0x11a8   :  { %v5685_v10 = vmul.f32 %v6474_v18, %v5669_v33 }
0x11aa   :  { %v5694_v45 = vmul.f32 %v5927_v59, %v5685_v10 }
0x11ab   :  { %v6476_v63 = vpop.eup %6475 }
0x11ac   :  { %v5686_v38 = vmul.f32 %v6476_v63, %v5670_v30  ;;  %v5703_v49 = vadd.f32 %v5928_v24, %v5694_v45 }
0x11ae   :  { %v5695_v29 = vmul.f32 %v5927_v59, %v5686_v38 }
0x11b0   :  { %v5704_v62 = vadd.f32 %v5928_v24, %v5695_v29 }
0x11b2   :  { %v5709_v23 = vpack.c.bf16 %v5704_v62, %v5703_v49 }
0x11b4   :  { %6164 = vmatmul.mubr.msk.bf16.vlgmr.msra.gmra.mrb[28].mxu1 %vm276_vm1, %v5709_v23 }
0x1287   :  { %v5759_v17 = vpop.f32.mrb[28].mxu1 }
0x1288   :  { %5766 = vst.msk [vmem:[#allocation11] sm:$0xff] %vm481_vm3, %v5759_v17  ;;  %v6165_v9 = vpop.f32.mrb[29].mxu1 }
0x1289   :  { %v5762_v3 = vpop.f32.mrb[30].mxu1 }
0x128a   :  { %5767 = vst.msk [vmem:[#allocation11 + $0x8] sm:$0xff] %vm481_vm3, %v5762_v3  ;;  %v6166_v20 = vpop.f32.mrb[31].mxu1 }
0x128b   :  { %6600 = shalt.err (!%p6597_p2)
}
0x128c   :  { %s6601_s21 = scalar_lea.hbm %s6915_s30, 256 }
0x128d   :  { %p6602_p3 = scmp.ne.s32.totalorder %s6915_s30, %s6601_s21  ;;  %p6605_p4 = scmp.lt.u32.totalorder %s6601_s21, %s6915_s30 }
0x128f   :  { %p6607_p5 = pnand %p6605_p4, %p6602_p3 }
0x1291   :  { %6610 = shalt.err (!%p6607_p5)
}
0x1292   :  { %s6675_s25 = smov 128   ;;  %s6676_s29 = smov 8  }
0x1293   :  { %5779 = dma.vmem_to_hbm [thread:$0]  %s5774_s9, 256, %s6915_s30, [#allocation4], %s6675_s25, %s6675_s25, %s6676_s29  }
0x1294   :  { %6617 = dma.done.wait [#allocation4], 256  }
0x1295   :  { %6618 = vsyncadd [#allocation4], 4294967040 }
0x1296   :  { %5783 = vsyncpa [#allocation3], 1 }
0x1297   :  { %5784 = vsyncpa [#allocation6], 1 }
0x1298   :  { %5785 = vsyncpa [#allocation9], 1 }
0x1299   :  { %5786 = vsyncpa [#allocation4], 1 }

</bundles_post_ra>
